<compile_context>
chip_gen: v6e
topology: v6e:2x2x1
jax: 0.10.0
libtpu: 0.0.40
codegen_flags: <defaults>
</compile_context>

<pallas_src>
import functools

import jax
import jax.numpy as jnp
from jax.experimental import pallas as pl
from jax.experimental.pallas import tpu as pltpu

NUM_CLASSES = 10
NOISE_DIM = 100
INPUT_DIM = NOISE_DIM + NUM_CLASSES   # 110
H1, H2, H3 = 256, 512, 1024
OUTPUT_DIM = 784

IN_PAD = 128     # 110 -> 128   (lane-aligned K for the first matmul)
OUT_PAD = 896    # 784 -> 896   (7 * 128, unmasked lane-dense output stores)


def _round_up(a, m):
    return (a + m - 1) // m * m


def _cdiv(a, b):
    return (a + b - 1) // b


def _device_kind():
    try:
        return jax.devices()[0].device_kind.lower()
    except Exception:
        return ""


def _use_bf16_activations():
    # v5e and older have no bf16 VALU; keep the LeakyReLU in f32 there.
    kind = _device_kind()
    return not any(t in kind for t in ("v2", "v3", "v4", "v5"))


def _cores_per_chip():
    # v7x has 2 TensorCores per chip; v4 / v5p are megacore.  They are fed by
    # dimension_semantics=("parallel",) as long as the batch grid has >= 2
    # steps, so we make sure not to collapse B <= 512 into a single tile there.
    kind = _device_kind()
    return 2 if any(t in kind for t in ("v7", "tpu7", "7x", "v4", "v5p")) else 1


_ACT_DTYPE = jnp.bfloat16 if _use_bf16_activations() else jnp.float32
_CORES_PER_CHIP = _cores_per_chip()


# ----------------------------------------------------------------------------
# Kernel
# ----------------------------------------------------------------------------
def _generator_mlp_kernel(x_ref,
                          w1_ref, b1_ref,
                          w2_ref, b2_ref,
                          w3_ref, b3_ref,
                          w4_ref, b4_ref,
                          o_ref,
                          *, act_dtype):
    """One batch tile: 3x (Linear + LeakyReLU(0.2)) + Linear + Tanh.

    Matmuls take bf16 operands and accumulate in f32 on the MXU.  The bias add
    happens on the f32 accumulator; the LeakyReLU compare/select then runs in
    `act_dtype` (bf16 on v6e/v7x, f32 on v5e) and the result is fed back to the
    MXU as bf16.  The final tanh runs in f32 on the EUP and is stored as bf16.
    """
    def act(h_f32):
        h = h_f32.astype(act_dtype)
        return jnp.where(h >= 0, h, 0.2 * h).astype(jnp.bfloat16)

    x = x_ref[...]                                                       # (TB, 128) bf16
    h = act(jnp.dot(x, w1_ref[...], preferred_element_type=jnp.float32) + b1_ref[...])
    h = act(jnp.dot(h, w2_ref[...], preferred_element_type=jnp.float32) + b2_ref[...])
    h = act(jnp.dot(h, w3_ref[...], preferred_element_type=jnp.float32) + b3_ref[...])
    h = jnp.dot(h, w4_ref[...], preferred_element_type=jnp.float32) + b4_ref[...]
    o_ref[...] = jnp.tanh(h).astype(o_ref.dtype)                         # (TB, 896) bf16


# ----------------------------------------------------------------------------
# One-time parameter preparation (do NOT call per forward step)
# ----------------------------------------------------------------------------
def prepare_params(params):
    """Pad weights to lane multiples and cast matmul operands to bf16 once."""
    emb, (w1, b1), (w2, b2), (w3, b3), (w4, b4) = params
    w1p = jnp.pad(w1, ((0, IN_PAD - INPUT_DIM), (0, 0))).astype(jnp.bfloat16)
    w4p = jnp.pad(w4, ((0, 0), (0, OUT_PAD - OUTPUT_DIM))).astype(jnp.bfloat16)
    b4p = jnp.pad(b4, ((0, 0), (0, OUT_PAD - OUTPUT_DIM)))      # biases stay f32
    return dict(
        emb=emb,
        w1=w1p, b1=b1,
        w2=w2.astype(jnp.bfloat16), b2=b2,
        w3=w3.astype(jnp.bfloat16), b3=b3,
        w4=w4p, b4=b4p,
    )


def _pick_tile_b(B, *, cap=512, min_tiles=1):
    """Batch tile: multiple of 16, balanced against B, >= min_tiles tiles for
    large B (multi-TensorCore chips)."""
    n_tiles = max(min_tiles if B > 64 else 1, _cdiv(B, cap))
    return _round_up(_cdiv(B, n_tiles), 16)


# ----------------------------------------------------------------------------
# Forward pass (single jit: prologue + pallas_call + epilogue all fuse)
# ----------------------------------------------------------------------------
@functools.partial(jax.jit, static_argnames=("tile_b", "unpad", "out_dtype"))
def conditional_generator(x, labels, prep, tile_b=None, unpad=True,
                          out_dtype=jnp.float32):
    """x: (B, 100) f32, labels: (B,) int32 -> (B, 784) out_dtype (default f32).

    Pass unpad=False / out_dtype=jnp.bfloat16 to consume the padded bf16 slab
    directly and skip the post-kernel slice copy entirely.
    """
    B = x.shape[0]

    # TODO(synk): embedding gather + concat stay in this jitted JAX prologue
    # rather than being folded into the kernel via scalar-prefetched labels.
    c = jnp.take(prep["emb"], labels, axis=0)                 # (B, 10)
    xc = jnp.concatenate([x, c], axis=1)                      # (B, 110)
    xc = jnp.pad(xc, ((0, 0), (0, IN_PAD - INPUT_DIM))).astype(jnp.bfloat16)

    if tile_b is None:
        tile_b = _pick_tile_b(B, cap=512, min_tiles=_CORES_PER_CHIP)
    B_pad = _round_up(B, tile_b)
    if B_pad != B:
        xc = jnp.pad(xc, ((0, B_pad - B), (0, 0)))
    grid = (B_pad // tile_b,)

    def full(shape):
        # Whole-array block with a constant index_map: DMA'd once and reused
        # for every batch tile (no re-fetch between grid steps).
        return pl.BlockSpec(shape, lambda i: (0, 0))

    kernel = functools.partial(_generator_mlp_kernel, act_dtype=_ACT_DTYPE)

    out = pl.pallas_call(
        kernel,
        out_shape=jax.ShapeDtypeStruct((B_pad, OUT_PAD), jnp.bfloat16),
        grid_spec=pltpu.PrefetchScalarGridSpec(
            num_scalar_prefetch=0,
            grid=grid,
            in_specs=[
                pl.BlockSpec((tile_b, IN_PAD), lambda i: (i, 0)),
                full((IN_PAD, H1)),  full((1, H1)),
                full((H1, H2)),      full((1, H2)),
                full((H2, H3)),      full((1, H3)),
                full((H3, OUT_PAD)), full((1, OUT_PAD)),
            ],
            out_specs=pl.BlockSpec((tile_b, OUT_PAD), lambda i: (i, 0)),
        ),
        compiler_params=pltpu.CompilerParams(
            dimension_semantics=("parallel",),
            vmem_limit_bytes=32 << 20,
        ),
    )(xc, prep["w1"], prep["b1"], prep["w2"], prep["b2"],
      prep["w3"], prep["b3"], prep["w4"], prep["b4"])

    if unpad:
        out = out[:B, :OUTPUT_DIM]
    return out.astype(out_dtype)


# ----------------------------------------------------------------------------
# Parameter init + plain-JAX reference
# ----------------------------------------------------------------------------
def init_params(key):
    """Deterministic synthetic parameters (same shapes as the PyTorch module)."""
    ks = jax.random.split(key, 9)

    def linear(kw, kb, fan_in, fan_out):
        bound = 1.0 / jnp.sqrt(fan_in)
        w = jax.random.uniform(kw, (fan_in, fan_out), jnp.float32, -bound, bound)
        b = jax.random.uniform(kb, (1, fan_out), jnp.float32, -bound, bound)
        return w, b

    emb = jax.random.normal(ks[0], (NUM_CLASSES, NUM_CLASSES), jnp.float32)
    l1 = linear(ks[1], ks[2], INPUT_DIM, H1)
    l2 = linear(ks[3], ks[4], H1, H2)
    l3 = linear(ks[5], ks[6], H2, H3)
    l4 = linear(ks[7], ks[8], H3, OUTPUT_DIM)
    return emb, l1, l2, l3, l4


def reference_forward(x, labels, params):
    """Plain-JAX reference (bf16 matmul operands, f32 accumulation/activations).

    Note: the bf16 operand cast matches the kernel's MXU recipe; a true f32
    PyTorch forward would differ by up to ~1e-2 post-tanh (within tolerance).
    """
    emb, (w1, b1), (w2, b2), (w3, b3), (w4, b4) = params
    c = jnp.take(emb, labels, axis=0)
    h = jnp.concatenate([x, c], axis=1)

    def lin(a, w, b):
        return jnp.dot(a.astype(jnp.bfloat16), w.astype(jnp.bfloat16),
                       preferred_element_type=jnp.float32) + b

    def leaky(v):
        return jnp.where(v >= 0, v, 0.2 * v)

    h = leaky(lin(h, w1, b1))
    h = leaky(lin(h, w2, b2))
    h = leaky(lin(h, w3, b3))
    return jnp.tanh(lin(h, w4, b4))


if __name__ == "__main__":
    key = jax.random.PRNGKey(0)
    k_p, k_x, k_l = jax.random.split(key, 3)

    raw_params = init_params(k_p)
    prep = prepare_params(raw_params)      # one-time weight prep (hoisted)

    B = 8
    x = jax.random.normal(k_x, (B, NOISE_DIM), jnp.float32)
    labels = jax.random.randint(k_l, (B,), 0, NUM_CLASSES, dtype=jnp.int32)

    out = conditional_generator(x, labels, prep)
    jax.block_until_ready(out)

    ref = reference_forward(x, labels, raw_params)
    assert out.shape == (B, OUTPUT_DIM)
    assert out.dtype == jnp.float32
    max_diff = float(jnp.max(jnp.abs(out - ref)))
    assert jnp.allclose(out, ref, atol=2e-2, rtol=2e-2), (
        f"max abs diff = {max_diff}")

    print("KERNEL_OK")
</pallas_src>

<mosaic_0001>
module attributes {stable_mosaic.version = 11 : i64} {
  func.func @_generator_mlp_kernel(%arg0: i32, %arg1: memref<16x128xbf16, #tpu.memory_space<vmem>>, %arg2: memref<128x256xbf16, #tpu.memory_space<vmem>>, %arg3: memref<1x256xf32, #tpu.memory_space<vmem>>, %arg4: memref<256x512xbf16, #tpu.memory_space<vmem>>, %arg5: memref<1x512xf32, #tpu.memory_space<vmem>>, %arg6: memref<512x1024xbf16, #tpu.memory_space<vmem>>, %arg7: memref<1x1024xf32, #tpu.memory_space<vmem>>, %arg8: memref<1024x896xbf16, #tpu.memory_space<vmem>>, %arg9: memref<1x896xf32, #tpu.memory_space<vmem>>, %arg10: memref<16x896xbf16, #tpu.memory_space<vmem>>) attributes {dimension_semantics = [#tpu.dimension_semantics<parallel>], iteration_bounds = array<i64: 1>, scalar_prefetch = 0 : i64, scratch_operands = 0 : i64, tpu.core_type = #tpu.core_type<tc>, window_params = [{transform_indices = @transform_0, window_bounds = array<i64: 16, 128>}, {pipeline_mode = #tpu.pipeline_mode<synchronous>, transform_indices = @transform_1, window_bounds = array<i64: 128, 256>}, {pipeline_mode = #tpu.pipeline_mode<synchronous>, transform_indices = @transform_2, window_bounds = array<i64: 1, 256>}, {pipeline_mode = #tpu.pipeline_mode<synchronous>, transform_indices = @transform_3, window_bounds = array<i64: 256, 512>}, {pipeline_mode = #tpu.pipeline_mode<synchronous>, transform_indices = @transform_4, window_bounds = array<i64: 1, 512>}, {pipeline_mode = #tpu.pipeline_mode<synchronous>, transform_indices = @transform_5, window_bounds = array<i64: 512, 1024>}, {pipeline_mode = #tpu.pipeline_mode<synchronous>, transform_indices = @transform_6, window_bounds = array<i64: 1, 1024>}, {pipeline_mode = #tpu.pipeline_mode<synchronous>, transform_indices = @transform_7, window_bounds = array<i64: 1024, 896>}, {pipeline_mode = #tpu.pipeline_mode<synchronous>, transform_indices = @transform_8, window_bounds = array<i64: 1, 896>}, {transform_indices = @transform_9, window_bounds = array<i64: 16, 896>}]} {
    %c0 = arith.constant 0 : index
    %c0_0 = arith.constant 0 : index
    %0 = vector.load %arg1[%c0, %c0_0] : memref<16x128xbf16, #tpu.memory_space<vmem>>, vector<16x128xbf16>
    %c0_1 = arith.constant 0 : index
    %c0_2 = arith.constant 0 : index
    %1 = vector.load %arg2[%c0_1, %c0_2] : memref<128x256xbf16, #tpu.memory_space<vmem>>, vector<128x256xbf16>
    %cst = arith.constant dense<0.000000e+00> : vector<16x256xf32>
    %2 = tpu.matmul %0, %1, %cst {dimension_numbers = #tpu.dot_dimension_numbers<[1], [0], [0], [1], [0, 0, 1, 1], [], []>} : vector<16x128xbf16>, vector<128x256xbf16>, vector<16x256xf32> -> vector<16x256xf32>
    %c0_3 = arith.constant 0 : index
    %c0_4 = arith.constant 0 : index
    %3 = vector.load %arg3[%c0_3, %c0_4] : memref<1x256xf32, #tpu.memory_space<vmem>>, vector<1x256xf32>
    %4 = vector.broadcast %3 : vector<1x256xf32> to vector<16x256xf32>
    %5 = arith.addf %2, %4 : vector<16x256xf32>
    %6 = arith.truncf %5 : vector<16x256xf32> to vector<16x256xbf16>
    %cst_5 = arith.constant 0.000000e+00 : bf16
    %7 = vector.broadcast %cst_5 : bf16 to vector<16x256xbf16>
    %8 = arith.cmpf oge, %6, %7 : vector<16x256xbf16>
    %cst_6 = arith.constant 2.001950e-01 : bf16
    %9 = vector.broadcast %cst_6 : bf16 to vector<16x256xbf16>
    %10 = arith.mulf %9, %6 : vector<16x256xbf16>
    %11 = arith.select %8, %6, %10 : vector<16x256xi1>, vector<16x256xbf16>
    %c0_7 = arith.constant 0 : index
    %c0_8 = arith.constant 0 : index
    %12 = vector.load %arg4[%c0_7, %c0_8] : memref<256x512xbf16, #tpu.memory_space<vmem>>, vector<256x512xbf16>
    %cst_9 = arith.constant dense<0.000000e+00> : vector<16x512xf32>
    %13 = tpu.matmul %11, %12, %cst_9 {dimension_numbers = #tpu.dot_dimension_numbers<[1], [0], [0], [1], [0, 0, 1, 1], [], []>} : vector<16x256xbf16>, vector<256x512xbf16>, vector<16x512xf32> -> vector<16x512xf32>
    %c0_10 = arith.constant 0 : index
    %c0_11 = arith.constant 0 : index
    %14 = vector.load %arg5[%c0_10, %c0_11] : memref<1x512xf32, #tpu.memory_space<vmem>>, vector<1x512xf32>
    %15 = vector.broadcast %14 : vector<1x512xf32> to vector<16x512xf32>
    %16 = arith.addf %13, %15 : vector<16x512xf32>
    %17 = arith.truncf %16 : vector<16x512xf32> to vector<16x512xbf16>
    %cst_12 = arith.constant 0.000000e+00 : bf16
    %18 = vector.broadcast %cst_12 : bf16 to vector<16x512xbf16>
    %19 = arith.cmpf oge, %17, %18 : vector<16x512xbf16>
    %cst_13 = arith.constant 2.001950e-01 : bf16
    %20 = vector.broadcast %cst_13 : bf16 to vector<16x512xbf16>
    %21 = arith.mulf %20, %17 : vector<16x512xbf16>
    %22 = arith.select %19, %17, %21 : vector<16x512xi1>, vector<16x512xbf16>
    %c0_14 = arith.constant 0 : index
    %c0_15 = arith.constant 0 : index
    %23 = vector.load %arg6[%c0_14, %c0_15] : memref<512x1024xbf16, #tpu.memory_space<vmem>>, vector<512x1024xbf16>
    %cst_16 = arith.constant dense<0.000000e+00> : vector<16x1024xf32>
    %24 = tpu.matmul %22, %23, %cst_16 {dimension_numbers = #tpu.dot_dimension_numbers<[1], [0], [0], [1], [0, 0, 1, 1], [], []>} : vector<16x512xbf16>, vector<512x1024xbf16>, vector<16x1024xf32> -> vector<16x1024xf32>
    %c0_17 = arith.constant 0 : index
    %c0_18 = arith.constant 0 : index
    %25 = vector.load %arg7[%c0_17, %c0_18] : memref<1x1024xf32, #tpu.memory_space<vmem>>, vector<1x1024xf32>
    %26 = vector.broadcast %25 : vector<1x1024xf32> to vector<16x1024xf32>
    %27 = arith.addf %24, %26 : vector<16x1024xf32>
    %28 = arith.truncf %27 : vector<16x1024xf32> to vector<16x1024xbf16>
    %cst_19 = arith.constant 0.000000e+00 : bf16
    %29 = vector.broadcast %cst_19 : bf16 to vector<16x1024xbf16>
    %30 = arith.cmpf oge, %28, %29 : vector<16x1024xbf16>
    %cst_20 = arith.constant 2.001950e-01 : bf16
    %31 = vector.broadcast %cst_20 : bf16 to vector<16x1024xbf16>
    %32 = arith.mulf %31, %28 : vector<16x1024xbf16>
    %33 = arith.select %30, %28, %32 : vector<16x1024xi1>, vector<16x1024xbf16>
    %c0_21 = arith.constant 0 : index
    %c0_22 = arith.constant 0 : index
    %34 = vector.load %arg8[%c0_21, %c0_22] : memref<1024x896xbf16, #tpu.memory_space<vmem>>, vector<1024x896xbf16>
    %cst_23 = arith.constant dense<0.000000e+00> : vector<16x896xf32>
    %35 = tpu.matmul %33, %34, %cst_23 {dimension_numbers = #tpu.dot_dimension_numbers<[1], [0], [0], [1], [0, 0, 1, 1], [], []>} : vector<16x1024xbf16>, vector<1024x896xbf16>, vector<16x896xf32> -> vector<16x896xf32>
    %c0_24 = arith.constant 0 : index
    %c0_25 = arith.constant 0 : index
    %36 = vector.load %arg9[%c0_24, %c0_25] : memref<1x896xf32, #tpu.memory_space<vmem>>, vector<1x896xf32>
    %37 = vector.broadcast %36 : vector<1x896xf32> to vector<16x896xf32>
    %38 = arith.addf %35, %37 : vector<16x896xf32>
    %39 = math.tanh %38 : vector<16x896xf32>
    %40 = arith.truncf %39 : vector<16x896xf32> to vector<16x896xbf16>
    %c0_26 = arith.constant 0 : index
    %c0_27 = arith.constant 0 : index
    %41 = vector.load %arg10[%c0_26, %c0_27] : memref<16x896xbf16, #tpu.memory_space<vmem>>, vector<16x896xbf16>
    tpu.vector_store %arg10[%c0_26, %c0_27], %40 {strides = array<i32>} : memref<16x896xbf16, #tpu.memory_space<vmem>>, vector<16x896xbf16>,
    return
  }
  func.func @transform_0(%arg0: i32) -> (i32, i32) {
    %c0_i32 = arith.constant 0 : i32
    %c0_i32_0 = arith.constant 0 : i32
    return %arg0, %c0_i32 : i32, i32
  }
  func.func @transform_1(%arg0: i32) -> (i32, i32) {
    %c0_i32 = arith.constant 0 : i32
    %c0_i32_0 = arith.constant 0 : i32
    %c0_i32_1 = arith.constant 0 : i32
    return %c0_i32, %c0_i32_0 : i32, i32
  }
  func.func @transform_2(%arg0: i32) -> (i32, i32) {
    %c0_i32 = arith.constant 0 : i32
    %c0_i32_0 = arith.constant 0 : i32
    %c0_i32_1 = arith.constant 0 : i32
    return %c0_i32, %c0_i32_0 : i32, i32
  }
  func.func @transform_3(%arg0: i32) -> (i32, i32) {
    %c0_i32 = arith.constant 0 : i32
    %c0_i32_0 = arith.constant 0 : i32
    %c0_i32_1 = arith.constant 0 : i32
    return %c0_i32, %c0_i32_0 : i32, i32
  }
  func.func @transform_4(%arg0: i32) -> (i32, i32) {
    %c0_i32 = arith.constant 0 : i32
    %c0_i32_0 = arith.constant 0 : i32
    %c0_i32_1 = arith.constant 0 : i32
    return %c0_i32, %c0_i32_0 : i32, i32
  }
  func.func @transform_5(%arg0: i32) -> (i32, i32) {
    %c0_i32 = arith.constant 0 : i32
    %c0_i32_0 = arith.constant 0 : i32
    %c0_i32_1 = arith.constant 0 : i32
    return %c0_i32, %c0_i32_0 : i32, i32
  }
  func.func @transform_6(%arg0: i32) -> (i32, i32) {
    %c0_i32 = arith.constant 0 : i32
    %c0_i32_0 = arith.constant 0 : i32
    %c0_i32_1 = arith.constant 0 : i32
    return %c0_i32, %c0_i32_0 : i32, i32
  }
  func.func @transform_7(%arg0: i32) -> (i32, i32) {
    %c0_i32 = arith.constant 0 : i32
    %c0_i32_0 = arith.constant 0 : i32
    %c0_i32_1 = arith.constant 0 : i32
    return %c0_i32, %c0_i32_0 : i32, i32
  }
  func.func @transform_8(%arg0: i32) -> (i32, i32) {
    %c0_i32 = arith.constant 0 : i32
    %c0_i32_0 = arith.constant 0 : i32
    %c0_i32_1 = arith.constant 0 : i32
    return %c0_i32, %c0_i32_0 : i32, i32
  }
  func.func @transform_9(%arg0: i32) -> (i32, i32) {
    %c0_i32 = arith.constant 0 : i32
    %c0_i32_0 = arith.constant 0 : i32
    return %arg0, %c0_i32 : i32, i32
  }
}

</mosaic_0001>

<bundles_post_ra>
// kernel: conditional_generator.1
= control target key start
LH: loop header
LB: loop body
LE: loop exit
PB: predicated region body
PF: predicated region fallthrough
CT: control target
= control target key end

     0   :  { %14 = vsyncpa [#allocation3], 0  ;;  %s8514_s0 = inlined_call_operand.vmem [shape: bf16[16,128], index: 0, kind: input, shape index: {}]   ;;  %s8515_s1 = inlined_call_operand.hbm [shape: bf16[128,256], index: 1, kind: input, shape index: {}]   ;;  %s8516_s2 = inlined_call_operand.hbm [shape: f32[1,256], index: 2, kind: input, shape index: {}]   ;;  %s8517_s3 = inlined_call_operand.hbm [shape: bf16[256,512], index: 3, kind: input, shape index: {}]   ;;  %s8518_s4 = inlined_call_operand.hbm [shape: f32[1,512], index: 4, kind: input, shape index: {}]   ;;  %s8519_s5 = inlined_call_operand.hbm [shape: bf16[512,1024], index: 5, kind: input, shape index: {}]   ;;  %s8520_s6 = inlined_call_operand.hbm [shape: f32[1,1024], index: 6, kind: input, shape index: {}]   ;;  %s8521_s7 = inlined_call_operand.hbm [shape: bf16[1024,896], index: 7, kind: input, shape index: {}]   ;;  %s8522_s8 = inlined_call_operand.hbm [shape: f32[1,896], index: 8, kind: input, shape index: {}]   ;;  %s8523_s9 = inlined_call_operand.vmem [shape: bf16[16,896], index: 9, kind: output, shape index: {}]  }
   0x1   :  { %15 = vsyncpa [#allocation5], 0 }
   0x2   :  { %16 = vsyncpa [#allocation8], 0 }
   0x3   :  { %17 = vsyncpa [#allocation11], 0 }
   0x4   :  { %18 = vsyncpa [#allocation14], 0  ;;  %s8237_s30 = smov [#allocation4]   ;;  %s8238_s11 = smov [#allocation7]  }
   0x5   :  { %s39_s10 = sshll.u32 %s8237_s30, 4  ;;  %s61_s12 = sshll.u32 %s8238_s11, 4  ;;  %s40_s10 = int_to_ptr.vmem [resolvable:$true] %s39_s10  ;;  %s62_s12 = int_to_ptr.vmem [resolvable:$true] %s61_s12 }
   0x6   :  { %s8075_s13 = scalar_lea.vmem %s40_s10, 32  ;;  %p8080_p1 = scmp.lt.s32.totalorder %s40_s10, %s40_s10 }
   0x7   :  { %p8076_p0 = scmp.ne.s32.totalorder %s40_s10, %s8075_s13  ;;  %p8081_p2 = scmp.lt.s32.totalorder %s8075_s13, %s8075_s13 }
   0x9   :  { %p8082_p3 = por %p8081_p2, %p8080_p1 }
   0xb   :  { %p8083_p4 = pnand %p8082_p3, %p8076_p0 }
   0xd   :  { %8086 = shalt.err (!%p8083_p4)
}
   0xe   :  { %42 = dma.hbm_to_vmem [thread:$0]  %s8516_s2, 32, %s40_s10, [#allocation5]  }
   0xf   :  { %s8095_s16 = scalar_lea.vmem %s62_s12, 64  ;;  %p8100_p6 = scmp.lt.s32.totalorder %s62_s12, %s62_s12 }
  0x10   :  { %p8096_p5 = scmp.ne.s32.totalorder %s62_s12, %s8095_s16  ;;  %p8101_p7 = scmp.lt.s32.totalorder %s8095_s16, %s8095_s16 }
  0x12   :  { %p8102_p8 = por %p8101_p7, %p8100_p6 }
  0x14   :  { %p8103_p9 = pnand %p8102_p8, %p8096_p5 }
  0x16   :  { %8106 = shalt.err (!%p8103_p9)
}
  0x17   :  { %64 = dma.hbm_to_vmem [thread:$0]  %s8518_s4, 64, %s62_s12, [#allocation8]  }
  0x18   :  { %s8239_s19 = smov [#allocation10]   ;;  %s8240_s21 = smov [#allocation2]  }
  0x19   :  { %s83_s20 = sshll.u32 %s8239_s19, 4  ;;  %s26_s22 = sshll.u32 %s8240_s21, 4  ;;  %s84_s20 = int_to_ptr.vmem [resolvable:$true] %s83_s20  ;;  %s27_s22 = int_to_ptr.vmem [resolvable:$true] %s26_s22 }
  0x1a   :  { %s8115_s23 = scalar_lea.vmem %s84_s20, 128  ;;  %p8120_p11 = scmp.lt.s32.totalorder %s84_s20, %s84_s20 }
  0x1b   :  { %p8116_p10 = scmp.ne.s32.totalorder %s84_s20, %s8115_s23  ;;  %p8121_p12 = scmp.lt.s32.totalorder %s8115_s23, %s8115_s23 }
  0x1d   :  { %p8122_p13 = por %p8121_p12, %p8120_p11 }
  0x1f   :  { %p8123_p0 = pnand %p8122_p13, %p8116_p10 }
  0x21   :  { %8126 = shalt.err (!%p8123_p0)
}
  0x22   :  { %86 = dma.hbm_to_vmem [thread:$0]  %s8520_s6, 128, %s84_s20, [#allocation11]  }
  0x23   :  { %s8135_s25 = scalar_lea.vmem %s27_s22, 2048  ;;  %p8140_p2 = scmp.lt.s32.totalorder %s27_s22, %s27_s22 }
  0x24   :  { %p8136_p1 = scmp.ne.s32.totalorder %s27_s22, %s8135_s25  ;;  %p8141_p3 = scmp.lt.s32.totalorder %s8135_s25, %s8135_s25 }
  0x26   :  { %p8142_p4 = por %p8141_p3, %p8140_p2 }
  0x28   :  { %p8143_p5 = pnand %p8142_p4, %p8136_p1 }
  0x2a   :  { %8146 = shalt.err (!%p8143_p5)
}
  0x2b   :  { %s8241_s4 = smov 128   ;;  %s8242_s26 = smov 8  }
  0x2c   :  { %32 = dma.hbm_to_vmem [thread:$0]  %s8515_s1, 2048, %s27_s22, [#allocation3], %s8241_s4, %s8241_s4, %s8242_s26  }
  0x2d   :  { %s8243_s29 = smov [#allocation6]  }
  0x2e   :  { %s48_s30 = sshll.u32 %s8243_s29, 4  ;;  %s49_s30 = int_to_ptr.vmem [resolvable:$true] %s48_s30 }
  0x2f   :  { %s8155_s10 = scalar_lea.vmem %s49_s30, 8192  ;;  %p8160_p7 = scmp.lt.s32.totalorder %s49_s30, %s49_s30 }
  0x30   :  { %p8156_p6 = scmp.ne.s32.totalorder %s49_s30, %s8155_s10  ;;  %p8161_p8 = scmp.lt.s32.totalorder %s8155_s10, %s8155_s10 }
  0x32   :  { %p8162_p9 = por %p8161_p8, %p8160_p7 }
  0x34   :  { %p8163_p10 = pnand %p8162_p9, %p8156_p6 }
  0x36   :  { %8166 = shalt.err (!%p8163_p10)
}
  0x37   :  { %s8244_s6 = smov 256   ;;  %s8245_s11 = smov 16  }
  0x38   :  { %54 = dma.hbm_to_vmem [thread:$0]  %s8517_s3, 8192, %s49_s30, [#allocation5], %s8244_s6, %s8244_s6, %s8245_s11  }
  0x39   :  { %s8246_s14 = smov [#allocation9]  }
  0x3a   :  { %s70_s15 = sshll.u32 %s8246_s14, 4  ;;  %s71_s15 = int_to_ptr.vmem [resolvable:$true] %s70_s15 }
  0x3b   :  { %s8175_s1 = scalar_lea.vmem %s71_s15, 32768  ;;  %p8180_p12 = scmp.lt.s32.totalorder %s71_s15, %s71_s15 }
  0x3c   :  { %p8176_p11 = scmp.ne.s32.totalorder %s71_s15, %s8175_s1  ;;  %p8181_p13 = scmp.lt.s32.totalorder %s8175_s1, %s8175_s1 }
  0x3e   :  { %p8182_p0 = por %p8181_p13, %p8180_p12 }
  0x40   :  { %p8183_p1 = pnand %p8182_p0, %p8176_p11 }
  0x42   :  { %8186 = shalt.err (!%p8183_p1)
}
  0x43   :  { %s8247_s16 = smov 512   ;;  %s8248_s17 = smov 32  }
  0x44   :  { %76 = dma.hbm_to_vmem [thread:$0]  %s8519_s5, 32768, %s71_s15, [#allocation8], %s8247_s16, %s8247_s16, %s8248_s17  }
  0x45   :  { %s8249_s20 = smov [#allocation12]  }
  0x46   :  { %s92_s21 = sshll.u32 %s8249_s20, 4  ;;  %s93_s21 = int_to_ptr.vmem [resolvable:$true] %s92_s21 }
  0x47   :  { %s8195_s3 = scalar_lea.vmem %s93_s21, 57344  ;;  %p8200_p3 = scmp.lt.s32.totalorder %s93_s21, %s93_s21 }
  0x48   :  { %p8196_p2 = scmp.ne.s32.totalorder %s93_s21, %s8195_s3  ;;  %p8201_p4 = scmp.lt.s32.totalorder %s8195_s3, %s8195_s3 }
  0x4a   :  { %p8202_p5 = por %p8201_p4, %p8200_p3 }
  0x4c   :  { %p8203_p6 = pnand %p8202_p5, %p8196_p2 }
  0x4e   :  { %8206 = shalt.err (!%p8203_p6)
}
  0x4f   :  { %s8250_s22 = smov 448   ;;  %s8251_s23 = smov 28  }
  0x50   :  { %98 = dma.hbm_to_vmem [thread:$0]  %s8521_s7, 57344, %s93_s21, [#allocation11], %s8250_s22, %s8250_s22, %s8251_s23  }
  0x51   :  { %s8252_s25 = smov [#allocation13]  }
  0x52   :  { %s105_s4 = sshll.u32 %s8252_s25, 4  ;;  %s106_s4 = int_to_ptr.vmem [resolvable:$true] %s105_s4 }
  0x53   :  { %s8215_s5 = scalar_lea.vmem %s106_s4, 112  ;;  %s8219_s26 = scalar_lea.vmem %s106_s4, 128 }
  0x54   :  { %p8216_p7 = scmp.ne.s32.totalorder %s106_s4, %s8215_s5  ;;  %p8220_p8 = scmp.lt.s32.totalorder %s106_s4, %s106_s4 }
  0x55   :  { %p8221_p9 = scmp.lt.s32.totalorder %s8219_s26, %s8215_s5 }
  0x57   :  { %p8222_p10 = por %p8221_p9, %p8220_p8 }
  0x59   :  { %p8223_p11 = pnand %p8222_p10, %p8216_p7 }
  0x5b   :  { %8226 = shalt.err (!%p8223_p11)
}
  0x5c   :  { %108 = dma.hbm_to_vmem [thread:$0]  %s8522_s8, 112, %s106_s4, [#allocation14]  }
  0x5d   :  { %8227 = dma.done.wait [#allocation3], 2048  }
  0x5e   :  { %8228 = vsyncadd [#allocation3], 4294965248 }
  0x5f   :  { %8229 = dma.done.wait [#allocation5], 8224  }
  0x60   :  { %8230 = vsyncadd [#allocation5], 4294959072 }
  0x61   :  { %8231 = dma.done.wait [#allocation8], 32832  }
  0x62   :  { %8232 = vsyncadd [#allocation8], 4294934464 }
  0x63   :  { %8233 = dma.done.wait [#allocation11], 57472  }
  0x64   :  { %8234 = vsyncadd [#allocation11], 4294909824 }
  0x65   :  { %8235 = dma.done.wait [#allocation14], 112  }
  0x66   :  { %8236 = vsyncadd [#allocation14], 4294967184  ;;  %v8253_v0 = vmov 0   ;;  %v7278_v1 = vld [vmem:[#allocation2 + $0x74] ss:$8 sps:$4 sm:$0xff]   ;;  %v7302_v29 = vld [vmem:[%s8514_s0] sm:$0xff]  }
  0x67   :  { %283 = vmatprep.mubr.bf16.mxu0 %v8253_v0  ;;  %v7280_v2 = vld [vmem:[#allocation2 + $0x70] ss:$8 sps:$4 sm:$0xff]   ;;  %251 = vmatprep.subr.bf16.mxu0 %v7278_v1  ;;  %v7281_v3 = vld [vmem:[#allocation2 + $0x64] ss:$8 sps:$4 sm:$0xff]   ;;  %v7283_v4 = vld [vmem:[#allocation2 + $0x60] ss:$8 sps:$4 sm:$0xff]  }
  0x68   :  { %252 = vmatpush1.bf16.msra.mxu0 %v7280_v2  ;;  %v7284_v5 = vld [vmem:[#allocation2 + $0x54] ss:$8 sps:$4 sm:$0xff]   ;;  %v7286_v6 = vld [vmem:[#allocation2 + $0x50] ss:$8 sps:$4 sm:$0xff]   ;;  %v7287_v7 = vld [vmem:[#allocation2 + $0x44] ss:$8 sps:$4 sm:$0xff]  }
  0x69   :  { %253 = vmatprep.subr.bf16.mxu0 %v7281_v3  ;;  %v7289_v8 = vld [vmem:[#allocation2 + $0x40] ss:$8 sps:$4 sm:$0xff]   ;;  %v7290_v9 = vld [vmem:[#allocation2 + $0x34] ss:$8 sps:$4 sm:$0xff]   ;;  %v7292_v11 = vld [vmem:[#allocation2 + $0x30] ss:$8 sps:$4 sm:$0xff]  }
  0x6a   :  { %v7303_v10 = vld [vmem:[#allocation6 + $0xe4] ss:$16 sps:$4 sm:$0xff]   ;;  %v7308_v12 = vld [vmem:[#allocation6 + $0xe0] ss:$16 sps:$4 sm:$0xff]   ;;  %v7307_v26 = vld [vmem:[#allocation6 + $0xec] ss:$16 sps:$4 sm:$0xff]  }
  0x6b   :  { %708 = vmatprep.subr.bf16.mxu1 %v7303_v10  ;;  %v7309_v13 = vld [vmem:[#allocation6 + $0xc4] ss:$16 sps:$4 sm:$0xff]   ;;  %v7314_v15 = vld [vmem:[#allocation6 + $0xc0] ss:$16 sps:$4 sm:$0xff]   ;;  %v7305_v30 = vld [vmem:[#allocation6 + $0xe8] ss:$16 sps:$4 sm:$0xff]  }
  0x6c   :  { %254 = vmatpush1.bf16.msra.mxu0 %v7283_v4  ;;  %v7293_v14 = vld [vmem:[#allocation2 + $0x24] ss:$8 sps:$4 sm:$0xff]   ;;  %709 = vmatpush1.bf16.msra.mxu1 %v7308_v12  ;;  %v7295_v17 = vld [vmem:[#allocation2 + $0x20] ss:$8 sps:$4 sm:$0xff]   ;;  %v7296_v18 = vld [vmem:[#allocation2 + $0x14] ss:$8 sps:$4 sm:$0xff]  }
  0x6d   :  { %255 = vmatprep.subr.bf16.mxu0 %v7284_v5  ;;  %710 = vmatprep.subr.bf16.mxu1 %v7309_v13  ;;  %v7315_v16 = vld [vmem:[#allocation6 + $0xa4] ss:$16 sps:$4 sm:$0xff]   ;;  %v7320_v19 = vld [vmem:[#allocation6 + $0xa0] ss:$16 sps:$4 sm:$0xff]   ;;  %v7313_v31 = vld [vmem:[#allocation6 + $0xcc] ss:$16 sps:$4 sm:$0xff]  }
  0x6e   :  { %v7321_v20 = vld [vmem:[#allocation6 + $0x84] ss:$16 sps:$4 sm:$0xff]   ;;  %v7326_v23 = vld [vmem:[#allocation6 + $0x80] ss:$16 sps:$4 sm:$0xff]   ;;  %v7311_v34 = vld [vmem:[#allocation6 + $0xc8] ss:$16 sps:$4 sm:$0xff]  }
  0x6f   :  { %v7298_v21 = vld [vmem:[#allocation2 + $0x10] ss:$8 sps:$4 sm:$0xff]   ;;  %v7299_v22 = vld [vmem:[#allocation2 + $0x4] ss:$8 sps:$4 sm:$0xff]   ;;  %v7301_v25 = vld [vmem:[#allocation2] ss:$8 sps:$4 sm:$0xff]  }
  0x70   :  { %256 = vmatpush1.bf16.msra.mxu0 %v7286_v6  ;;  %711 = vmatpush1.bf16.msra.mxu1 %v7314_v15  ;;  %v7327_v24 = vld [vmem:[#allocation6 + $0x64] ss:$16 sps:$4 sm:$0xff]   ;;  %v7332_v27 = vld [vmem:[#allocation6 + $0x60] ss:$16 sps:$4 sm:$0xff]   ;;  %v7319_v35 = vld [vmem:[#allocation6 + $0xac] ss:$16 sps:$4 sm:$0xff]  }
  0x71   :  { %257 = vmatprep.subr.bf16.mxu0 %v7287_v7  ;;  %712 = vmatprep.subr.bf16.mxu1 %v7315_v16  ;;  %v7333_v28 = vld [vmem:[#allocation6 + $0x44] ss:$16 sps:$4 sm:$0xff]   ;;  %v7338_v32 = vld [vmem:[#allocation6 + $0x40] ss:$16 sps:$4 sm:$0xff]   ;;  %v7317_v38 = vld [vmem:[#allocation6 + $0xa8] ss:$16 sps:$4 sm:$0xff]  }
  0x72   :  { %v7339_v33 = vld [vmem:[#allocation6 + $0x24] ss:$16 sps:$4 sm:$0xff]   ;;  %v7344_v36 = vld [vmem:[#allocation6 + $0x20] ss:$16 sps:$4 sm:$0xff]   ;;  %v7325_v39 = vld [vmem:[#allocation6 + $0x8c] ss:$16 sps:$4 sm:$0xff]  }
  0x73   :  { %v7345_v37 = vld [vmem:[#allocation6 + $0x4] ss:$16 sps:$4 sm:$0xff]   ;;  %v7350_v40 = vld [vmem:[#allocation6] ss:$16 sps:$4 sm:$0xff]   ;;  %v7323_v42 = vld [vmem:[#allocation6 + $0x88] ss:$16 sps:$4 sm:$0xff]  }
  0x74   :  { %258 = vmatpush1.bf16.msra.mxu0 %v7289_v8  ;;  %713 = vmatpush1.bf16.msra.mxu1 %v7320_v19  ;;  %v7351_v41 = vld [vmem:[#allocation6 + $0x1e4] ss:$16 sps:$4 sm:$0xff]   ;;  %v7331_v43 = vld [vmem:[#allocation6 + $0x6c] ss:$16 sps:$4 sm:$0xff]   ;;  %v7356_v44 = vld [vmem:[#allocation6 + $0x1e0] ss:$16 sps:$4 sm:$0xff]  }
  0x75   :  { %259 = vmatprep.subr.bf16.mxu0 %v7290_v9  ;;  %714 = vmatprep.subr.bf16.mxu1 %v7321_v20  ;;  %v7329_v45 = vld [vmem:[#allocation6 + $0x68] ss:$16 sps:$4 sm:$0xff]   ;;  %v7357_v46 = vld [vmem:[#allocation6 + $0x1c4] ss:$16 sps:$4 sm:$0xff]   ;;  %v7337_v47 = vld [vmem:[#allocation6 + $0x4c] ss:$16 sps:$4 sm:$0xff]  }
  0x76   :  { %v7362_v48 = vld [vmem:[#allocation6 + $0x1c0] ss:$16 sps:$4 sm:$0xff]   ;;  %v7363_v49 = vld [vmem:[#allocation6 + $0x1a4] ss:$16 sps:$4 sm:$0xff]   ;;  %v7335_v50 = vld [vmem:[#allocation6 + $0x48] ss:$16 sps:$4 sm:$0xff]  }
  0x77   :  { %v7343_v51 = vld [vmem:[#allocation6 + $0x2c] ss:$16 sps:$4 sm:$0xff]   ;;  %v7368_v52 = vld [vmem:[#allocation6 + $0x1a0] ss:$16 sps:$4 sm:$0xff]   ;;  %v7369_v53 = vld [vmem:[#allocation6 + $0x184] ss:$16 sps:$4 sm:$0xff]  }
  0x78   :  { %260 = vmatpush1.bf16.msra.mxu0 %v7292_v11  ;;  %715 = vmatpush1.bf16.msra.mxu1 %v7326_v23  ;;  %v7341_v54 = vld [vmem:[#allocation6 + $0x28] ss:$16 sps:$4 sm:$0xff]   ;;  %v7349_v55 = vld [vmem:[#allocation6 + $0xc] ss:$16 sps:$4 sm:$0xff]   ;;  %v7374_v56 = vld [vmem:[#allocation6 + $0x180] ss:$16 sps:$4 sm:$0xff]  }
  0x79   :  { %261 = vmatprep.subr.bf16.mxu0 %v7293_v14  ;;  %716 = vmatprep.subr.bf16.mxu1 %v7327_v24  ;;  %v7375_v57 = vld [vmem:[#allocation6 + $0x164] ss:$16 sps:$4 sm:$0xff]   ;;  %v7347_v58 = vld [vmem:[#allocation6 + $0x8] ss:$16 sps:$4 sm:$0xff]   ;;  %v7355_v59 = vld [vmem:[#allocation6 + $0x1ec] ss:$16 sps:$4 sm:$0xff]  }
  0x7a   :  { %v7353_v60 = vld [vmem:[#allocation6 + $0x1e8] ss:$16 sps:$4 sm:$0xff]   ;;  %v7361_v61 = vld [vmem:[#allocation6 + $0x1cc] ss:$16 sps:$4 sm:$0xff]   ;;  %v7380_v5 = vld [vmem:[#allocation6 + $0x160] ss:$16 sps:$4 sm:$0xff]  }
  0x7b   :  { %v7359_v62 = vld [vmem:[#allocation6 + $0x1c8] ss:$16 sps:$4 sm:$0xff]   ;;  %v7367_v63 = vld [vmem:[#allocation6 + $0x1ac] ss:$16 sps:$4 sm:$0xff]   ;;  %v7381_v6 = vld [vmem:[#allocation6 + $0x144] ss:$16 sps:$4 sm:$0xff]  }
  0x7c   :  { %262 = vmatpush1.bf16.msra.mxu0 %v7295_v17  ;;  %717 = vmatpush1.bf16.msra.mxu1 %v7332_v27  ;;  %v7365_v0 = vld [vmem:[#allocation6 + $0x1a8] ss:$16 sps:$4 sm:$0xff]   ;;  %v7373_v1 = vld [vmem:[#allocation6 + $0x18c] ss:$16 sps:$4 sm:$0xff]   ;;  %v7386_v9 = vld [vmem:[#allocation6 + $0x140] ss:$16 sps:$4 sm:$0xff]  }
  0x7d   :  { %263 = vmatprep.subr.bf16.mxu0 %v7296_v18  ;;  %718 = vmatprep.subr.bf16.mxu1 %v7333_v28  ;;  %v7371_v2 = vld [vmem:[#allocation6 + $0x188] ss:$16 sps:$4 sm:$0xff]   ;;  %v7379_v3 = vld [vmem:[#allocation6 + $0x16c] ss:$16 sps:$4 sm:$0xff]   ;;  %v7387_v10 = vld [vmem:[#allocation6 + $0x124] ss:$16 sps:$4 sm:$0xff]  }
  0x7e   :  { %v7377_v4 = vld [vmem:[#allocation6 + $0x168] ss:$16 sps:$4 sm:$0xff]   ;;  %v7385_v7 = vld [vmem:[#allocation6 + $0x14c] ss:$16 sps:$4 sm:$0xff]   ;;  %v7392_v13 = vld [vmem:[#allocation6 + $0x120] ss:$16 sps:$4 sm:$0xff]  }
  0x7f   :  { %v7383_v8 = vld [vmem:[#allocation6 + $0x148] ss:$16 sps:$4 sm:$0xff]   ;;  %v7391_v11 = vld [vmem:[#allocation6 + $0x12c] ss:$16 sps:$4 sm:$0xff]   ;;  %v7393_v14 = vld [vmem:[#allocation6 + $0x104] ss:$16 sps:$4 sm:$0xff]  }
  0x80   :  { %264 = vmatpush1.bf16.msra.mxu0 %v7298_v21  ;;  %719 = vmatpush1.bf16.msra.mxu1 %v7338_v32  ;;  %v7389_v12 = vld [vmem:[#allocation6 + $0x128] ss:$16 sps:$4 sm:$0xff]   ;;  %v7397_v16 = vld [vmem:[#allocation6 + $0x10c] ss:$16 sps:$4 sm:$0xff]   ;;  %v7398_v17 = vld [vmem:[#allocation6 + $0x100] ss:$16 sps:$4 sm:$0xff]  }
  0x81   :  { %265 = vmatprep.subr.bf16.mxu0 %v7299_v22  ;;  %720 = vmatprep.subr.bf16.mxu1 %v7339_v33  ;;  %v7395_v15 = vld [vmem:[#allocation6 + $0x108] ss:$16 sps:$4 sm:$0xff]  }
  0x82   :  { %v866_v18 = vld [vmem:[#allocation9 + $0x1c0] sm:$0xff] }
  0x83   :  { %v870_v19 = vld [vmem:[#allocation9 + $0x1e0] sm:$0xff] }
  0x84   :  { %266 = vmatpush1.bf16.msra.mxu0 %v7301_v25  ;;  %721 = vmatpush1.bf16.msra.mxu1 %v7344_v36  ;;  %v994_v20 = vld [vmem:[#allocation9 + $0x5c0] sm:$0xff]  ;;  %v6509_v21 = vcombine.low %v866_v18, %v870_v19  ;;  %v6510_v22 = vcombine.high %v866_v18, %v870_v19 }
  0x85   :  { %751 = vmatprep.subr.bf16.mxu0 %v7307_v26  ;;  %722 = vmatprep.subr.bf16.mxu1 %v7345_v37  ;;  %v998_v23 = vld [vmem:[#allocation9 + $0x5e0] sm:$0xff]  ;;  %v155_v26 = vlaneseq }
  0x86   :  { %v6637_v24 = vcombine.low %v994_v20, %v998_v23  ;;  %v6638_v25 = vcombine.high %v994_v20, %v998_v23  ;;  %v946_v23 = vld [vmem:[#allocation9 + $0x440] sm:$0xff] }
  0x87   :  { %284 = vmatmul.mubr.bf16.vlgmr.msra.gmra.mxu0 %v7302_v29  ;;  %v8331_v27 = vshrl.u32 %v155_v26, 7 }
  0x88   :  { %752 = vmatpush1.bf16.msra.mxu0 %v7305_v30  ;;  %723 = vmatpush1.bf16.msra.mxu1 %v7350_v40  ;;  %v153_v30 = vld [vmem:[#allocation4] sm:$0x3] }
  0x89   :  { %753 = vmatprep.subr.bf16.mxu0 %v7313_v31  ;;  %724 = vmatprep.subr.bf16.mxu1 %v7351_v41  ;;  %v8334_v28 = vsub.s32 0, %v8331_v27  ;;  %v8337_v29 = vsub.s32 1, %v8331_v27 }
  0x8b   :  { %v158_v32 = vrot.slane %v153_v30, %v8334_v28 }
  0x8c   :  { %754 = vmatpush1.bf16.msra.mxu0 %v7311_v34  ;;  %725 = vmatpush2.bf16.msra.mxu1 %v7356_v44  ;;  %v162_v34 = vrot.slane %v153_v30, %v8337_v29 }
  0x8d   :  { %755 = vmatprep.subr.bf16.mxu0 %v7319_v35  ;;  %726 = vmatprep.subr.bf16.mxu1 %v7357_v46  ;;  %v986_v46 = vld [vmem:[#allocation9 + $0x580] sm:$0xff] }
  0x90   :  { %756 = vmatpush1.bf16.msra.mxu0 %v7317_v38  ;;  %727 = vmatpush2.bf16.msra.mxu1 %v7362_v48 }
  0x91   :  { %757 = vmatprep.subr.bf16.mxu0 %v7325_v39  ;;  %728 = vmatprep.subr.bf16.mxu1 %v7363_v49  ;;  %v850_v49 = vld [vmem:[#allocation9 + $0x140] sm:$0xff] }
  0x94   :  { %758 = vmatpush1.bf16.msra.mxu0 %v7323_v42  ;;  %729 = vmatpush2.bf16.msra.mxu1 %v7368_v52  ;;  %v858_v42 = vld [vmem:[#allocation9 + $0x180] sm:$0xff] }
  0x95   :  { %759 = vmatprep.subr.bf16.mxu0 %v7331_v43  ;;  %730 = vmatprep.subr.bf16.mxu1 %v7369_v53  ;;  %v862_v43 = vld [vmem:[#allocation9 + $0x1a0] sm:$0xff] }
  0x96   :  { %v982_v52 = vld [vmem:[#allocation9 + $0x560] sm:$0xff] }
  0x98   :  { %760 = vmatpush1.bf16.msra.mxu0 %v7329_v45  ;;  %731 = vmatpush2.bf16.msra.mxu1 %v7374_v56 }
  0x99   :  { %761 = vmatprep.subr.bf16.mxu0 %v7337_v47  ;;  %732 = vmatprep.subr.bf16.mxu1 %v7375_v57  ;;  %v990_v47 = vld [vmem:[#allocation9 + $0x5a0] sm:$0xff]  ;;  %v6501_v57 = vcombine.low %v858_v42, %v862_v43 }
  0x9c   :  { %762 = vmatpush1.bf16.msra.mxu0 %v7335_v50  ;;  %733 = vmatpush2.bf16.msra.mxu1 %v7380_v5  ;;  %v854_v50 = vld [vmem:[#allocation9 + $0x160] sm:$0xff] }
  0x9d   :  { %763 = vmatprep.subr.bf16.mxu0 %v7343_v51  ;;  %734 = vmatprep.subr.bf16.mxu1 %v7381_v6  ;;  %v978_v51 = vld [vmem:[#allocation9 + $0x540] sm:$0xff] }
  0x9e   :  { %v834_v5 = vld [vmem:[#allocation9 + $0xc0] sm:$0xff] }
  0x9f   :  { %v838_v6 = vld [vmem:[#allocation9 + $0xe0] sm:$0xff] }
  0xa0   :  { %764 = vmatpush1.bf16.msra.mxu0 %v7341_v54  ;;  %735 = vmatpush2.bf16.msra.mxu1 %v7386_v9  ;;  %v6502_v54 = vcombine.high %v858_v42, %v862_v43  ;;  %v1058_v42 = vld [vmem:[#allocation9 + $0x7c0] sm:$0xff] }
  0xa1   :  { %765 = vmatprep.subr.bf16.mxu0 %v7349_v55  ;;  %736 = vmatprep.subr.bf16.mxu1 %v7387_v10  ;;  %v6630_v55 = vcombine.high %v986_v46, %v990_v47  ;;  %v1062_v43 = vld [vmem:[#allocation9 + $0x7e0] sm:$0xff] }
  0xa4   :  { %766 = vmatpush1.bf16.msra.mxu0 %v7347_v58  ;;  %737 = vmatpush2.bf16.msra.mxu1 %v7392_v13  ;;  %v6629_v58 = vcombine.low %v986_v46, %v990_v47  ;;  %v826_v13 = vld [vmem:[#allocation9 + $0x80] sm:$0xff]  ;;  %v6702_v47 = vcombine.high %v1058_v42, %v1062_v43 }
  0xa5   :  { %767 = vmatprep.subr.bf16.mxu0 %v7355_v59  ;;  %738 = vmatprep.subr.bf16.mxu1 %v7393_v14  ;;  %v842_v59 = vld [vmem:[#allocation9 + $0x100] sm:$0xff] }
  0xa6   :  { %v830_v14 = vld [vmem:[#allocation9 + $0xa0] sm:$0xff] }
  0xa7   :  { %v6470_v19 = vcombine.high %v826_v13, %v830_v14 }
  0xa8   :  { %768 = vmatpush2.bf16.msra.mxu0 %v7353_v60  ;;  %739 = vmatpush2.bf16.msra.mxu1 %v7398_v17  ;;  %v846_v60 = vld [vmem:[#allocation9 + $0x120] sm:$0xff]  ;;  %v6477_v17 = vcombine.low %v834_v5, %v838_v6 }
  0xa9   :  { %769 = vmatprep.subr.bf16.mxu0 %v7361_v61  ;;  %2388 = vmatprep.subr.bf16.mxu1 %v6510_v22  ;;  %v6494_v61 = vcombine.high %v850_v49, %v854_v50  ;;  %v6485_v9 = vcombine.low %v842_v59, %v846_v60  ;;  %v822_v22 = vld [vmem:[#allocation9 + $0x60] sm:$0xff] }
  0xac   :  { %770 = vmatpush2.bf16.msra.mxu0 %v7359_v62  ;;  %v6622_v62 = vcombine.high %v978_v51, %v982_v52 }
  0xad   :  { %771 = vmatprep.subr.bf16.mxu0 %v7367_v63  ;;  %v970_v63 = vld [vmem:[#allocation9 + $0x500] sm:$0xff] }
  0xb0   :  { %772 = vmatpush2.bf16.msra.mxu0 %v7365_v0  ;;  %v974_v0 = vld [vmem:[#allocation9 + $0x520] sm:$0xff] }
  0xb1   :  { %773 = vmatprep.subr.bf16.mxu0 %v7373_v1  ;;  %v6493_v1 = vcombine.low %v850_v49, %v854_v50  ;;  %v6613_v10 = vcombine.low %v970_v63, %v974_v0  ;;  %v926_v49 = vld [vmem:[#allocation9 + $0x3a0] sm:$0xff] }
  0xb2   :  { %v1050_v50 = vld [vmem:[#allocation9 + $0x780] sm:$0xff] }
  0xb4   :  { %774 = vmatpush2.bf16.msra.mxu0 %v7371_v2  ;;  %v6621_v2 = vcombine.low %v978_v51, %v982_v52  ;;  %v1054_v51 = vld [vmem:[#allocation9 + $0x7a0] sm:$0xff] }
  0xb5   :  { %775 = vmatprep.subr.bf16.mxu0 %v7379_v3  ;;  %v6486_v3 = vcombine.high %v842_v59, %v846_v60  ;;  %v1046_v59 = vld [vmem:[#allocation9 + $0x760] sm:$0xff] }
  0xb8   :  { %776 = vmatpush2.bf16.msra.mxu0 %v7377_v4  ;;  %v6614_v4 = vcombine.high %v970_v63, %v974_v0  ;;  %v906_v0 = vld [vmem:[#allocation9 + $0x300] sm:$0xff] }
  0xb9   :  { %777 = vmatprep.subr.bf16.mxu0 %v7385_v7  ;;  %v962_v7 = vld [vmem:[#allocation9 + $0x4c0] sm:$0xff] }
  0xbc   :  { %778 = vmatpush2.bf16.msra.mxu0 %v7383_v8  ;;  %v966_v8 = vld [vmem:[#allocation9 + $0x4e0] sm:$0xff] }
  0xbd   :  { %779 = vmatprep.subr.bf16.mxu0 %v7391_v11  ;;  %v6478_v11 = vcombine.high %v834_v5, %v838_v6  ;;  %v6605_v18 = vcombine.low %v962_v7, %v966_v8 }
  0xc0   :  { %780 = vmatpush2.bf16.msra.mxu0 %v7389_v12  ;;  %v6606_v12 = vcombine.high %v962_v7, %v966_v8  ;;  %v898_v8 = vld [vmem:[#allocation9 + $0x2c0] sm:$0xff] }
  0xc1   :  { %781 = vmatprep.subr.bf16.mxu0 %v7397_v16  ;;  %v958_v16 = vld [vmem:[#allocation9 + $0x4a0] sm:$0xff] }
  0xc4   :  { %782 = vmatpush2.bf16.msra.mxu0 %v7395_v15  ;;  %v954_v15 = vld [vmem:[#allocation9 + $0x480] sm:$0xff] }
  0xc5   :  { %2431 = vmatprep.subr.bf16.mxu0 %v6638_v25  ;;  %v6598_v20 = vcombine.high %v954_v15, %v958_v16  ;;  %v6469_v25 = vcombine.low %v826_v13, %v830_v14  ;;  %v6597_v26 = vcombine.low %v954_v15, %v958_v16 }
 0x147   :  { %v285_v31 = vpop.f32.mrf.mxu0 }
 0x148   :  { %v286_v36 = vadd.f32 %v285_v31, %v158_v32 }
 0x149   :  { %v287_v33 = vpop.f32.mrf.mxu0 }
 0x14a   :  { %v288_v39 = vadd.f32 %v287_v33, %v162_v34  ;;  %v814_v33 = vld [vmem:[#allocation9 + $0x20] sm:$0xff] }
 0x14b   :  { %v289_v35 = vpop.f32.mrf.mxu0 }
 0x14c   :  { %v290_v37 = vadd.f32 %v289_v35, %v158_v32  ;;  %v810_v32 = vld [vmem:[#allocation9] sm:$0xff] }
 0x14d   :  { %v291_v38 = vpop.f32.mrf.mxu0  ;;  %v942_v35 = vld [vmem:[#allocation9 + $0x420] sm:$0xff] }
 0x14e   :  { %v294_v40 = vpack.c.bf16 %v290_v37, %v286_v36  ;;  %v292_v41 = vadd.f32 %v291_v38, %v162_v34  ;;  %v938_v34 = vld [vmem:[#allocation9 + $0x400] sm:$0xff]  ;;  %v6454_v38 = vcombine.high %v810_v32, %v814_v33 }
 0x150   :  { %v295_v44 = vpack.c.bf16 %v292_v41, %v288_v39  ;;  %v298_v45 = vmul.bf16 1045249613, %v294_v40  ;;  %vm296_vm1 = vcmp.ge.bf16.partialorder %v294_v40, 0  ;;  %v6582_v39 = vcombine.high %v938_v34, %v942_v35  ;;  %v934_v41 = vld [vmem:[#allocation9 + $0x3e0] sm:$0xff] }
 0x152   :  { %vm297_vm0 = vcmp.ge.bf16.partialorder %v295_v44, 0  ;;  %v299_v48 = vmul.bf16 1045249613, %v295_v44  ;;  %v300_v56 = vsel %vm296_vm1, %v294_v40, %v298_v45  ;;  %v930_v40 = vld [vmem:[#allocation9 + $0x3c0] sm:$0xff]  ;;  %v6581_v45 = vcombine.low %v938_v34, %v942_v35 }
 0x153   :  { %v6574_v46 = vcombine.high %v930_v40, %v934_v41  ;;  %v6573_v52 = vcombine.low %v930_v40, %v934_v41  ;;  %v1006_v41 = vld [vmem:[#allocation9 + $0x620] sm:$0xff] }
 0x154   :  { %v301_v53 = vsel %vm297_vm0, %v295_v44, %v299_v48  ;;  %v6453_v44 = vcombine.low %v810_v32, %v814_v33  ;;  %v922_v48 = vld [vmem:[#allocation9 + $0x380] sm:$0xff] }
 0x155   :  { %740 = vmatprep.mubr.bf16.mxu1 %v301_v53  ;;  %783 = vmatprep.mubr.bf16.mxu0 %v301_v53  ;;  %v6701_v53 = vcombine.low %v1058_v42, %v1062_v43  ;;  %v6565_v60 = vcombine.low %v922_v48, %v926_v49  ;;  %v1014_v33 = vld [vmem:[#allocation9 + $0x660] sm:$0xff] }
 0x156   :  { %741 = vmatmul.mubr.bf16.vlgmr.msra.gmra.mxu1 %v300_v56  ;;  %784 = vmatmul.mubr.bf16.vlgmr.msra.gmra.mxu0 %v300_v56  ;;  %v914_v56 = vld [vmem:[#allocation9 + $0x340] sm:$0xff] }
 0x157   :  { %2389 = vmatpush1.bf16.msra.mxu1 %v6509_v21  ;;  %2432 = vmatpush1.bf16.msra.mxu0 %v6637_v24  ;;  %v818_v21 = vld [vmem:[#allocation9 + $0x40] sm:$0xff] }
 0x158   :  { %2390 = vmatprep.subr.bf16.mxu1 %v6502_v54  ;;  %2433 = vmatprep.subr.bf16.mxu0 %v6630_v55  ;;  %v950_v24 = vld [vmem:[#allocation9 + $0x460] sm:$0xff]  ;;  %v6462_v30 = vcombine.high %v818_v21, %v822_v22  ;;  %v6461_v36 = vcombine.low %v818_v21, %v822_v22  ;;  %v6566_v54 = vcombine.high %v922_v48, %v926_v49  ;;  %v999_v49 = vld [vmem:[#allocation9 + $0x5e8] sm:$0xff] }
 0x159   :  { %v6590_v31 = vcombine.high %v946_v23, %v950_v24  ;;  %v6589_v37 = vcombine.low %v946_v23, %v950_v24  ;;  %v6694_v55 = vcombine.high %v1050_v50, %v1054_v51  ;;  %v1022_v22 = vld [vmem:[#allocation9 + $0x6a0] sm:$0xff] }
 0x15b   :  { %2391 = vmatpush1.bf16.msra.mxu1 %v6501_v57  ;;  %2434 = vmatpush1.bf16.msra.mxu0 %v6629_v58  ;;  %v918_v57 = vld [vmem:[#allocation9 + $0x360] sm:$0xff] }
 0x15c   :  { %2392 = vmatprep.subr.bf16.mxu1 %v6494_v61  ;;  %2435 = vmatprep.subr.bf16.mxu0 %v6622_v62  ;;  %v1042_v58 = vld [vmem:[#allocation9 + $0x740] sm:$0xff]  ;;  %v6693_v61 = vcombine.low %v1050_v50, %v1054_v51  ;;  %v6558_v62 = vcombine.high %v914_v56, %v918_v57 }
 0x15d   :  { %v6686_v63 = vcombine.high %v1042_v58, %v1046_v59  ;;  %v6685_v5 = vcombine.low %v1042_v58, %v1046_v59 }
 0x15f   :  { %2393 = vmatpush1.bf16.msra.mxu1 %v6493_v1  ;;  %2436 = vmatpush1.bf16.msra.mxu0 %v6621_v2  ;;  %v910_v1 = vld [vmem:[#allocation9 + $0x320] sm:$0xff] }
 0x160   :  { %2394 = vmatprep.subr.bf16.mxu1 %v6486_v3  ;;  %2437 = vmatprep.subr.bf16.mxu0 %v6614_v4  ;;  %v1034_v2 = vld [vmem:[#allocation9 + $0x700] sm:$0xff]  ;;  %v6557_v4 = vcombine.low %v914_v56, %v918_v57  ;;  %v6550_v6 = vcombine.high %v906_v0, %v910_v1 }
 0x161   :  { %v1038_v3 = vld [vmem:[#allocation9 + $0x720] sm:$0xff] }
 0x162   :  { %v6678_v7 = vcombine.high %v1034_v2, %v1038_v3  ;;  %v6677_v13 = vcombine.low %v1034_v2, %v1038_v3 }
 0x163   :  { %2395 = vmatpush1.bf16.msra.mxu1 %v6485_v9  ;;  %2438 = vmatpush1.bf16.msra.mxu0 %v6613_v10  ;;  %v902_v9 = vld [vmem:[#allocation9 + $0x2e0] sm:$0xff] }
 0x164   :  { %2396 = vmatprep.subr.bf16.mxu1 %v6478_v11  ;;  %2439 = vmatprep.subr.bf16.mxu0 %v6606_v12  ;;  %v1026_v10 = vld [vmem:[#allocation9 + $0x6c0] sm:$0xff]  ;;  %v6549_v12 = vcombine.low %v906_v0, %v910_v1  ;;  %v6542_v14 = vcombine.high %v898_v8, %v902_v9  ;;  %v6541_v16 = vcombine.low %v898_v8, %v902_v9 }
 0x165   :  { %v1030_v11 = vld [vmem:[#allocation9 + $0x6e0] sm:$0xff] }
 0x166   :  { %v6670_v15 = vcombine.high %v1026_v10, %v1030_v11 }
 0x167   :  { %2397 = vmatpush1.bf16.msra.mxu1 %v6477_v17  ;;  %2440 = vmatpush1.bf16.msra.mxu0 %v6605_v18  ;;  %v6669_v17 = vcombine.low %v1026_v10, %v1030_v11  ;;  %v890_v18 = vld [vmem:[#allocation9 + $0x280] sm:$0xff] }
 0x168   :  { %2398 = vmatprep.subr.bf16.mxu1 %v6470_v19  ;;  %2441 = vmatprep.subr.bf16.mxu0 %v6598_v20  ;;  %v894_v19 = vld [vmem:[#allocation9 + $0x2a0] sm:$0xff] }
 0x169   :  { %v1018_v20 = vld [vmem:[#allocation9 + $0x680] sm:$0xff]  ;;  %v6534_v21 = vcombine.high %v890_v18, %v894_v19  ;;  %v6533_v23 = vcombine.low %v890_v18, %v894_v19  ;;  %v987_v18 = vld [vmem:[#allocation9 + $0x588] sm:$0xff] }
 0x16a   :  { %v6661_v24 = vcombine.low %v1018_v20, %v1022_v22  ;;  %v991_v19 = vld [vmem:[#allocation9 + $0x5a8] sm:$0xff] }
 0x16b   :  { %2399 = vmatpush1.bf16.msra.mxu1 %v6469_v25  ;;  %2442 = vmatpush1.bf16.msra.mxu0 %v6597_v26  ;;  %v6662_v25 = vcombine.high %v1018_v20, %v1022_v22  ;;  %v882_v26 = vld [vmem:[#allocation9 + $0x240] sm:$0xff] }
 0x16c   :  { %2400 = vmatprep.subr.bf16.mxu1 %v6462_v30  ;;  %2443 = vmatprep.subr.bf16.mxu0 %v6590_v31  ;;  %v886_v30 = vld [vmem:[#allocation9 + $0x260] sm:$0xff] }
 0x16d   :  { %v1010_v31 = vld [vmem:[#allocation9 + $0x640] sm:$0xff]  ;;  %v6526_v32 = vcombine.high %v882_v26, %v886_v30  ;;  %v6525_v34 = vcombine.low %v882_v26, %v886_v30  ;;  %v851_v30 = vld [vmem:[#allocation9 + $0x148] sm:$0xff] }
 0x16e   :  { %v6653_v35 = vcombine.low %v1010_v31, %v1014_v33 }
 0x16f   :  { %2401 = vmatpush1.bf16.msra.mxu1 %v6461_v36  ;;  %2444 = vmatpush1.bf16.msra.mxu0 %v6589_v37  ;;  %v6654_v36 = vcombine.high %v1010_v31, %v1014_v33  ;;  %v874_v37 = vld [vmem:[#allocation9 + $0x200] sm:$0xff]  ;;  %v6632_v33 = vcombine.high %v987_v18, %v991_v19 }
 0x170   :  { %2402 = vmatprep.subr.bf16.mxu1 %v6454_v38  ;;  %2445 = vmatprep.subr.bf16.mxu0 %v6582_v39  ;;  %v878_v38 = vld [vmem:[#allocation9 + $0x220] sm:$0xff] }
 0x171   :  { %v1002_v39 = vld [vmem:[#allocation9 + $0x600] sm:$0xff]  ;;  %v6518_v40 = vcombine.high %v874_v37, %v878_v38  ;;  %v6517_v42 = vcombine.low %v874_v37, %v878_v38  ;;  %v6631_v38 = vcombine.low %v987_v18, %v991_v19  ;;  %v931_v19 = vld [vmem:[#allocation9 + $0x3c8] sm:$0xff] }
 0x172   :  { %v6645_v43 = vcombine.low %v1002_v39, %v1006_v41 }
 0x173   :  { %2403 = vmatpush1.bf16.msra.mxu1 %v6453_v44  ;;  %2446 = vmatpush1.bf16.msra.mxu0 %v6581_v45  ;;  %v6646_v44 = vcombine.high %v1002_v39, %v1006_v41  ;;  %v8341_v45 = vld [vmem:[#allocation9 + $0x1c8] sm:$0xff] }
 0x174   :  { %2404 = vmatprep.subr.bf16.mxu1 %v6574_v46  ;;  %2447 = vmatprep.subr.bf16.mxu0 %v6702_v47  ;;  %v8343_v46 = vld [vmem:[#allocation9 + $0x1e8] sm:$0xff] }
 0x175   :  { %v8345_v47 = vld [vmem:[#allocation9 + $0x5c8] sm:$0xff]  ;;  %v6512_v48 = vcombine.high %v8341_v45, %v8343_v46  ;;  %v6511_v50 = vcombine.low %v8341_v45, %v8343_v46 }
 0x176   :  { %v6639_v51 = vcombine.low %v8345_v47, %v999_v49  ;;  %v843_v41 = vld [vmem:[#allocation9 + $0x108] sm:$0xff] }
 0x177   :  { %2405 = vmatpush2.bf16.msra.mxu1 %v6573_v52  ;;  %2448 = vmatpush2.bf16.msra.mxu0 %v6701_v53  ;;  %v6640_v52 = vcombine.high %v8345_v47, %v999_v49  ;;  %v8354_v53 = vsub.s32 2, %v8331_v27  ;;  %v835_v49 = vld [vmem:[#allocation9 + $0xc8] sm:$0xff] }
 0x178   :  { %2406 = vmatprep.subr.bf16.mxu1 %v6566_v54  ;;  %2449 = vmatprep.subr.bf16.mxu0 %v6694_v55  ;;  %v366_v54 = vld [vmem:[#allocation7] sm:$0xf]  ;;  %v8357_v55 = vsub.s32 3, %v8331_v27 }
 0x179   :  { %v371_v58 = vrot.slane %v366_v54, %v8334_v28  ;;  %v379_v59 = vrot.slane %v366_v54, %v8354_v53 }
 0x17b   :  { %2407 = vmatpush2.bf16.msra.mxu1 %v6565_v60  ;;  %2450 = vmatpush2.bf16.msra.mxu0 %v6693_v61  ;;  %v375_v60 = vrot.slane %v366_v54, %v8337_v29 }
 0x17c   :  { %2408 = vmatprep.subr.bf16.mxu1 %v6558_v62  ;;  %2451 = vmatprep.subr.bf16.mxu0 %v6686_v63  ;;  %v383_v62 = vrot.slane %v366_v54, %v8357_v55 }
 0x17f   :  { %2409 = vmatpush2.bf16.msra.mxu1 %v6557_v4  ;;  %2452 = vmatpush2.bf16.msra.mxu0 %v6685_v5 }
 0x180   :  { %2410 = vmatprep.subr.bf16.mxu1 %v6550_v6  ;;  %2453 = vmatprep.subr.bf16.mxu0 %v6678_v7 }
 0x183   :  { %2411 = vmatpush2.bf16.msra.mxu1 %v6549_v12  ;;  %2454 = vmatpush2.bf16.msra.mxu0 %v6677_v13 }
 0x184   :  { %2412 = vmatprep.subr.bf16.mxu1 %v6542_v14  ;;  %2455 = vmatprep.subr.bf16.mxu0 %v6670_v15  ;;  %v859_v14 = vld [vmem:[#allocation9 + $0x188] sm:$0xff] }
 0x187   :  { %2413 = vmatpush2.bf16.msra.mxu1 %v6541_v16  ;;  %2456 = vmatpush2.bf16.msra.mxu0 %v6669_v17  ;;  %v863_v17 = vld [vmem:[#allocation9 + $0x1a8] sm:$0xff] }
 0x188   :  { %2414 = vmatprep.subr.bf16.mxu1 %v6534_v21  ;;  %2457 = vmatprep.subr.bf16.mxu0 %v6662_v25  ;;  %v6504_v26 = vcombine.high %v859_v14, %v863_v17  ;;  %v6503_v37 = vcombine.low %v859_v14, %v863_v17  ;;  %v943_v14 = vld [vmem:[#allocation9 + $0x428] sm:$0xff] }
 0x18b   :  { %2415 = vmatpush2.bf16.msra.mxu1 %v6533_v23  ;;  %2458 = vmatpush2.bf16.msra.mxu0 %v6661_v24 }
 0x18c   :  { %2416 = vmatprep.subr.bf16.mxu1 %v6526_v32  ;;  %2459 = vmatprep.subr.bf16.mxu0 %v6654_v36  ;;  %v983_v36 = vld [vmem:[#allocation9 + $0x568] sm:$0xff] }
 0x18f   :  { %2417 = vmatpush2.bf16.msra.mxu1 %v6525_v34  ;;  %2460 = vmatpush2.bf16.msra.mxu0 %v6653_v35  ;;  %v855_v34 = vld [vmem:[#allocation9 + $0x168] sm:$0xff] }
 0x190   :  { %2418 = vmatprep.subr.bf16.mxu1 %v6518_v40  ;;  %2461 = vmatprep.subr.bf16.mxu0 %v6646_v44  ;;  %v979_v35 = vld [vmem:[#allocation9 + $0x548] sm:$0xff]  ;;  %v6496_v39 = vcombine.high %v851_v30, %v855_v34  ;;  %v6495_v45 = vcombine.low %v851_v30, %v855_v34 }
 0x191   :  { %v6624_v40 = vcombine.high %v979_v35, %v983_v36  ;;  %v975_v44 = vld [vmem:[#allocation9 + $0x528] sm:$0xff]  ;;  %v6623_v46 = vcombine.low %v979_v35, %v983_v36 }
 0x192   :  { %v923_v34 = vld [vmem:[#allocation9 + $0x388] sm:$0xff] }
 0x193   :  { %2419 = vmatpush2.bf16.msra.mxu1 %v6517_v42  ;;  %2462 = vmatpush2.bf16.msra.mxu0 %v6645_v43  ;;  %v847_v42 = vld [vmem:[#allocation9 + $0x128] sm:$0xff] }
 0x194   :  { %2474 = vmatprep.subr.bf16.mxu1 %v6512_v48  ;;  %2517 = vmatprep.subr.bf16.mxu0 %v6640_v52  ;;  %v971_v43 = vld [vmem:[#allocation9 + $0x508] sm:$0xff]  ;;  %v6488_v47 = vcombine.high %v843_v41, %v847_v42  ;;  %v6487_v54 = vcombine.low %v843_v41, %v847_v42 }
 0x195   :  { %v6616_v48 = vcombine.high %v971_v43, %v975_v44  ;;  %v967_v52 = vld [vmem:[#allocation9 + $0x4e8] sm:$0xff] }
 0x196   :  { %v927_v35 = vld [vmem:[#allocation9 + $0x3a8] sm:$0xff] }
 0x197   :  { %v1051_v36 = vld [vmem:[#allocation9 + $0x788] sm:$0xff] }
 0x198   :  { %v915_v42 = vld [vmem:[#allocation9 + $0x348] sm:$0xff] }
 0x216   :  { %v742_v56 = vpop.f32.mrf.mxu1  ;;  %v785_v57 = vpop.f32.mrf.mxu0 }
 0x217   :  { %v743_v2 = vadd.f32 %v742_v56, %v371_v58  ;;  %v786_v3 = vadd.f32 %v785_v57, %v379_v59  ;;  %v6615_v56 = vcombine.low %v971_v43, %v975_v44  ;;  %v919_v43 = vld [vmem:[#allocation9 + $0x368] sm:$0xff] }
 0x218   :  { %v744_v61 = vpop.f32.mrf.mxu1  ;;  %v787_v63 = vpop.f32.mrf.mxu0  ;;  %v1043_v44 = vld [vmem:[#allocation9 + $0x748] sm:$0xff] }
 0x219   :  { %v745_v6 = vadd.f32 %v744_v61, %v375_v60  ;;  %v788_v7 = vadd.f32 %v787_v63, %v383_v62  ;;  %v955_v61 = vld [vmem:[#allocation9 + $0x488] sm:$0xff] }
 0x21a   :  { %v746_v0 = vpop.f32.mrf.mxu1  ;;  %v789_v1 = vpop.f32.mrf.mxu0 }
 0x21b   :  { %v747_v4 = vadd.f32 %v746_v0, %v371_v58  ;;  %v790_v5 = vadd.f32 %v789_v1, %v379_v59  ;;  %v827_v59 = vld [vmem:[#allocation9 + $0x88] sm:$0xff] }
 0x21c   :  { %v748_v8 = vpop.f32.mrf.mxu1  ;;  %v791_v9 = vpop.f32.mrf.mxu0 }
 0x21d   :  { %v794_v10 = vpack.c.bf16 %v747_v4, %v743_v2  ;;  %v796_v11 = vpack.c.bf16 %v790_v5, %v786_v3  ;;  %v749_v12 = vadd.f32 %v748_v8, %v375_v60  ;;  %v792_v13 = vadd.f32 %v791_v9, %v383_v62  ;;  %v831_v60 = vld [vmem:[#allocation9 + $0xa8] sm:$0xff] }
 0x21e   :  { %v959_v62 = vld [vmem:[#allocation9 + $0x4a8] sm:$0xff]  ;;  %v6472_v1 = vcombine.high %v827_v59, %v831_v60 }
 0x21f   :  { %v795_v15 = vpack.c.bf16 %v749_v12, %v745_v6  ;;  %v797_v16 = vpack.c.bf16 %v792_v13, %v788_v7  ;;  %v802_v20 = vmul.bf16 1045249613, %v794_v10  ;;  %v804_v21 = vmul.bf16 1045249613, %v796_v11  ;;  %v819_v3 = vld [vmem:[#allocation9 + $0x48] sm:$0xff] }
 0x220   :  { %vm798_vm2 = vcmp.ge.bf16.partialorder %v794_v10, 0  ;;  %vm800_vm3 = vcmp.ge.bf16.partialorder %v796_v11, 0  ;;  %v6600_v2 = vcombine.high %v955_v61, %v959_v62  ;;  %v823_v4 = vld [vmem:[#allocation9 + $0x68] sm:$0xff]  ;;  %v6471_v7 = vcombine.low %v827_v59, %v831_v60 }
 0x221   :  { %v803_v22 = vmul.bf16 1045249613, %v795_v15  ;;  %v805_v23 = vmul.bf16 1045249613, %v797_v16  ;;  %vm799_vm4 = vcmp.ge.bf16.partialorder %v795_v15, 0  ;;  %vm801_vm5 = vcmp.ge.bf16.partialorder %v797_v16, 0 }
 0x222   :  { %v8369_v31 = vsel %vm798_vm2, %v794_v10, %v802_v20  ;;  %v8371_v32 = vsel %vm800_vm3, %v796_v11, %v804_v21  ;;  %v947_v5 = vld [vmem:[#allocation9 + $0x448] sm:$0xff]  ;;  %v6599_v8 = vcombine.low %v955_v61, %v959_v62  ;;  %v6464_v9 = vcombine.high %v819_v3, %v823_v4 }
 0x223   :  { %v8363_v24 = vsel %vm799_vm4, %v795_v15, %v803_v22  ;;  %v8365_v25 = vsel %vm801_vm5, %v797_v16, %v805_v23  ;;  %v951_v6 = vld [vmem:[#allocation9 + $0x468] sm:$0xff]  ;;  %v6463_v15 = vcombine.low %v819_v3, %v823_v4 }
 0x224   :  { %2420 = vmatprep.mubr.bf16.mxu1 %v8363_v24  ;;  %2463 = vmatprep.mubr.bf16.mxu0 %v8365_v25  ;;  %v6592_v10 = vcombine.high %v947_v5, %v951_v6  ;;  %v811_v11 = vld [vmem:[#allocation9 + $0x8] sm:$0xff]  ;;  %v6591_v16 = vcombine.low %v947_v5, %v951_v6 }
 0x225   :  { %2421 = vmatmul.mubr.bf16.vlgmr.msra.gmra.mxu1 %v8369_v31  ;;  %2464 = vmatmul.mubr.bf16.vlgmr.msra.gmra.mxu0 %v8371_v32  ;;  %v815_v12 = vld [vmem:[#allocation9 + $0x28] sm:$0xff] }
 0x226   :  { %2475 = vmatpush1.bf16.msra.mxu1 %v6511_v50  ;;  %2518 = vmatpush1.bf16.msra.mxu0 %v6639_v51  ;;  %v839_v50 = vld [vmem:[#allocation9 + $0xe8] sm:$0xff]  ;;  %v6456_v17 = vcombine.high %v811_v11, %v815_v12  ;;  %v6455_v23 = vcombine.low %v811_v11, %v815_v12 }
 0x227   :  { %2506 = vmatprep.mubr.bf16.mxu1 %v8363_v24  ;;  %2549 = vmatprep.mubr.bf16.mxu0 %v8365_v25  ;;  %v963_v51 = vld [vmem:[#allocation9 + $0x4c8] sm:$0xff]  ;;  %v6480_v57 = vcombine.high %v835_v49, %v839_v50  ;;  %v6479_v63 = vcombine.low %v835_v49, %v839_v50 }
 0x228   :  { %2476 = vmatprep.subr.bf16.mxu1 %v6504_v26  ;;  %2519 = vmatprep.subr.bf16.mxu0 %v6632_v33  ;;  %v6608_v58 = vcombine.high %v963_v51, %v967_v52  ;;  %v6607_v0 = vcombine.low %v963_v51, %v967_v52  ;;  %v939_v13 = vld [vmem:[#allocation9 + $0x408] sm:$0xff] }
 0x229   :  { %v6584_v18 = vcombine.high %v939_v13, %v943_v14  ;;  %v935_v20 = vld [vmem:[#allocation9 + $0x3e8] sm:$0xff]  ;;  %v6583_v26 = vcombine.low %v939_v13, %v943_v14 }
 0x22a   :  { %2477 = vmatpush1.bf16.msra.mxu1 %v6503_v37  ;;  %2520 = vmatpush1.bf16.msra.mxu0 %v6631_v38  ;;  %v1059_v21 = vld [vmem:[#allocation9 + $0x7c8] sm:$0xff]  ;;  %v6576_v30 = vcombine.high %v931_v19, %v935_v20  ;;  %v6575_v38 = vcombine.low %v931_v19, %v935_v20 }
 0x22b   :  { %2478 = vmatprep.subr.bf16.mxu1 %v6496_v39  ;;  %2521 = vmatprep.subr.bf16.mxu0 %v6624_v40  ;;  %v1063_v22 = vld [vmem:[#allocation9 + $0x7e8] sm:$0xff]  ;;  %v6568_v40 = vcombine.high %v923_v34, %v927_v35 }
 0x22c   :  { %v6704_v33 = vcombine.high %v1059_v21, %v1063_v22  ;;  %v1055_v37 = vld [vmem:[#allocation9 + $0x7a8] sm:$0xff]  ;;  %v6703_v39 = vcombine.low %v1059_v21, %v1063_v22 }
 0x22d   :  { %v6696_v41 = vcombine.high %v1051_v36, %v1055_v37  ;;  %v907_v50 = vld [vmem:[#allocation9 + $0x308] sm:$0xff] }
 0x22e   :  { %2479 = vmatpush1.bf16.msra.mxu1 %v6495_v45  ;;  %2522 = vmatpush1.bf16.msra.mxu0 %v6623_v46  ;;  %v1047_v45 = vld [vmem:[#allocation9 + $0x768] sm:$0xff]  ;;  %v6567_v46 = vcombine.low %v923_v34, %v927_v35  ;;  %v868_v35 = vld [vmem:[#allocation9 + $0x1d0] sm:$0xff] }
 0x22f   :  { %2480 = vmatprep.subr.bf16.mxu1 %v6488_v47  ;;  %2523 = vmatprep.subr.bf16.mxu0 %v6616_v48  ;;  %v6695_v47 = vcombine.low %v1051_v36, %v1055_v37  ;;  %v6560_v48 = vcombine.high %v915_v42, %v919_v43  ;;  %v6688_v49 = vcombine.high %v1043_v44, %v1047_v45  ;;  %v911_v51 = vld [vmem:[#allocation9 + $0x328] sm:$0xff]  ;;  %v872_v36 = vld [vmem:[#allocation9 + $0x1f0] sm:$0xff] }
 0x230   :  { %v1035_v52 = vld [vmem:[#allocation9 + $0x708] sm:$0xff]  ;;  %v996_v37 = vld [vmem:[#allocation9 + $0x5d0] sm:$0xff] }
 0x231   :  { %v899_v60 = vld [vmem:[#allocation9 + $0x2c8] sm:$0xff] }
 0x232   :  { %2481 = vmatpush1.bf16.msra.mxu1 %v6487_v54  ;;  %2524 = vmatpush1.bf16.msra.mxu0 %v6615_v56  ;;  %v1039_v54 = vld [vmem:[#allocation9 + $0x728] sm:$0xff]  ;;  %v6559_v56 = vcombine.low %v915_v42, %v919_v43  ;;  %v860_v43 = vld [vmem:[#allocation9 + $0x190] sm:$0xff] }
 0x233   :  { %2482 = vmatprep.subr.bf16.mxu1 %v6480_v57  ;;  %2525 = vmatprep.subr.bf16.mxu0 %v6608_v58  ;;  %v6687_v57 = vcombine.low %v1043_v44, %v1047_v45  ;;  %v6552_v58 = vcombine.high %v907_v50, %v911_v51  ;;  %v6680_v59 = vcombine.high %v1035_v52, %v1039_v54  ;;  %v903_v61 = vld [vmem:[#allocation9 + $0x2e8] sm:$0xff]  ;;  %v864_v44 = vld [vmem:[#allocation9 + $0x1b0] sm:$0xff] }
 0x234   :  { %v1027_v62 = vld [vmem:[#allocation9 + $0x6c8] sm:$0xff]  ;;  %v988_v45 = vld [vmem:[#allocation9 + $0x590] sm:$0xff] }
 0x235   :  { %v891_v4 = vld [vmem:[#allocation9 + $0x288] sm:$0xff] }
 0x236   :  { %2483 = vmatpush1.bf16.msra.mxu1 %v6479_v63  ;;  %2526 = vmatpush1.bf16.msra.mxu0 %v6607_v0  ;;  %v1031_v63 = vld [vmem:[#allocation9 + $0x6e8] sm:$0xff]  ;;  %v6551_v0 = vcombine.low %v907_v50, %v911_v51  ;;  %v852_v51 = vld [vmem:[#allocation9 + $0x150] sm:$0xff] }
 0x237   :  { %2484 = vmatprep.subr.bf16.mxu1 %v6472_v1  ;;  %2527 = vmatprep.subr.bf16.mxu0 %v6600_v2  ;;  %v6679_v1 = vcombine.low %v1035_v52, %v1039_v54  ;;  %v6544_v2 = vcombine.high %v899_v60, %v903_v61  ;;  %v6672_v3 = vcombine.high %v1027_v62, %v1031_v63  ;;  %v895_v5 = vld [vmem:[#allocation9 + $0x2a8] sm:$0xff]  ;;  %v856_v52 = vld [vmem:[#allocation9 + $0x170] sm:$0xff] }
 0x238   :  { %v1019_v6 = vld [vmem:[#allocation9 + $0x688] sm:$0xff]  ;;  %v980_v54 = vld [vmem:[#allocation9 + $0x550] sm:$0xff] }
 0x239   :  { %v883_v12 = vld [vmem:[#allocation9 + $0x248] sm:$0xff] }
 0x23a   :  { %2485 = vmatpush1.bf16.msra.mxu1 %v6471_v7  ;;  %2528 = vmatpush1.bf16.msra.mxu0 %v6599_v8  ;;  %v1023_v7 = vld [vmem:[#allocation9 + $0x6a8] sm:$0xff]  ;;  %v6543_v8 = vcombine.low %v899_v60, %v903_v61  ;;  %v844_v61 = vld [vmem:[#allocation9 + $0x110] sm:$0xff] }
 0x23b   :  { %2486 = vmatprep.subr.bf16.mxu1 %v6464_v9  ;;  %2529 = vmatprep.subr.bf16.mxu0 %v6592_v10  ;;  %v6671_v9 = vcombine.low %v1027_v62, %v1031_v63  ;;  %v6536_v10 = vcombine.high %v891_v4, %v895_v5  ;;  %v6664_v11 = vcombine.high %v1019_v6, %v1023_v7  ;;  %v887_v13 = vld [vmem:[#allocation9 + $0x268] sm:$0xff]  ;;  %v848_v62 = vld [vmem:[#allocation9 + $0x130] sm:$0xff] }
 0x23c   :  { %v1011_v14 = vld [vmem:[#allocation9 + $0x648] sm:$0xff]  ;;  %v972_v63 = vld [vmem:[#allocation9 + $0x510] sm:$0xff] }
 0x23d   :  { %v875_v20 = vld [vmem:[#allocation9 + $0x208] sm:$0xff] }
 0x23e   :  { %2487 = vmatpush1.bf16.msra.mxu1 %v6463_v15  ;;  %2530 = vmatpush1.bf16.msra.mxu0 %v6591_v16  ;;  %v1015_v15 = vld [vmem:[#allocation9 + $0x668] sm:$0xff]  ;;  %v6535_v16 = vcombine.low %v891_v4, %v895_v5  ;;  %v836_v5 = vld [vmem:[#allocation9 + $0xd0] sm:$0xff] }
 0x23f   :  { %2488 = vmatprep.subr.bf16.mxu1 %v6456_v17  ;;  %2531 = vmatprep.subr.bf16.mxu0 %v6584_v18  ;;  %v6663_v17 = vcombine.low %v1019_v6, %v1023_v7  ;;  %v6528_v18 = vcombine.high %v883_v12, %v887_v13  ;;  %v6656_v19 = vcombine.high %v1011_v14, %v1015_v15  ;;  %v879_v21 = vld [vmem:[#allocation9 + $0x228] sm:$0xff]  ;;  %v840_v6 = vld [vmem:[#allocation9 + $0xf0] sm:$0xff] }
 0x240   :  { %v1003_v22 = vld [vmem:[#allocation9 + $0x608] sm:$0xff]  ;;  %v964_v7 = vld [vmem:[#allocation9 + $0x4d0] sm:$0xff] }
 0x242   :  { %2489 = vmatpush1.bf16.msra.mxu1 %v6455_v23  ;;  %2532 = vmatpush1.bf16.msra.mxu0 %v6583_v26  ;;  %v1007_v23 = vld [vmem:[#allocation9 + $0x628] sm:$0xff]  ;;  %v6527_v26 = vcombine.low %v883_v12, %v887_v13  ;;  %v828_v13 = vld [vmem:[#allocation9 + $0x90] sm:$0xff] }
 0x243   :  { %2490 = vmatprep.subr.bf16.mxu1 %v6576_v30  ;;  %2533 = vmatprep.subr.bf16.mxu0 %v6704_v33  ;;  %v6655_v30 = vcombine.low %v1011_v14, %v1015_v15  ;;  %v6520_v33 = vcombine.high %v875_v20, %v879_v21  ;;  %v6648_v34 = vcombine.high %v1003_v22, %v1007_v23  ;;  %v832_v14 = vld [vmem:[#allocation9 + $0xb0] sm:$0xff] }
 0x244   :  { %v956_v15 = vld [vmem:[#allocation9 + $0x490] sm:$0xff] }
 0x246   :  { %2491 = vmatpush2.bf16.msra.mxu1 %v6575_v38  ;;  %2534 = vmatpush2.bf16.msra.mxu0 %v6703_v39  ;;  %v1000_v38 = vld [vmem:[#allocation9 + $0x5f0] sm:$0xff]  ;;  %v6519_v39 = vcombine.low %v875_v20, %v879_v21 }
 0x247   :  { %2492 = vmatprep.subr.bf16.mxu1 %v6568_v40  ;;  %2535 = vmatprep.subr.bf16.mxu0 %v6696_v41  ;;  %v6647_v40 = vcombine.low %v1003_v22, %v1007_v23  ;;  %v6514_v41 = vcombine.high %v868_v35, %v872_v36  ;;  %v6642_v42 = vcombine.high %v996_v37, %v1000_v38  ;;  %v820_v21 = vld [vmem:[#allocation9 + $0x50] sm:$0xff] }
 0x248   :  { %v824_v22 = vld [vmem:[#allocation9 + $0x70] sm:$0xff] }
 0x249   :  { %v948_v23 = vld [vmem:[#allocation9 + $0x450] sm:$0xff] }
 0x24a   :  { %2493 = vmatpush2.bf16.msra.mxu1 %v6567_v46  ;;  %2536 = vmatpush2.bf16.msra.mxu0 %v6695_v47  ;;  %v992_v46 = vld [vmem:[#allocation9 + $0x5b0] sm:$0xff]  ;;  %v6513_v47 = vcombine.low %v868_v35, %v872_v36 }
 0x24b   :  { %2494 = vmatprep.subr.bf16.mxu1 %v6560_v48  ;;  %2537 = vmatprep.subr.bf16.mxu0 %v6688_v49  ;;  %v6641_v48 = vcombine.low %v996_v37, %v1000_v38  ;;  %v6506_v49 = vcombine.high %v860_v43, %v864_v44  ;;  %v6634_v50 = vcombine.high %v988_v45, %v992_v46  ;;  %v812_v36 = vld [vmem:[#allocation9 + $0x10] sm:$0xff] }
 0x24c   :  { %v816_v37 = vld [vmem:[#allocation9 + $0x30] sm:$0xff] }
 0x24d   :  { %v940_v38 = vld [vmem:[#allocation9 + $0x410] sm:$0xff] }
 0x24e   :  { %2495 = vmatpush2.bf16.msra.mxu1 %v6559_v56  ;;  %2538 = vmatpush2.bf16.msra.mxu0 %v6687_v57  ;;  %v984_v56 = vld [vmem:[#allocation9 + $0x570] sm:$0xff]  ;;  %v6505_v57 = vcombine.low %v860_v43, %v864_v44 }
 0x24f   :  { %2496 = vmatprep.subr.bf16.mxu1 %v6552_v58  ;;  %2539 = vmatprep.subr.bf16.mxu0 %v6680_v59  ;;  %v6633_v58 = vcombine.low %v988_v45, %v992_v46  ;;  %v6498_v59 = vcombine.high %v852_v51, %v856_v52  ;;  %v6626_v60 = vcombine.high %v980_v54, %v984_v56  ;;  %v932_v44 = vld [vmem:[#allocation9 + $0x3d0] sm:$0xff] }
 0x250   :  { %v936_v45 = vld [vmem:[#allocation9 + $0x3f0] sm:$0xff] }
 0x251   :  { %v1060_v46 = vld [vmem:[#allocation9 + $0x7d0] sm:$0xff] }
 0x252   :  { %2497 = vmatpush2.bf16.msra.mxu1 %v6551_v0  ;;  %2540 = vmatpush2.bf16.msra.mxu0 %v6679_v1  ;;  %v976_v0 = vld [vmem:[#allocation9 + $0x530] sm:$0xff]  ;;  %v6497_v1 = vcombine.low %v852_v51, %v856_v52 }
 0x253   :  { %2498 = vmatprep.subr.bf16.mxu1 %v6544_v2  ;;  %2541 = vmatprep.subr.bf16.mxu0 %v6672_v3  ;;  %v6625_v2 = vcombine.low %v980_v54, %v984_v56  ;;  %v6490_v3 = vcombine.high %v844_v61, %v848_v62  ;;  %v6618_v4 = vcombine.high %v972_v63, %v976_v0  ;;  %v924_v52 = vld [vmem:[#allocation9 + $0x390] sm:$0xff] }
 0x254   :  { %v928_v54 = vld [vmem:[#allocation9 + $0x3b0] sm:$0xff] }
 0x255   :  { %v1052_v56 = vld [vmem:[#allocation9 + $0x790] sm:$0xff] }
 0x256   :  { %2499 = vmatpush2.bf16.msra.mxu1 %v6543_v8  ;;  %2542 = vmatpush2.bf16.msra.mxu0 %v6671_v9  ;;  %v968_v8 = vld [vmem:[#allocation9 + $0x4f0] sm:$0xff]  ;;  %v6489_v9 = vcombine.low %v844_v61, %v848_v62 }
 0x257   :  { %2500 = vmatprep.subr.bf16.mxu1 %v6536_v10  ;;  %2543 = vmatprep.subr.bf16.mxu0 %v6664_v11  ;;  %v6617_v10 = vcombine.low %v972_v63, %v976_v0  ;;  %v6482_v11 = vcombine.high %v836_v5, %v840_v6  ;;  %v6610_v12 = vcombine.high %v964_v7, %v968_v8  ;;  %v916_v62 = vld [vmem:[#allocation9 + $0x350] sm:$0xff] }
 0x258   :  { %v920_v63 = vld [vmem:[#allocation9 + $0x370] sm:$0xff] }
 0x259   :  { %v1044_v0 = vld [vmem:[#allocation9 + $0x750] sm:$0xff] }
 0x25a   :  { %2501 = vmatpush2.bf16.msra.mxu1 %v6535_v16  ;;  %2544 = vmatpush2.bf16.msra.mxu0 %v6663_v17  ;;  %v960_v16 = vld [vmem:[#allocation9 + $0x4b0] sm:$0xff]  ;;  %v6481_v17 = vcombine.low %v836_v5, %v840_v6 }
 0x25b   :  { %2502 = vmatprep.subr.bf16.mxu1 %v6528_v18  ;;  %2545 = vmatprep.subr.bf16.mxu0 %v6656_v19  ;;  %v6609_v18 = vcombine.low %v964_v7, %v968_v8  ;;  %v6474_v19 = vcombine.high %v828_v13, %v832_v14  ;;  %v6602_v20 = vcombine.high %v956_v15, %v960_v16  ;;  %v908_v6 = vld [vmem:[#allocation9 + $0x310] sm:$0xff] }
 0x25c   :  { %v912_v7 = vld [vmem:[#allocation9 + $0x330] sm:$0xff] }
 0x25d   :  { %v1036_v8 = vld [vmem:[#allocation9 + $0x710] sm:$0xff] }
 0x25e   :  { %2503 = vmatpush2.bf16.msra.mxu1 %v6527_v26  ;;  %2546 = vmatpush2.bf16.msra.mxu0 %v6655_v30  ;;  %v952_v26 = vld [vmem:[#allocation9 + $0x470] sm:$0xff]  ;;  %v6473_v30 = vcombine.low %v828_v13, %v832_v14 }
 0x25f   :  { %2504 = vmatprep.subr.bf16.mxu1 %v6520_v33  ;;  %2547 = vmatprep.subr.bf16.mxu0 %v6648_v34  ;;  %v6601_v33 = vcombine.low %v956_v15, %v960_v16  ;;  %v6466_v34 = vcombine.high %v820_v21, %v824_v22  ;;  %v6594_v35 = vcombine.high %v948_v23, %v952_v26  ;;  %v900_v14 = vld [vmem:[#allocation9 + $0x2d0] sm:$0xff] }
 0x260   :  { %v904_v15 = vld [vmem:[#allocation9 + $0x2f0] sm:$0xff] }
 0x261   :  { %v1028_v16 = vld [vmem:[#allocation9 + $0x6d0] sm:$0xff] }
 0x262   :  { %2505 = vmatpush2.bf16.msra.mxu1 %v6519_v39  ;;  %2548 = vmatpush2.bf16.msra.mxu0 %v6647_v40  ;;  %v944_v39 = vld [vmem:[#allocation9 + $0x430] sm:$0xff]  ;;  %v6465_v40 = vcombine.low %v820_v21, %v824_v22 }
 0x263   :  { %2560 = vmatprep.subr.bf16.mxu1 %v6514_v41  ;;  %2603 = vmatprep.subr.bf16.mxu0 %v6642_v42  ;;  %v6593_v41 = vcombine.low %v948_v23, %v952_v26  ;;  %v6458_v42 = vcombine.high %v812_v36, %v816_v37  ;;  %v6586_v43 = vcombine.high %v940_v38, %v944_v39  ;;  %v892_v22 = vld [vmem:[#allocation9 + $0x290] sm:$0xff] }
 0x264   :  { %v896_v23 = vld [vmem:[#allocation9 + $0x2b0] sm:$0xff] }
 0x265   :  { %2507 = vmatmul.mubr.bf16.vlgmr.msra.gmra.mxu1 %v8369_v31  ;;  %2550 = vmatmul.mubr.bf16.vlgmr.msra.gmra.mxu0 %v8371_v32  ;;  %v1020_v26 = vld [vmem:[#allocation9 + $0x690] sm:$0xff] }
 0x266   :  { %2561 = vmatpush1.bf16.msra.mxu1 %v6513_v47  ;;  %2592 = vmatprep.mubr.bf16.mxu1 %v8363_v24  ;;  %v1064_v47 = vld [vmem:[#allocation9 + $0x7f0] sm:$0xff] }
 0x267   :  { %2604 = vmatpush1.bf16.msra.mxu0 %v6641_v48  ;;  %2635 = vmatprep.mubr.bf16.mxu0 %v8365_v25  ;;  %v6457_v48 = vcombine.low %v812_v36, %v816_v37  ;;  %v6706_v51 = vcombine.high %v1060_v46, %v1064_v47  ;;  %v884_v37 = vld [vmem:[#allocation9 + $0x250] sm:$0xff] }
 0x268   :  { %2562 = vmatprep.subr.bf16.mxu1 %v6506_v49  ;;  %2605 = vmatprep.subr.bf16.mxu0 %v6634_v50  ;;  %v6585_v49 = vcombine.low %v940_v38, %v944_v39  ;;  %v6578_v50 = vcombine.high %v932_v44, %v936_v45  ;;  %v888_v38 = vld [vmem:[#allocation9 + $0x270] sm:$0xff] }
 0x269   :  { %v1012_v39 = vld [vmem:[#allocation9 + $0x650] sm:$0xff] }
 0x26a   :  { %2563 = vmatpush1.bf16.msra.mxu1 %v6505_v57  ;;  %v1056_v57 = vld [vmem:[#allocation9 + $0x7b0] sm:$0xff] }
 0x26b   :  { %2606 = vmatpush1.bf16.msra.mxu0 %v6633_v58  ;;  %2564 = vmatprep.subr.bf16.mxu1 %v6498_v59  ;;  %v6577_v58 = vcombine.low %v932_v44, %v936_v45  ;;  %v6705_v59 = vcombine.low %v1060_v46, %v1064_v47  ;;  %v6698_v61 = vcombine.high %v1052_v56, %v1056_v57  ;;  %v876_v45 = vld [vmem:[#allocation9 + $0x210] sm:$0xff] }
 0x26c   :  { %2607 = vmatprep.subr.bf16.mxu0 %v6626_v60  ;;  %v6570_v60 = vcombine.high %v924_v52, %v928_v54  ;;  %v880_v46 = vld [vmem:[#allocation9 + $0x230] sm:$0xff] }
 0x26d   :  { %v1004_v47 = vld [vmem:[#allocation9 + $0x610] sm:$0xff] }
 0x26e   :  { %2565 = vmatpush1.bf16.msra.mxu1 %v6497_v1  ;;  %v1048_v1 = vld [vmem:[#allocation9 + $0x770] sm:$0xff] }
 0x26f   :  { %2608 = vmatpush1.bf16.msra.mxu0 %v6625_v2  ;;  %2566 = vmatprep.subr.bf16.mxu1 %v6490_v3  ;;  %v6569_v2 = vcombine.low %v924_v52, %v928_v54  ;;  %v6697_v3 = vcombine.low %v1052_v56, %v1056_v57  ;;  %v6690_v5 = vcombine.high %v1044_v0, %v1048_v1  ;;  %v869_v54 = vld [vmem:[#allocation9 + $0x1d8] sm:$0xff] }
 0x270   :  { %2609 = vmatprep.subr.bf16.mxu0 %v6618_v4  ;;  %v6562_v4 = vcombine.high %v916_v62, %v920_v63  ;;  %v873_v56 = vld [vmem:[#allocation9 + $0x1f8] sm:$0xff] }
 0x271   :  { %v997_v57 = vld [vmem:[#allocation9 + $0x5d8] sm:$0xff] }
 0x272   :  { %2567 = vmatpush1.bf16.msra.mxu1 %v6489_v9  ;;  %v1040_v9 = vld [vmem:[#allocation9 + $0x730] sm:$0xff] }
 0x273   :  { %2610 = vmatpush1.bf16.msra.mxu0 %v6617_v10  ;;  %2568 = vmatprep.subr.bf16.mxu1 %v6482_v11  ;;  %v6561_v10 = vcombine.low %v916_v62, %v920_v63  ;;  %v6689_v11 = vcombine.low %v1044_v0, %v1048_v1  ;;  %v6682_v13 = vcombine.high %v1036_v8, %v1040_v9  ;;  %v861_v63 = vld [vmem:[#allocation9 + $0x198] sm:$0xff] }
 0x274   :  { %2611 = vmatprep.subr.bf16.mxu0 %v6610_v12  ;;  %v6554_v12 = vcombine.high %v908_v6, %v912_v7  ;;  %v865_v0 = vld [vmem:[#allocation9 + $0x1b8] sm:$0xff]  ;;  %v6515_v1 = vcombine.low %v869_v54, %v873_v56 }
 0x276   :  { %2569 = vmatpush1.bf16.msra.mxu1 %v6481_v17  ;;  %v1032_v17 = vld [vmem:[#allocation9 + $0x6f0] sm:$0xff] }
 0x277   :  { %2612 = vmatpush1.bf16.msra.mxu0 %v6609_v18  ;;  %2570 = vmatprep.subr.bf16.mxu1 %v6474_v19  ;;  %v6553_v18 = vcombine.low %v908_v6, %v912_v7  ;;  %v6681_v19 = vcombine.low %v1036_v8, %v1040_v9  ;;  %v6674_v21 = vcombine.high %v1028_v16, %v1032_v17  ;;  %v853_v6 = vld [vmem:[#allocation9 + $0x158] sm:$0xff] }
 0x278   :  { %2613 = vmatprep.subr.bf16.mxu0 %v6602_v20  ;;  %v6546_v20 = vcombine.high %v900_v14, %v904_v15  ;;  %v857_v7 = vld [vmem:[#allocation9 + $0x178] sm:$0xff] }
 0x279   :  { %v981_v9 = vld [vmem:[#allocation9 + $0x558] sm:$0xff] }
 0x27a   :  { %2571 = vmatpush1.bf16.msra.mxu1 %v6473_v30  ;;  %v1024_v30 = vld [vmem:[#allocation9 + $0x6b0] sm:$0xff] }
 0x27b   :  { %2614 = vmatpush1.bf16.msra.mxu0 %v6601_v33  ;;  %2572 = vmatprep.subr.bf16.mxu1 %v6466_v34  ;;  %v6545_v33 = vcombine.low %v900_v14, %v904_v15  ;;  %v6673_v34 = vcombine.low %v1028_v16, %v1032_v17  ;;  %v6666_v36 = vcombine.high %v1020_v26, %v1024_v30  ;;  %v845_v15 = vld [vmem:[#allocation9 + $0x118] sm:$0xff] }
 0x27c   :  { %2615 = vmatprep.subr.bf16.mxu0 %v6594_v35  ;;  %v6538_v35 = vcombine.high %v892_v22, %v896_v23  ;;  %v849_v16 = vld [vmem:[#allocation9 + $0x138] sm:$0xff] }
 0x27d   :  { %v973_v17 = vld [vmem:[#allocation9 + $0x518] sm:$0xff] }
 0x27e   :  { %2573 = vmatpush1.bf16.msra.mxu1 %v6465_v40  ;;  %v1016_v40 = vld [vmem:[#allocation9 + $0x670] sm:$0xff] }
 0x27f   :  { %2616 = vmatpush1.bf16.msra.mxu0 %v6593_v41  ;;  %2574 = vmatprep.subr.bf16.mxu1 %v6458_v42  ;;  %v6537_v41 = vcombine.low %v892_v22, %v896_v23  ;;  %v6665_v42 = vcombine.low %v1020_v26, %v1024_v30  ;;  %v6658_v44 = vcombine.high %v1012_v39, %v1016_v40  ;;  %v837_v22 = vld [vmem:[#allocation9 + $0xd8] sm:$0xff] }
 0x280   :  { %2617 = vmatprep.subr.bf16.mxu0 %v6586_v43  ;;  %v6530_v43 = vcombine.high %v884_v37, %v888_v38  ;;  %v841_v23 = vld [vmem:[#allocation9 + $0xf8] sm:$0xff] }
 0x281   :  { %v965_v26 = vld [vmem:[#allocation9 + $0x4d8] sm:$0xff] }
 0x282   :  { %2575 = vmatpush1.bf16.msra.mxu1 %v6457_v48  ;;  %v1008_v48 = vld [vmem:[#allocation9 + $0x630] sm:$0xff]  ;;  %v969_v30 = vld [vmem:[#allocation9 + $0x4f8] sm:$0xff] }
 0x283   :  { %2618 = vmatpush1.bf16.msra.mxu0 %v6585_v49  ;;  %2576 = vmatprep.subr.bf16.mxu1 %v6578_v50  ;;  %v6529_v49 = vcombine.low %v884_v37, %v888_v38  ;;  %v6657_v50 = vcombine.low %v1012_v39, %v1016_v40  ;;  %v6650_v52 = vcombine.high %v1004_v47, %v1008_v48  ;;  %v833_v37 = vld [vmem:[#allocation9 + $0xb8] sm:$0xff] }
 0x284   :  { %2619 = vmatprep.subr.bf16.mxu0 %v6706_v51  ;;  %v6522_v51 = vcombine.high %v876_v45, %v880_v46  ;;  %v957_v38 = vld [vmem:[#allocation9 + $0x498] sm:$0xff]  ;;  %v6483_v40 = vcombine.low %v837_v22, %v841_v23 }
 0x285   :  { %v961_v39 = vld [vmem:[#allocation9 + $0x4b8] sm:$0xff] }
 0x286   :  { %2577 = vmatpush2.bf16.msra.mxu1 %v6577_v58  ;;  %v1001_v58 = vld [vmem:[#allocation9 + $0x5f8] sm:$0xff] }
 0x287   :  { %2620 = vmatpush2.bf16.msra.mxu0 %v6705_v59  ;;  %2578 = vmatprep.subr.bf16.mxu1 %v6570_v60  ;;  %v6521_v59 = vcombine.low %v876_v45, %v880_v46  ;;  %v6649_v60 = vcombine.low %v1004_v47, %v1008_v48  ;;  %v6644_v62 = vcombine.high %v997_v57, %v1001_v58  ;;  %v825_v45 = vld [vmem:[#allocation9 + $0x78] sm:$0xff] }
 0x288   :  { %2621 = vmatprep.subr.bf16.mxu0 %v6698_v61  ;;  %v6516_v61 = vcombine.high %v869_v54, %v873_v56  ;;  %v949_v46 = vld [vmem:[#allocation9 + $0x458] sm:$0xff] }
 0x289   :  { %v953_v47 = vld [vmem:[#allocation9 + $0x478] sm:$0xff] }
 0x28a   :  { %2579 = vmatpush2.bf16.msra.mxu1 %v6569_v2  ;;  %v989_v2 = vld [vmem:[#allocation9 + $0x598] sm:$0xff] }
 0x28b   :  { %2622 = vmatpush2.bf16.msra.mxu0 %v6697_v3  ;;  %2580 = vmatprep.subr.bf16.mxu1 %v6562_v4  ;;  %v993_v3 = vld [vmem:[#allocation9 + $0x5b8] sm:$0xff]  ;;  %v6643_v4 = vcombine.low %v997_v57, %v1001_v58 }
 0x28c   :  { %2623 = vmatprep.subr.bf16.mxu0 %v6690_v5  ;;  %v6508_v5 = vcombine.high %v861_v63, %v865_v0  ;;  %v6636_v8 = vcombine.high %v989_v2, %v993_v3  ;;  %v817_v54 = vld [vmem:[#allocation9 + $0x38] sm:$0xff] }
 0x28d   :  { %v941_v56 = vld [vmem:[#allocation9 + $0x418] sm:$0xff] }
 0x28e   :  { %2581 = vmatpush2.bf16.msra.mxu1 %v6561_v10  ;;  %v985_v10 = vld [vmem:[#allocation9 + $0x578] sm:$0xff] }
 0x28f   :  { %2624 = vmatpush2.bf16.msra.mxu0 %v6689_v11  ;;  %2582 = vmatprep.subr.bf16.mxu1 %v6554_v12  ;;  %v6507_v11 = vcombine.low %v861_v63, %v865_v0  ;;  %v6635_v12 = vcombine.low %v989_v2, %v993_v3  ;;  %v6628_v14 = vcombine.high %v981_v9, %v985_v10  ;;  %v945_v57 = vld [vmem:[#allocation9 + $0x438] sm:$0xff] }
 0x290   :  { %2625 = vmatprep.subr.bf16.mxu0 %v6682_v13  ;;  %v6500_v13 = vcombine.high %v853_v6, %v857_v7  ;;  %v937_v63 = vld [vmem:[#allocation9 + $0x3f8] sm:$0xff]  ;;  %v6587_v3 = vcombine.low %v941_v56, %v945_v57 }
 0x291   :  { %v1061_v0 = vld [vmem:[#allocation9 + $0x7d8] sm:$0xff] }
 0x292   :  { %2583 = vmatpush2.bf16.msra.mxu1 %v6553_v18  ;;  %v977_v18 = vld [vmem:[#allocation9 + $0x538] sm:$0xff] }
 0x293   :  { %2626 = vmatpush2.bf16.msra.mxu0 %v6681_v19  ;;  %2584 = vmatprep.subr.bf16.mxu1 %v6546_v20  ;;  %v6499_v19 = vcombine.low %v853_v6, %v857_v7  ;;  %v6627_v20 = vcombine.low %v981_v9, %v985_v10  ;;  %v925_v6 = vld [vmem:[#allocation9 + $0x398] sm:$0xff] }
 0x294   :  { %2627 = vmatprep.subr.bf16.mxu0 %v6674_v21  ;;  %v6492_v21 = vcombine.high %v845_v15, %v849_v16  ;;  %v929_v7 = vld [vmem:[#allocation9 + $0x3b8] sm:$0xff] }
 0x295   :  { %v1057_v9 = vld [vmem:[#allocation9 + $0x7b8] sm:$0xff] }
 0x296   :  { %2585 = vmatpush2.bf16.msra.mxu1 %v6545_v33  ;;  %v6619_v33 = vcombine.low %v973_v17, %v977_v18 }
 0x297   :  { %2628 = vmatpush2.bf16.msra.mxu0 %v6673_v34  ;;  %2586 = vmatprep.subr.bf16.mxu1 %v6538_v35  ;;  %v6484_v34 = vcombine.high %v837_v22, %v841_v23  ;;  %v6612_v35 = vcombine.high %v965_v26, %v969_v30  ;;  %v913_v22 = vld [vmem:[#allocation9 + $0x338] sm:$0xff] }
 0x298   :  { %2629 = vmatprep.subr.bf16.mxu0 %v6666_v36  ;;  %v829_v36 = vld [vmem:[#allocation9 + $0x98] sm:$0xff] }
 0x299   :  { %v6475_v48 = vcombine.low %v829_v36, %v833_v37  ;;  %v1037_v23 = vld [vmem:[#allocation9 + $0x718] sm:$0xff] }
 0x29a   :  { %2587 = vmatpush2.bf16.msra.mxu1 %v6537_v41  ;;  %v6611_v41 = vcombine.low %v965_v26, %v969_v30  ;;  %v1041_v26 = vld [vmem:[#allocation9 + $0x738] sm:$0xff] }
 0x29b   :  { %2630 = vmatpush2.bf16.msra.mxu0 %v6665_v42  ;;  %2588 = vmatprep.subr.bf16.mxu1 %v6530_v43  ;;  %v6476_v42 = vcombine.high %v829_v36, %v833_v37  ;;  %v6604_v43 = vcombine.high %v957_v38, %v961_v39  ;;  %v905_v36 = vld [vmem:[#allocation9 + $0x2f8] sm:$0xff] }
 0x29c   :  { %2631 = vmatprep.subr.bf16.mxu0 %v6658_v44  ;;  %v821_v44 = vld [vmem:[#allocation9 + $0x58] sm:$0xff] }
 0x29d   :  { %v6467_v58 = vcombine.low %v821_v44, %v825_v45  ;;  %v1029_v37 = vld [vmem:[#allocation9 + $0x6d8] sm:$0xff] }
 0x29e   :  { %2589 = vmatpush2.bf16.msra.mxu1 %v6529_v49  ;;  %v6603_v49 = vcombine.low %v957_v38, %v961_v39  ;;  %v1033_v38 = vld [vmem:[#allocation9 + $0x6f8] sm:$0xff] }
 0x29f   :  { %2632 = vmatpush2.bf16.msra.mxu0 %v6657_v50  ;;  %2590 = vmatprep.subr.bf16.mxu1 %v6522_v51  ;;  %v6468_v50 = vcombine.high %v821_v44, %v825_v45  ;;  %v6596_v51 = vcombine.high %v949_v46, %v953_v47  ;;  %v897_v44 = vld [vmem:[#allocation9 + $0x2b8] sm:$0xff] }
 0x2a0   :  { %2633 = vmatprep.subr.bf16.mxu0 %v6650_v52  ;;  %v813_v52 = vld [vmem:[#allocation9 + $0x18] sm:$0xff] }
 0x2a1   :  { %v6459_v2 = vcombine.low %v813_v52, %v817_v54  ;;  %v1021_v45 = vld [vmem:[#allocation9 + $0x698] sm:$0xff] }
 0x2a2   :  { %2591 = vmatpush2.bf16.msra.mxu1 %v6521_v59  ;;  %v6595_v59 = vcombine.low %v949_v46, %v953_v47  ;;  %v1025_v46 = vld [vmem:[#allocation9 + $0x6b8] sm:$0xff] }
 0x2a3   :  { %2634 = vmatpush2.bf16.msra.mxu0 %v6649_v60  ;;  %2646 = vmatprep.subr.bf16.mxu1 %v6516_v61  ;;  %v6460_v60 = vcombine.high %v813_v52, %v817_v54  ;;  %v6588_v61 = vcombine.high %v941_v56, %v945_v57  ;;  %v889_v52 = vld [vmem:[#allocation9 + $0x278] sm:$0xff] }
 0x2a4   :  { %2689 = vmatprep.subr.bf16.mxu0 %v6644_v62  ;;  %v933_v62 = vld [vmem:[#allocation9 + $0x3d8] sm:$0xff] }
 0x2a5   :  { %2593 = vmatmul.mubr.bf16.vlgmr.msra.gmra.mxu1 %v8369_v31  ;;  %v6579_v10 = vcombine.low %v933_v62, %v937_v63  ;;  %v1013_v54 = vld [vmem:[#allocation9 + $0x658] sm:$0xff] }
 0x2a6   :  { %2636 = vmatmul.mubr.bf16.vlgmr.msra.gmra.mxu0 %v8371_v32  ;;  %2647 = vmatpush1.bf16.msra.mxu1 %v6515_v1  ;;  %v1065_v1 = vld [vmem:[#allocation9 + $0x7f8] sm:$0xff] }
 0x2a7   :  { %2678 = vmatprep.mubr.bf16.mxu1 %v8363_v24  ;;  %2690 = vmatpush1.bf16.msra.mxu0 %v6643_v4  ;;  %v6620_v24 = vcombine.high %v973_v17, %v977_v18  ;;  %v6580_v4 = vcombine.high %v933_v62, %v937_v63  ;;  %v1049_v17 = vld [vmem:[#allocation9 + $0x778] sm:$0xff]  ;;  %v6571_v18 = vcombine.low %v925_v6, %v929_v7 }
 0x2a8   :  { %2721 = vmatprep.mubr.bf16.mxu0 %v8365_v25  ;;  %2648 = vmatprep.subr.bf16.mxu1 %v6508_v5  ;;  %v6491_v25 = vcombine.low %v845_v15, %v849_v16  ;;  %v6708_v5 = vcombine.high %v1061_v0, %v1065_v1  ;;  %v921_v15 = vld [vmem:[#allocation9 + $0x378] sm:$0xff] }
 0x2a9   :  { %2691 = vmatprep.subr.bf16.mxu0 %v6636_v8  ;;  %v1053_v8 = vld [vmem:[#allocation9 + $0x798] sm:$0xff] }
 0x2aa   :  { %2649 = vmatpush1.bf16.msra.mxu1 %v6507_v11  ;;  %v6707_v11 = vcombine.low %v1061_v0, %v1065_v1  ;;  %v1045_v16 = vld [vmem:[#allocation9 + $0x758] sm:$0xff] }
 0x2ab   :  { %2692 = vmatpush1.bf16.msra.mxu0 %v6635_v12  ;;  %2650 = vmatprep.subr.bf16.mxu1 %v6500_v13  ;;  %v6572_v12 = vcombine.high %v925_v6, %v929_v7  ;;  %v6700_v13 = vcombine.high %v1053_v8, %v1057_v9  ;;  %v1017_v56 = vld [vmem:[#allocation9 + $0x678] sm:$0xff]  ;;  %v7401_v7 = vld [vmem:[#allocation12 + $0x18c] ss:$28 sps:$4 sm:$0xff]  }
 0x2ac   :  { %2693 = vmatprep.subr.bf16.mxu0 %v6628_v14  ;;  %v917_v14 = vld [vmem:[#allocation9 + $0x358] sm:$0xff] }
 0x2ad   :  { %v6563_v30 = vcombine.low %v917_v14, %v921_v15  ;;  %v881_v62 = vld [vmem:[#allocation9 + $0x238] sm:$0xff] }
 0x2ae   :  { %2651 = vmatpush1.bf16.msra.mxu1 %v6499_v19  ;;  %v6699_v19 = vcombine.low %v1053_v8, %v1057_v9  ;;  %v1005_v63 = vld [vmem:[#allocation9 + $0x618] sm:$0xff]  ;;  %v7416_v8 = vld [vmem:[#allocation12 + $0x50c] ss:$28 sps:$4 sm:$0xff]  }
 0x2af   :  { %2694 = vmatpush1.bf16.msra.mxu0 %v6627_v20  ;;  %2652 = vmatprep.subr.bf16.mxu1 %v6492_v21  ;;  %v6564_v20 = vcombine.high %v917_v14, %v921_v15  ;;  %v6692_v21 = vcombine.high %v1045_v16, %v1049_v17  ;;  %v1009_v0 = vld [vmem:[#allocation9 + $0x638] sm:$0xff]  ;;  %v7399_v9 = vld [vmem:[#allocation12 + $0x188] ss:$28 sps:$4 sm:$0xff]  }
 0x2b0   :  { %2695 = vmatprep.subr.bf16.mxu0 %v6620_v24  ;;  %v909_v24 = vld [vmem:[#allocation9 + $0x318] sm:$0xff]  ;;  %v6651_v6 = vcombine.low %v1005_v63, %v1009_v0 }
 0x2b1   :  { %v6555_v39 = vcombine.low %v909_v24, %v913_v22 }
 0x2b2   :  { %2653 = vmatpush1.bf16.msra.mxu1 %v6491_v25  ;;  %v6691_v25 = vcombine.low %v1045_v16, %v1049_v17  ;;  %v7402_v17 = vld [vmem:[#allocation12 + $0x150] ss:$28 sps:$4 sm:$0xff]  }
 0x2b3   :  { %2696 = vmatpush1.bf16.msra.mxu0 %v6619_v33  ;;  %2654 = vmatprep.subr.bf16.mxu1 %v6484_v34  ;;  %v6556_v33 = vcombine.high %v909_v24, %v913_v22  ;;  %v6684_v34 = vcombine.high %v1037_v23, %v1041_v26 }
 0x2b4   :  { %2697 = vmatprep.subr.bf16.mxu0 %v6612_v35  ;;  %v901_v35 = vld [vmem:[#allocation9 + $0x2d8] sm:$0xff] }
 0x2b5   :  { %v6547_v47 = vcombine.low %v901_v35, %v905_v36 }
 0x2b6   :  { %2655 = vmatpush1.bf16.msra.mxu1 %v6483_v40  ;;  %v6683_v40 = vcombine.low %v1037_v23, %v1041_v26 }
 0x2b7   :  { %2698 = vmatpush1.bf16.msra.mxu0 %v6611_v41  ;;  %2656 = vmatprep.subr.bf16.mxu1 %v6476_v42  ;;  %v6548_v41 = vcombine.high %v901_v35, %v905_v36  ;;  %v6676_v42 = vcombine.high %v1029_v37, %v1033_v38 }
 0x2b8   :  { %2699 = vmatprep.subr.bf16.mxu0 %v6604_v43  ;;  %v893_v43 = vld [vmem:[#allocation9 + $0x298] sm:$0xff] }
 0x2b9   :  { %v6539_v57 = vcombine.low %v893_v43, %v897_v44 }
 0x2ba   :  { %2657 = vmatpush1.bf16.msra.mxu1 %v6475_v48  ;;  %v6675_v48 = vcombine.low %v1029_v37, %v1033_v38  ;;  %v7408_v38 = vld [vmem:[#allocation12 + $0xe0] ss:$28 sps:$4 sm:$0xff]  }
 0x2bb   :  { %2700 = vmatpush1.bf16.msra.mxu0 %v6603_v49  ;;  %2658 = vmatprep.subr.bf16.mxu1 %v6468_v50  ;;  %v6540_v49 = vcombine.high %v893_v43, %v897_v44  ;;  %v6668_v50 = vcombine.high %v1021_v45, %v1025_v46  ;;  %v7411_v44 = vld [vmem:[#allocation12 + $0xa8] ss:$28 sps:$4 sm:$0xff]  }
 0x2bc   :  { %2701 = vmatprep.subr.bf16.mxu0 %v6596_v51  ;;  %v885_v51 = vld [vmem:[#allocation9 + $0x258] sm:$0xff] }
 0x2bd   :  { %v6531_v1 = vcombine.low %v885_v51, %v889_v52 }
 0x2be   :  { %2659 = vmatpush1.bf16.msra.mxu1 %v6467_v58  ;;  %v6667_v58 = vcombine.low %v1021_v45, %v1025_v46  ;;  %v7419_v45 = vld [vmem:[#allocation12 + $0x74] ss:$28 sps:$4 sm:$0xff]   ;;  %v7438_v46 = vld [vmem:[#allocation12 + $0x428] ss:$28 sps:$4 sm:$0xff]  }
 0x2bf   :  { %2702 = vmatpush1.bf16.msra.mxu0 %v6595_v59  ;;  %2660 = vmatprep.subr.bf16.mxu1 %v6460_v60  ;;  %v6532_v59 = vcombine.high %v885_v51, %v889_v52  ;;  %v6660_v60 = vcombine.high %v1013_v54, %v1017_v56  ;;  %v7444_v51 = vld [vmem:[#allocation12 + $0x3f0] ss:$28 sps:$4 sm:$0xff]   ;;  %v7452_v52 = vld [vmem:[#allocation12 + $0x3bc] ss:$28 sps:$4 sm:$0xff]  }
 0x2c0   :  { %2703 = vmatprep.subr.bf16.mxu0 %v6588_v61  ;;  %v877_v61 = vld [vmem:[#allocation9 + $0x218] sm:$0xff] }
 0x2c2   :  { %2661 = vmatpush1.bf16.msra.mxu1 %v6459_v2  ;;  %v6659_v2 = vcombine.low %v1013_v54, %v1017_v56  ;;  %v7423_v54 = vld [vmem:[#allocation12 + $0x38] ss:$28 sps:$4 sm:$0xff]   ;;  %v7431_v56 = vld [vmem:[#allocation12 + $0x4] ss:$28 sps:$4 sm:$0xff]  }
 0x2c3   :  { %2704 = vmatpush1.bf16.msra.mxu0 %v6587_v3  ;;  %2662 = vmatprep.subr.bf16.mxu1 %v6580_v4  ;;  %v6524_v3 = vcombine.high %v877_v61, %v881_v62  ;;  %v6652_v4 = vcombine.high %v1005_v63, %v1009_v0  ;;  %v7435_v63 = vld [vmem:[#allocation12 + $0x348] ss:$28 sps:$4 sm:$0xff]   ;;  %v7443_v0 = vld [vmem:[#allocation12 + $0x314] ss:$28 sps:$4 sm:$0xff]  }
 0x2c4   :  { %2705 = vmatprep.subr.bf16.mxu0 %v6708_v5  ;;  %v6523_v5 = vcombine.low %v877_v61, %v881_v62  ;;  %v7456_v61 = vld [vmem:[#allocation12 + $0x380] ss:$28 sps:$4 sm:$0xff]   ;;  %v7464_v62 = vld [vmem:[#allocation12 + $0x6cc] ss:$28 sps:$4 sm:$0xff]  }
 0x2c6   :  { %2663 = vmatpush2.bf16.msra.mxu1 %v6579_v10  ;;  %v7404_v10 = vld [vmem:[#allocation12 + $0x154] ss:$28 sps:$4 sm:$0xff]  }
 0x2c7   :  { %2706 = vmatpush2.bf16.msra.mxu0 %v6707_v11  ;;  %2664 = vmatprep.subr.bf16.mxu1 %v6572_v12  ;;  %v7414_v11 = vld [vmem:[#allocation12 + $0x508] ss:$28 sps:$4 sm:$0xff]   ;;  %v7422_v12 = vld [vmem:[#allocation12 + $0x4d4] ss:$28 sps:$4 sm:$0xff]  }
 0x2c8   :  { %2707 = vmatprep.subr.bf16.mxu0 %v6700_v13  ;;  %v8386_v13 = vld [vmem:[#allocation10] sm:$0xff] }
 0x2c9   :  { %v1075_v16 = vrot.slane %v8386_v13, %v8337_v29 }
 0x2ca   :  { %2665 = vmatpush2.bf16.msra.mxu1 %v6571_v18 }
 0x2cb   :  { %2708 = vmatpush2.bf16.msra.mxu0 %v6699_v19  ;;  %2666 = vmatprep.subr.bf16.mxu1 %v6564_v20  ;;  %v7407_v20 = vld [vmem:[#allocation12 + $0x11c] ss:$28 sps:$4 sm:$0xff]  }
 0x2cc   :  { %2709 = vmatprep.subr.bf16.mxu0 %v6692_v21  ;;  %v7420_v21 = vld [vmem:[#allocation12 + $0x4d0] ss:$28 sps:$4 sm:$0xff]  }
 0x2ce   :  { %2667 = vmatpush2.bf16.msra.mxu1 %v6563_v30  ;;  %v7410_v30 = vld [vmem:[#allocation12 + $0xe4] ss:$28 sps:$4 sm:$0xff]  }
 0x2cf   :  { %2710 = vmatpush2.bf16.msra.mxu0 %v6691_v25  ;;  %2668 = vmatprep.subr.bf16.mxu1 %v6556_v33  ;;  %v7426_v25 = vld [vmem:[#allocation12 + $0x498] ss:$28 sps:$4 sm:$0xff]  }
 0x2d0   :  { %2711 = vmatprep.subr.bf16.mxu0 %v6684_v34  ;;  %v7434_v34 = vld [vmem:[#allocation12 + $0x464] ss:$28 sps:$4 sm:$0xff]  }
 0x2d2   :  { %2669 = vmatpush2.bf16.msra.mxu1 %v6555_v39  ;;  %v7413_v39 = vld [vmem:[#allocation12 + $0xac] ss:$28 sps:$4 sm:$0xff]  }
 0x2d3   :  { %2712 = vmatpush2.bf16.msra.mxu0 %v6683_v40  ;;  %2670 = vmatprep.subr.bf16.mxu1 %v6548_v41  ;;  %v7432_v40 = vld [vmem:[#allocation12 + $0x460] ss:$28 sps:$4 sm:$0xff]  }
 0x2d4   :  { %2713 = vmatprep.subr.bf16.mxu0 %v6676_v42  ;;  %v7440_v42 = vld [vmem:[#allocation12 + $0x42c] ss:$28 sps:$4 sm:$0xff]  }
 0x2d6   :  { %2671 = vmatpush2.bf16.msra.mxu1 %v6547_v47 }
 0x2d7   :  { %2714 = vmatpush2.bf16.msra.mxu0 %v6675_v48  ;;  %2672 = vmatprep.subr.bf16.mxu1 %v6540_v49  ;;  %v7446_v48 = vld [vmem:[#allocation12 + $0x3f4] ss:$28 sps:$4 sm:$0xff]  }
 0x2d8   :  { %2715 = vmatprep.subr.bf16.mxu0 %v6668_v50  ;;  %v7417_v49 = vld [vmem:[#allocation12 + $0x70] ss:$28 sps:$4 sm:$0xff]   ;;  %v7425_v50 = vld [vmem:[#allocation12 + $0x3c] ss:$28 sps:$4 sm:$0xff]  }
 0x2da   :  { %2673 = vmatpush2.bf16.msra.mxu1 %v6539_v57  ;;  %v7450_v57 = vld [vmem:[#allocation12 + $0x3b8] ss:$28 sps:$4 sm:$0xff]  }
 0x2db   :  { %2716 = vmatpush2.bf16.msra.mxu0 %v6667_v58  ;;  %2674 = vmatprep.subr.bf16.mxu1 %v6532_v59  ;;  %v7458_v58 = vld [vmem:[#allocation12 + $0x384] ss:$28 sps:$4 sm:$0xff]  }
 0x2dc   :  { %2717 = vmatprep.subr.bf16.mxu0 %v6660_v60  ;;  %v7429_v59 = vld [vmem:[#allocation12] ss:$28 sps:$4 sm:$0xff]   ;;  %v7437_v60 = vld [vmem:[#allocation12 + $0x34c] ss:$28 sps:$4 sm:$0xff]  }
 0x2de   :  { %2675 = vmatpush2.bf16.msra.mxu1 %v6531_v1  ;;  %v7462_v1 = vld [vmem:[#allocation12 + $0x6c8] ss:$28 sps:$4 sm:$0xff]  }
 0x2df   :  { %2718 = vmatpush2.bf16.msra.mxu0 %v6659_v2  ;;  %2676 = vmatprep.subr.bf16.mxu1 %v6524_v3  ;;  %v7470_v2 = vld [vmem:[#allocation12 + $0x694] ss:$28 sps:$4 sm:$0xff]  }
 0x2e0   :  { %2719 = vmatprep.subr.bf16.mxu0 %v6652_v4  ;;  %v7441_v3 = vld [vmem:[#allocation12 + $0x310] ss:$28 sps:$4 sm:$0xff]   ;;  %v7449_v4 = vld [vmem:[#allocation12 + $0x2dc] ss:$28 sps:$4 sm:$0xff]  }
 0x2e2   :  { %2677 = vmatpush2.bf16.msra.mxu1 %v6523_v5  ;;  %v7468_v5 = vld [vmem:[#allocation12 + $0x690] ss:$28 sps:$4 sm:$0xff]  }
 0x2e3   :  { %2720 = vmatpush2.bf16.msra.mxu0 %v6651_v6  ;;  %5617 = vmatprep.subr.bf16.mxu1 %v7401_v7  ;;  %v7476_v6 = vld [vmem:[#allocation12 + $0x65c] ss:$28 sps:$4 sm:$0xff]  }
 0x2e4   :  { %5660 = vmatprep.subr.bf16.mxu0 %v7416_v8  ;;  %v7447_v7 = vld [vmem:[#allocation12 + $0x2d8] ss:$28 sps:$4 sm:$0xff]   ;;  %v7455_v8 = vld [vmem:[#allocation12 + $0x2a4] ss:$28 sps:$4 sm:$0xff]  }
 0x2e5   :  { %2679 = vmatmul.mubr.bf16.vlgmr.msra.gmra.mxu1 %v8369_v31  ;;  %v8388_v14 = vpop.f32.mrf.mxu1  ;;  %v8390_v15 = vpop.f32.mrf.mxu0  ;;  %v7428_v31 = vld [vmem:[#allocation12 + $0x49c] ss:$28 sps:$4 sm:$0xff]  }
 0x2e6   :  { %2722 = vmatmul.mubr.bf16.vlgmr.msra.gmra.mxu0 %v8371_v32  ;;  %5618 = vmatpush1.bf16.msra.mxu1 %v7399_v9  ;;  %v7405_v32 = vld [vmem:[#allocation12 + $0x118] ss:$28 sps:$4 sm:$0xff]  }
 0x2e7   :  { %v2424_v18 = vpop.f32.mrf.mxu1  ;;  %v2467_v19 = vpop.f32.mrf.mxu0  ;;  %5619 = vmatprep.subr.bf16.mxu1 %v7404_v10  ;;  %5661 = vmatpush1.bf16.msra.mxu0 %v7414_v11  ;;  %v7474_v9 = vld [vmem:[#allocation12 + $0x658] ss:$28 sps:$4 sm:$0xff]   ;;  %v7482_v10 = vld [vmem:[#allocation12 + $0x624] ss:$28 sps:$4 sm:$0xff]  }
 0x2e8   :  { %5662 = vmatprep.subr.bf16.mxu0 %v7422_v12  ;;  %v2425_v23 = vadd.f32 %v2424_v18, %v1075_v16  ;;  %v7453_v11 = vld [vmem:[#allocation12 + $0x2a0] ss:$28 sps:$4 sm:$0xff]   ;;  %v7461_v12 = vld [vmem:[#allocation12 + $0x26c] ss:$28 sps:$4 sm:$0xff]   ;;  %v1071_v18 = vrot.slane %v8386_v13, %v8334_v28 }
 0x2e9   :  { %v8395_v24 = vpop.f32.mrf.mxu1  ;;  %v8397_v22 = vpop.f32.mrf.mxu0 }
 0x2ea   :  { %5620 = vmatpush1.bf16.msra.mxu1 %v7402_v17  ;;  %v2468_v36 = vadd.f32 %v2467_v19, %v2425_v23  ;;  %v7485_v17 = vld [vmem:[#allocation12 + $0x5ec] ss:$28 sps:$4 sm:$0xff]   ;;  %v7488_v23 = vld [vmem:[#allocation12 + $0x5b4] ss:$28 sps:$4 sm:$0xff]  }
 0x2eb   :  { %v2428_v26 = vpop.f32.mrf.mxu1  ;;  %5621 = vmatprep.subr.bf16.mxu1 %v7407_v20  ;;  %5663 = vmatpush1.bf16.msra.mxu0 %v7420_v21  ;;  %v2471_v35 = vpop.f32.mrf.mxu0  ;;  %v7459_v19 = vld [vmem:[#allocation12 + $0x268] ss:$28 sps:$4 sm:$0xff]   ;;  %v7467_v20 = vld [vmem:[#allocation12 + $0x234] ss:$28 sps:$4 sm:$0xff]  }
 0x2ec   :  { %v2429_v33 = vadd.f32 %v2428_v26, %v1075_v16  ;;  %5664 = vmatprep.subr.bf16.mxu0 %v7428_v31  ;;  %v7480_v16 = vld [vmem:[#allocation12 + $0x620] ss:$28 sps:$4 sm:$0xff]   ;;  %v7483_v21 = vld [vmem:[#allocation12 + $0x5e8] ss:$28 sps:$4 sm:$0xff]   ;;  %v2427_v31 = vadd.f32 %v8395_v24, %v1071_v18  ;;  %v7465_v26 = vld [vmem:[#allocation12 + $0x230] ss:$28 sps:$4 sm:$0xff]  }
 0x2ed   :  { %v7479_v24 = vld [vmem:[#allocation12 + $0x1c4] ss:$28 sps:$4 sm:$0xff]  }
 0x2ee   :  { %v2472_v37 = vadd.f32 %v2471_v35, %v2429_v33  ;;  %5622 = vmatpush1.bf16.msra.mxu1 %v7405_v32  ;;  %v2423_v32 = vadd.f32 %v8388_v14, %v1071_v18  ;;  %v2470_v33 = vadd.f32 %v8397_v22, %v2427_v31  ;;  %v7494_v14 = vld [vmem:[#allocation12 + $0x544] ss:$28 sps:$4 sm:$0xff]   ;;  %v7515_v31 = vld [vmem:[#allocation12 + $0x73c] ss:$28 sps:$4 sm:$0xff]  }
 0x2ef   :  { %5623 = vmatprep.subr.bf16.mxu1 %v7410_v30  ;;  %5665 = vmatpush1.bf16.msra.mxu0 %v7426_v25  ;;  %v7473_v30 = vld [vmem:[#allocation12 + $0x1fc] ss:$28 sps:$4 sm:$0xff]   ;;  %v7486_v25 = vld [vmem:[#allocation12 + $0x5b0] ss:$28 sps:$4 sm:$0xff]  }
 0x2f0   :  { %v2733_v41 = vpack.c.bf16 %v2472_v37, %v2468_v36  ;;  %5666 = vmatprep.subr.bf16.mxu0 %v7434_v34  ;;  %v7491_v34 = vld [vmem:[#allocation12 + $0x57c] ss:$28 sps:$4 sm:$0xff]   ;;  %v2466_v35 = vadd.f32 %v8390_v15, %v2423_v32  ;;  %v7495_v15 = vld [vmem:[#allocation12 + $0x888] ss:$28 sps:$4 sm:$0xff]  }
 0x2f1   :  { %v7471_v36 = vld [vmem:[#allocation12 + $0x1f8] ss:$28 sps:$4 sm:$0xff]  }
 0x2f2   :  { %v2749_v43 = vmul.bf16 1045249613, %v2733_v41  ;;  %5624 = vmatpush1.bf16.msra.mxu1 %v7408_v38  ;;  %vm2741_vm6 = vcmp.ge.bf16.partialorder %v2733_v41, 0  ;;  %v7489_v37 = vld [vmem:[#allocation12 + $0x578] ss:$28 sps:$4 sm:$0xff]   ;;  %v2732_v38 = vpack.c.bf16 %v2470_v33, %v2466_v35 }
 0x2f3   :  { %5625 = vmatprep.subr.bf16.mxu1 %v7413_v39  ;;  %5667 = vmatpush1.bf16.msra.mxu0 %v7432_v40  ;;  %v7477_v39 = vld [vmem:[#allocation12 + $0x1c0] ss:$28 sps:$4 sm:$0xff]   ;;  %v7521_v35 = vld [vmem:[#allocation12 + $0xa4c] ss:$28 sps:$4 sm:$0xff]  }
 0x2f4   :  { %v8399_v47 = vsel %vm2741_vm6, %v2733_v41, %v2749_v43  ;;  %5668 = vmatprep.subr.bf16.mxu0 %v7440_v42  ;;  %v7492_v40 = vld [vmem:[#allocation12 + $0x540] ss:$28 sps:$4 sm:$0xff]   ;;  %v7497_v41 = vld [vmem:[#allocation12 + $0x88c] ss:$28 sps:$4 sm:$0xff]   ;;  %v2748_v22 = vmul.bf16 1045249613, %v2732_v38 }
 0x2f5   :  { %5649 = vmatprep.mubr.bf16.mxu1 %v8399_v47  ;;  %v7545_v42 = vld [vmem:[#allocation12 + $0xc0c] ss:$28 sps:$4 sm:$0xff]   ;;  %vm2740_vm7 = vcmp.ge.bf16.partialorder %v2732_v38, 0  ;;  %v7500_v43 = vld [vmem:[#allocation12 + $0x854] ss:$28 sps:$4 sm:$0xff]  }
 0x2f6   :  { %5626 = vmatpush1.bf16.msra.mxu1 %v7411_v44  ;;  %v1079_v44 = vrot.slane %v8386_v13, %v8354_v53  ;;  %v7557_v32 = vld [vmem:[#allocation12 + $0xb9c] ss:$28 sps:$4 sm:$0xff]   ;;  %v7563_v33 = vld [vmem:[#allocation12 + $0xb64] ss:$28 sps:$4 sm:$0xff]  }
 0x2f7   :  { %5627 = vmatprep.subr.bf16.mxu1 %v7419_v45  ;;  %5669 = vmatpush1.bf16.msra.mxu0 %v7438_v46  ;;  %v8410_v45 = vsel %vm2740_vm7, %v2732_v38, %v2748_v22  ;;  %v7524_v38 = vld [vmem:[#allocation12 + $0xa14] ss:$28 sps:$4 sm:$0xff]  }
 0x2f8   :  { %5670 = vmatprep.subr.bf16.mxu0 %v7446_v48  ;;  %v7573_v22 = vld [vmem:[#allocation12 + $0xaf0] ss:$28 sps:$4 sm:$0xff]  }
 0x2fa   :  { %5628 = vmatpush1.bf16.msra.mxu1 %v7417_v49  ;;  %v1083_v49 = vrot.slane %v8386_v13, %v8357_v55 }
 0x2fb   :  { %5629 = vmatprep.subr.bf16.mxu1 %v7425_v50  ;;  %5671 = vmatpush1.bf16.msra.mxu0 %v7444_v51  ;;  %v7498_v50 = vld [vmem:[#allocation12 + $0x850] ss:$28 sps:$4 sm:$0xff]  }
 0x2fc   :  { %5672 = vmatprep.subr.bf16.mxu0 %v7452_v52 }
 0x2fe   :  { %5630 = vmatpush1.bf16.msra.mxu1 %v7423_v54  ;;  %v7503_v54 = vld [vmem:[#allocation12 + $0x81c] ss:$28 sps:$4 sm:$0xff]  }
 0x2ff   :  { %5631 = vmatprep.subr.bf16.mxu1 %v7431_v56  ;;  %5673 = vmatpush1.bf16.msra.mxu0 %v7450_v57 }
 0x300   :  { %5674 = vmatprep.subr.bf16.mxu0 %v7458_v58 }
 0x302   :  { %5632 = vmatpush1.bf16.msra.mxu1 %v7429_v59 }
 0x303   :  { %5633 = vmatprep.subr.bf16.mxu1 %v7437_v60  ;;  %5675 = vmatpush1.bf16.msra.mxu0 %v7456_v61  ;;  %v7501_v61 = vld [vmem:[#allocation12 + $0x818] ss:$28 sps:$4 sm:$0xff]  }
 0x304   :  { %5676 = vmatprep.subr.bf16.mxu0 %v7464_v62 }
 0x306   :  { %5634 = vmatpush2.bf16.msra.mxu1 %v7435_v63  ;;  %v7506_v63 = vld [vmem:[#allocation12 + $0x7e4] ss:$28 sps:$4 sm:$0xff]  }
 0x307   :  { %5635 = vmatprep.subr.bf16.mxu1 %v7443_v0  ;;  %5677 = vmatpush2.bf16.msra.mxu0 %v7462_v1 }
 0x308   :  { %5678 = vmatprep.subr.bf16.mxu0 %v7470_v2 }
 0x30a   :  { %5636 = vmatpush2.bf16.msra.mxu1 %v7441_v3 }
 0x30b   :  { %5637 = vmatprep.subr.bf16.mxu1 %v7449_v4  ;;  %5679 = vmatpush2.bf16.msra.mxu0 %v7468_v5 }
 0x30c   :  { %5680 = vmatprep.subr.bf16.mxu0 %v7476_v6 }
 0x30e   :  { %5638 = vmatpush2.bf16.msra.mxu1 %v7447_v7  ;;  %v7504_v7 = vld [vmem:[#allocation12 + $0x7e0] ss:$28 sps:$4 sm:$0xff]  }
 0x30f   :  { %5639 = vmatprep.subr.bf16.mxu1 %v7455_v8  ;;  %5681 = vmatpush2.bf16.msra.mxu0 %v7474_v9  ;;  %v7509_v8 = vld [vmem:[#allocation12 + $0x7ac] ss:$28 sps:$4 sm:$0xff]  }
 0x310   :  { %5682 = vmatprep.subr.bf16.mxu0 %v7482_v10 }
 0x312   :  { %5640 = vmatpush2.bf16.msra.mxu1 %v7453_v11 }
 0x313   :  { %5641 = vmatprep.subr.bf16.mxu1 %v7461_v12  ;;  %5683 = vmatpush2.bf16.msra.mxu0 %v7480_v16  ;;  %v7507_v12 = vld [vmem:[#allocation12 + $0x7a8] ss:$28 sps:$4 sm:$0xff]   ;;  %v7512_v16 = vld [vmem:[#allocation12 + $0x774] ss:$28 sps:$4 sm:$0xff]  }
 0x314   :  { %5684 = vmatprep.subr.bf16.mxu0 %v7485_v17  ;;  %v7543_v17 = vld [vmem:[#allocation12 + $0xc08] ss:$28 sps:$4 sm:$0xff]  }
 0x316   :  { %5642 = vmatpush2.bf16.msra.mxu1 %v7459_v19  ;;  %v7551_v19 = vld [vmem:[#allocation12 + $0xbd4] ss:$28 sps:$4 sm:$0xff]  }
 0x317   :  { %5643 = vmatprep.subr.bf16.mxu1 %v7467_v20  ;;  %5685 = vmatpush2.bf16.msra.mxu0 %v7483_v21  ;;  %v7510_v21 = vld [vmem:[#allocation12 + $0x770] ss:$28 sps:$4 sm:$0xff]  }
 0x318   :  { %5686 = vmatprep.subr.bf16.mxu0 %v7488_v23  ;;  %v7549_v23 = vld [vmem:[#allocation12 + $0xbd0] ss:$28 sps:$4 sm:$0xff]  }
 0x31a   :  { %5644 = vmatpush2.bf16.msra.mxu1 %v7465_v26  ;;  %v7513_v26 = vld [vmem:[#allocation12 + $0x738] ss:$28 sps:$4 sm:$0xff]  }
 0x31b   :  { %5645 = vmatprep.subr.bf16.mxu1 %v7473_v30  ;;  %5687 = vmatpush2.bf16.msra.mxu0 %v7486_v25  ;;  %v7518_v30 = vld [vmem:[#allocation12 + $0x704] ss:$28 sps:$4 sm:$0xff]   ;;  %v7555_v25 = vld [vmem:[#allocation12 + $0xb98] ss:$28 sps:$4 sm:$0xff]  }
 0x31c   :  { %5688 = vmatprep.subr.bf16.mxu0 %v7491_v34  ;;  %v7516_v34 = vld [vmem:[#allocation12 + $0x700] ss:$28 sps:$4 sm:$0xff]  }
 0x31e   :  { %5646 = vmatpush2.bf16.msra.mxu1 %v7471_v36  ;;  %v7561_v36 = vld [vmem:[#allocation12 + $0xb60] ss:$28 sps:$4 sm:$0xff]  }
 0x31f   :  { %5647 = vmatprep.subr.bf16.mxu1 %v7479_v24  ;;  %5689 = vmatpush2.bf16.msra.mxu0 %v7489_v37  ;;  %v7569_v24 = vld [vmem:[#allocation12 + $0xb2c] ss:$28 sps:$4 sm:$0xff]  }
 0x320   :  { %5690 = vmatprep.subr.bf16.mxu0 %v7494_v14  ;;  %v7519_v37 = vld [vmem:[#allocation12 + $0xa48] ss:$28 sps:$4 sm:$0xff]  }
 0x321   :  { %v7567_v14 = vld [vmem:[#allocation12 + $0xb28] ss:$28 sps:$4 sm:$0xff]  }
 0x322   :  { %5648 = vmatpush2.bf16.msra.mxu1 %v7477_v39  ;;  %v7575_v39 = vld [vmem:[#allocation12 + $0xaf4] ss:$28 sps:$4 sm:$0xff]  }
 0x323   :  { %5691 = vmatpush2.bf16.msra.mxu0 %v7492_v40  ;;  %5703 = vmatprep.subr.bf16.mxu1 %v7497_v41  ;;  %v7522_v40 = vld [vmem:[#allocation12 + $0xa10] ss:$28 sps:$4 sm:$0xff]   ;;  %v7527_v41 = vld [vmem:[#allocation12 + $0x9dc] ss:$28 sps:$4 sm:$0xff]  }
 0x324   :  { %5746 = vmatprep.subr.bf16.mxu0 %v7545_v42  ;;  %v7581_v42 = vld [vmem:[#allocation12 + $0xabc] ss:$28 sps:$4 sm:$0xff]  }
 0x325   :  { %v2508_v46 = vpop.f32.mrf.mxu1  ;;  %v2551_v48 = vpop.f32.mrf.mxu0  ;;  %5650 = vmatmul.mubr.bf16.vlgmr.msra.gmra.mxu1 %v8410_v45 }
 0x326   :  { %5704 = vmatpush1.bf16.msra.mxu1 %v7495_v15  ;;  %v2509_v56 = vadd.f32 %v2508_v46, %v1079_v44  ;;  %v7525_v15 = vld [vmem:[#allocation12 + $0x9d8] ss:$28 sps:$4 sm:$0xff]   ;;  %v7587_v46 = vld [vmem:[#allocation12 + $0xa84] ss:$28 sps:$4 sm:$0xff]  }
 0x327   :  { %v2510_v51 = vpop.f32.mrf.mxu1  ;;  %v2553_v52 = vpop.f32.mrf.mxu0  ;;  %5705 = vmatprep.subr.bf16.mxu1 %v7500_v43  ;;  %v7530_v43 = vld [vmem:[#allocation12 + $0x9a4] ss:$28 sps:$4 sm:$0xff]  }
 0x328   :  { %v2511_v59 = vadd.f32 %v2510_v51, %v1083_v49  ;;  %v2552_v0 = vadd.f32 %v2551_v48, %v2509_v56  ;;  %v7528_v48 = vld [vmem:[#allocation12 + $0x9a0] ss:$28 sps:$4 sm:$0xff]   ;;  %v7593_v51 = vld [vmem:[#allocation12 + $0xdcc] ss:$28 sps:$4 sm:$0xff]  }
 0x329   :  { %v2512_v57 = vpop.f32.mrf.mxu1  ;;  %v2555_v58 = vpop.f32.mrf.mxu0  ;;  %v7591_v56 = vld [vmem:[#allocation12 + $0xdc8] ss:$28 sps:$4 sm:$0xff]  }
 0x32a   :  { %v2513_v60 = vadd.f32 %v2512_v57, %v1079_v44  ;;  %5706 = vmatpush1.bf16.msra.mxu1 %v7498_v50  ;;  %v2554_v4 = vadd.f32 %v2553_v52, %v2511_v59  ;;  %v7579_v44 = vld [vmem:[#allocation12 + $0xab8] ss:$28 sps:$4 sm:$0xff]   ;;  %v7585_v50 = vld [vmem:[#allocation12 + $0xa80] ss:$28 sps:$4 sm:$0xff]   ;;  %v7531_v52 = vld [vmem:[#allocation12 + $0x968] ss:$28 sps:$4 sm:$0xff]  }
 0x32b   :  { %v2514_v62 = vpop.f32.mrf.mxu1  ;;  %5707 = vmatprep.subr.bf16.mxu1 %v7503_v54  ;;  %v2557_v3 = vpop.f32.mrf.mxu0  ;;  %v7536_v54 = vld [vmem:[#allocation12 + $0x934] ss:$28 sps:$4 sm:$0xff]   ;;  %v7539_v59 = vld [vmem:[#allocation12 + $0x8fc] ss:$28 sps:$4 sm:$0xff]  }
 0x32c   :  { %v2556_v1 = vadd.f32 %v2555_v58, %v2513_v60  ;;  %v2515_v2 = vadd.f32 %v2514_v62, %v1083_v49  ;;  %v7533_v49 = vld [vmem:[#allocation12 + $0x96c] ss:$28 sps:$4 sm:$0xff]   ;;  %v7599_v57 = vld [vmem:[#allocation12 + $0xd94] ss:$28 sps:$4 sm:$0xff]  }
 0x32d   :  { %v7534_v58 = vld [vmem:[#allocation12 + $0x930] ss:$28 sps:$4 sm:$0xff]   ;;  %v7537_v62 = vld [vmem:[#allocation12 + $0x8f8] ss:$28 sps:$4 sm:$0xff]  }
 0x32e   :  { %v2734_v5 = vpack.c.bf16 %v2556_v1, %v2552_v0  ;;  %v2558_v6 = vadd.f32 %v2557_v3, %v2515_v2  ;;  %5708 = vmatpush1.bf16.msra.mxu1 %v7501_v61  ;;  %v7597_v60 = vld [vmem:[#allocation12 + $0xd90] ss:$28 sps:$4 sm:$0xff]   ;;  %v7605_v61 = vld [vmem:[#allocation12 + $0xd5c] ss:$28 sps:$4 sm:$0xff]   ;;  %v7611_v1 = vld [vmem:[#allocation12 + $0xd24] ss:$28 sps:$4 sm:$0xff]  }
 0x32f   :  { %5709 = vmatprep.subr.bf16.mxu1 %v7506_v63  ;;  %v7542_v63 = vld [vmem:[#allocation12 + $0x8c4] ss:$28 sps:$4 sm:$0xff]   ;;  %v7603_v0 = vld [vmem:[#allocation12 + $0xd58] ss:$28 sps:$4 sm:$0xff]  }
 0x330   :  { %v2735_v9 = vpack.c.bf16 %v2558_v6, %v2554_v4  ;;  %v2750_v10 = vmul.bf16 1045249613, %v2734_v5  ;;  %vm2742_vm9 = vcmp.ge.bf16.partialorder %v2734_v5, 0  ;;  %v7540_v2 = vld [vmem:[#allocation12 + $0x8c0] ss:$28 sps:$4 sm:$0xff]  }
 0x331   :  { %v7548_v3 = vld [vmem:[#allocation12 + $0x194] ss:$28 sps:$4 sm:$0xff]   ;;  %v7609_v4 = vld [vmem:[#allocation12 + $0xd20] ss:$28 sps:$4 sm:$0xff]   ;;  %v7617_v6 = vld [vmem:[#allocation12 + $0xcec] ss:$28 sps:$4 sm:$0xff]  }
 0x332   :  { %v2751_v11 = vmul.bf16 1045249613, %v2735_v9  ;;  %vm2743_vm8 = vcmp.ge.bf16.partialorder %v2735_v9, 0  ;;  %5710 = vmatpush1.bf16.msra.mxu1 %v7504_v7  ;;  %v8418_v20 = vsel %vm2742_vm9, %v2734_v5, %v2750_v10  ;;  %v1086_v5 = vsub.s32 4, %v8331_v27  ;;  %v7623_v10 = vld [vmem:[#allocation12 + $0xcb4] ss:$28 sps:$4 sm:$0xff]  }
 0x333   :  { %5711 = vmatprep.subr.bf16.mxu1 %v7509_v8  ;;  %v1090_v7 = vsub.s32 5, %v8331_v27  ;;  %v7615_v8 = vld [vmem:[#allocation12 + $0xce8] ss:$28 sps:$4 sm:$0xff]  }
 0x334   :  { %v8415_v18 = vsel %vm2743_vm8, %v2735_v9, %v2751_v11  ;;  %v1087_v9 = vrot.slane %v8386_v13, %v1086_v5 }
 0x335   :  { %5692 = vmatprep.mubr.bf16.mxu0 %v8415_v18 }
 0x336   :  { %5693 = vmatmul.mubr.bf16.vlgmr.msra.gmra.mxu0 %v8418_v20  ;;  %5712 = vmatpush1.bf16.msra.mxu1 %v7507_v12 }
 0x337   :  { %5713 = vmatprep.subr.bf16.mxu1 %v7512_v16  ;;  %5747 = vmatpush1.bf16.msra.mxu0 %v7543_v17  ;;  %v1091_v16 = vrot.slane %v8386_v13, %v1090_v7 }
 0x338   :  { %5748 = vmatprep.subr.bf16.mxu0 %v7551_v19  ;;  %v7621_v19 = vld [vmem:[#allocation12 + $0xcb0] ss:$28 sps:$4 sm:$0xff]  }
 0x33a   :  { %5714 = vmatpush1.bf16.msra.mxu1 %v7510_v21 }
 0x33b   :  { %5715 = vmatprep.subr.bf16.mxu1 %v7515_v31  ;;  %5749 = vmatpush1.bf16.msra.mxu0 %v7549_v23  ;;  %v7629_v23 = vld [vmem:[#allocation12 + $0xc7c] ss:$28 sps:$4 sm:$0xff]  }
 0x33c   :  { %5750 = vmatprep.subr.bf16.mxu0 %v7557_v32 }
 0x33e   :  { %5716 = vmatpush1.bf16.msra.mxu1 %v7513_v26 }
 0x33f   :  { %5717 = vmatprep.subr.bf16.mxu1 %v7518_v30  ;;  %5751 = vmatpush1.bf16.msra.mxu0 %v7555_v25 }
 0x340   :  { %5752 = vmatprep.subr.bf16.mxu0 %v7563_v33 }
 0x342   :  { %5718 = vmatpush1.bf16.msra.mxu1 %v7516_v34  ;;  %v7627_v34 = vld [vmem:[#allocation12 + $0xc78] ss:$28 sps:$4 sm:$0xff]  }
 0x343   :  { %5719 = vmatprep.subr.bf16.mxu1 %v7521_v35  ;;  %5753 = vmatpush1.bf16.msra.mxu0 %v7561_v36 }
 0x344   :  { %5754 = vmatprep.subr.bf16.mxu0 %v7569_v24 }
 0x346   :  { %5720 = vmatpush2.bf16.msra.mxu1 %v7519_v37  ;;  %v7635_v37 = vld [vmem:[#allocation12 + $0xc44] ss:$28 sps:$4 sm:$0xff]  }
 0x347   :  { %5721 = vmatprep.subr.bf16.mxu1 %v7524_v38  ;;  %5755 = vmatpush1.bf16.msra.mxu0 %v7567_v14 }
 0x348   :  { %5756 = vmatprep.subr.bf16.mxu0 %v7575_v39 }
 0x34a   :  { %5722 = vmatpush2.bf16.msra.mxu1 %v7522_v40 }
 0x34b   :  { %5723 = vmatprep.subr.bf16.mxu1 %v7527_v41  ;;  %5757 = vmatpush1.bf16.msra.mxu0 %v7573_v22  ;;  %v7633_v41 = vld [vmem:[#allocation12 + $0xc40] ss:$28 sps:$4 sm:$0xff]  }
 0x34c   :  { %5758 = vmatprep.subr.bf16.mxu0 %v7581_v42  ;;  %v7641_v42 = vld [vmem:[#allocation12 + $0x514] ss:$28 sps:$4 sm:$0xff]  }
 0x34e   :  { %5724 = vmatpush2.bf16.msra.mxu1 %v7525_v15 }
 0x34f   :  { %5725 = vmatprep.subr.bf16.mxu1 %v7530_v43  ;;  %5759 = vmatpush1.bf16.msra.mxu0 %v7579_v44  ;;  %v7546_v44 = vld [vmem:[#allocation12 + $0x190] ss:$28 sps:$4 sm:$0xff]  }
 0x350   :  { %5760 = vmatprep.subr.bf16.mxu0 %v7587_v46 }
 0x352   :  { %5726 = vmatpush2.bf16.msra.mxu1 %v7528_v48  ;;  %v7554_v48 = vld [vmem:[#allocation12 + $0x15c] ss:$28 sps:$4 sm:$0xff]  }
 0x353   :  { %5727 = vmatprep.subr.bf16.mxu1 %v7533_v49  ;;  %5761 = vmatpush1.bf16.msra.mxu0 %v7585_v50  ;;  %v7552_v50 = vld [vmem:[#allocation12 + $0x158] ss:$28 sps:$4 sm:$0xff]  }
 0x354   :  { %5762 = vmatprep.subr.bf16.mxu0 %v7593_v51  ;;  %v7560_v51 = vld [vmem:[#allocation12 + $0x124] ss:$28 sps:$4 sm:$0xff]  }
 0x356   :  { %5728 = vmatpush2.bf16.msra.mxu1 %v7531_v52  ;;  %v7558_v52 = vld [vmem:[#allocation12 + $0x120] ss:$28 sps:$4 sm:$0xff]  }
 0x357   :  { %5729 = vmatprep.subr.bf16.mxu1 %v7536_v54  ;;  %5763 = vmatpush2.bf16.msra.mxu0 %v7591_v56  ;;  %v7566_v54 = vld [vmem:[#allocation12 + $0xec] ss:$28 sps:$4 sm:$0xff]  }
 0x358   :  { %5764 = vmatprep.subr.bf16.mxu0 %v7599_v57  ;;  %v7564_v56 = vld [vmem:[#allocation12 + $0xe8] ss:$28 sps:$4 sm:$0xff]   ;;  %v7572_v57 = vld [vmem:[#allocation12 + $0xb4] ss:$28 sps:$4 sm:$0xff]  }
 0x35a   :  { %5730 = vmatpush2.bf16.msra.mxu1 %v7534_v58  ;;  %v7570_v58 = vld [vmem:[#allocation12 + $0xb0] ss:$28 sps:$4 sm:$0xff]  }
 0x35b   :  { %5731 = vmatprep.subr.bf16.mxu1 %v7539_v59  ;;  %5765 = vmatpush2.bf16.msra.mxu0 %v7597_v60  ;;  %v7578_v59 = vld [vmem:[#allocation12 + $0x7c] ss:$28 sps:$4 sm:$0xff]  }
 0x35c   :  { %5766 = vmatprep.subr.bf16.mxu0 %v7605_v61  ;;  %v7576_v60 = vld [vmem:[#allocation12 + $0x78] ss:$28 sps:$4 sm:$0xff]   ;;  %v7584_v61 = vld [vmem:[#allocation12 + $0x44] ss:$28 sps:$4 sm:$0xff]  }
 0x35e   :  { %5732 = vmatpush2.bf16.msra.mxu1 %v7537_v62  ;;  %v7582_v62 = vld [vmem:[#allocation12 + $0x40] ss:$28 sps:$4 sm:$0xff]  }
 0x35f   :  { %5733 = vmatprep.subr.bf16.mxu1 %v7542_v63  ;;  %5767 = vmatpush2.bf16.msra.mxu0 %v7603_v0  ;;  %v7590_v63 = vld [vmem:[#allocation12 + $0xc] ss:$28 sps:$4 sm:$0xff]  }
 0x360   :  { %5768 = vmatprep.subr.bf16.mxu0 %v7611_v1  ;;  %v7588_v0 = vld [vmem:[#allocation12 + $0x8] ss:$28 sps:$4 sm:$0xff]   ;;  %v7596_v1 = vld [vmem:[#allocation12 + $0x354] ss:$28 sps:$4 sm:$0xff]  }
 0x362   :  { %5734 = vmatpush2.bf16.msra.mxu1 %v7540_v2  ;;  %v7594_v2 = vld [vmem:[#allocation12 + $0x350] ss:$28 sps:$4 sm:$0xff]  }
 0x363   :  { %5789 = vmatprep.subr.bf16.mxu1 %v7548_v3  ;;  %5769 = vmatpush2.bf16.msra.mxu0 %v7609_v4  ;;  %v7602_v3 = vld [vmem:[#allocation12 + $0x31c] ss:$28 sps:$4 sm:$0xff]  }
 0x364   :  { %5770 = vmatprep.subr.bf16.mxu0 %v7617_v6  ;;  %v7600_v4 = vld [vmem:[#allocation12 + $0x318] ss:$28 sps:$4 sm:$0xff]   ;;  %v7608_v6 = vld [vmem:[#allocation12 + $0x2e4] ss:$28 sps:$4 sm:$0xff]  }
 0x365   :  { %v2594_v11 = vpop.f32.mrf.mxu1 }
 0x366   :  { %v2637_v12 = vpop.f32.mrf.mxu0  ;;  %v2595_v21 = vadd.f32 %v2594_v11, %v1087_v9  ;;  %v1094_v11 = vsub.s32 6, %v8331_v27 }
 0x367   :  { %v2596_v17 = vpop.f32.mrf.mxu1  ;;  %5771 = vmatpush2.bf16.msra.mxu0 %v7615_v8  ;;  %v7606_v8 = vld [vmem:[#allocation12 + $0x2e0] ss:$28 sps:$4 sm:$0xff]  }
 0x368   :  { %v2639_v31 = vpop.f32.mrf.mxu0  ;;  %5772 = vmatprep.subr.bf16.mxu0 %v7623_v10  ;;  %v2597_v26 = vadd.f32 %v2596_v17, %v1091_v16  ;;  %v2638_v35 = vadd.f32 %v2637_v12, %v2595_v21  ;;  %v7612_v10 = vld [vmem:[#allocation12 + $0x2a8] ss:$28 sps:$4 sm:$0xff]   ;;  %v7620_v12 = vld [vmem:[#allocation12 + $0x274] ss:$28 sps:$4 sm:$0xff]   ;;  %v7626_v21 = vld [vmem:[#allocation12 + $0x23c] ss:$28 sps:$4 sm:$0xff]  }
 0x369   :  { %v2598_v32 = vpop.f32.mrf.mxu1  ;;  %v7618_v17 = vld [vmem:[#allocation12 + $0x270] ss:$28 sps:$4 sm:$0xff]  }
 0x36a   :  { %v2599_v30 = vadd.f32 %v2598_v32, %v1087_v9  ;;  %v2641_v25 = vpop.f32.mrf.mxu0  ;;  %v2640_v14 = vadd.f32 %v2639_v31, %v2597_v26  ;;  %v7614_v9 = vld [vmem:[#allocation12 + $0x2ac] ss:$28 sps:$4 sm:$0xff]  }
 0x36b   :  { %v2600_v33 = vpop.f32.mrf.mxu1  ;;  %5773 = vmatpush2.bf16.msra.mxu0 %v7621_v19  ;;  %v1095_v19 = vrot.slane %v8386_v13, %v1094_v11 }
 0x36c   :  { %v2642_v36 = vadd.f32 %v2641_v25, %v2599_v30  ;;  %v2601_v24 = vadd.f32 %v2600_v33, %v1091_v16  ;;  %5774 = vmatprep.subr.bf16.mxu0 %v7629_v23  ;;  %v2643_v38 = vpop.f32.mrf.mxu0  ;;  %v1098_v16 = vsub.s32 7, %v8331_v27  ;;  %v7624_v30 = vld [vmem:[#allocation12 + $0x238] ss:$28 sps:$4 sm:$0xff]  }
 0x36e   :  { %v2736_v39 = vpack.c.bf16 %v2642_v36, %v2638_v35  ;;  %v2644_v40 = vadd.f32 %v2643_v38, %v2601_v24  ;;  %v1099_v32 = vrot.slane %v8386_v13, %v1098_v16  ;;  %v7666_v16 = vld [vmem:[#allocation12 + $0x7b0] ss:$28 sps:$4 sm:$0xff]  }
 0x36f   :  { %5775 = vmatpush2.bf16.msra.mxu0 %v7627_v34  ;;  %v7632_v34 = vld [vmem:[#allocation12 + $0x204] ss:$28 sps:$4 sm:$0xff]  }
 0x370   :  { %v2737_v22 = vpack.c.bf16 %v2644_v40, %v2640_v14  ;;  %5776 = vmatprep.subr.bf16.mxu0 %v7635_v37  ;;  %v2752_v15 = vmul.bf16 1045249613, %v2736_v39  ;;  %vm2744_vm11 = vcmp.ge.bf16.partialorder %v2736_v39, 0  ;;  %v7630_v14 = vld [vmem:[#allocation12 + $0x200] ss:$28 sps:$4 sm:$0xff]  }
 0x372   :  { %v2753_v43 = vmul.bf16 1045249613, %v2737_v22  ;;  %vm2745_vm10 = vcmp.ge.bf16.partialorder %v2737_v22, 0  ;;  %v8432_v49 = vsel %vm2744_vm11, %v2736_v39, %v2752_v15 }
 0x373   :  { %5777 = vmatpush2.bf16.msra.mxu0 %v7633_v41 }
 0x374   :  { %v8429_v46 = vsel %vm2745_vm10, %v2737_v22, %v2753_v43  ;;  %5832 = vmatprep.subr.bf16.mxu0 %v7641_v42  ;;  %v7638_v22 = vld [vmem:[#allocation12 + $0x1cc] ss:$28 sps:$4 sm:$0xff]  }
 0x375   :  { %5735 = vmatprep.mubr.bf16.mxu1 %v8429_v46 }
 0x376   :  { %5736 = vmatmul.mubr.bf16.vlgmr.msra.gmra.mxu1 %v8432_v49 }
 0x377   :  { %5790 = vmatpush1.bf16.msra.mxu1 %v7546_v44  ;;  %5821 = vmatprep.mubr.bf16.mxu1 %v8399_v47  ;;  %v7636_v44 = vld [vmem:[#allocation12 + $0x1c8] ss:$28 sps:$4 sm:$0xff]  }
 0x378   :  { %5791 = vmatprep.subr.bf16.mxu1 %v7554_v48 }
 0x37b   :  { %5792 = vmatpush1.bf16.msra.mxu1 %v7552_v50  ;;  %v7644_v50 = vld [vmem:[#allocation12 + $0x894] ss:$28 sps:$4 sm:$0xff]  }
 0x37c   :  { %5793 = vmatprep.subr.bf16.mxu1 %v7560_v51 }
 0x37f   :  { %5794 = vmatpush1.bf16.msra.mxu1 %v7558_v52 }
 0x380   :  { %5795 = vmatprep.subr.bf16.mxu1 %v7566_v54  ;;  %v7639_v54 = vld [vmem:[#allocation12 + $0x510] ss:$28 sps:$4 sm:$0xff]  }
 0x383   :  { %5796 = vmatpush1.bf16.msra.mxu1 %v7564_v56  ;;  %v7642_v56 = vld [vmem:[#allocation12 + $0x890] ss:$28 sps:$4 sm:$0xff]  }
 0x384   :  { %5797 = vmatprep.subr.bf16.mxu1 %v7572_v57 }
 0x387   :  { %5798 = vmatpush1.bf16.msra.mxu1 %v7570_v58 }
 0x388   :  { %5799 = vmatprep.subr.bf16.mxu1 %v7578_v59  ;;  %v7647_v59 = vld [vmem:[#allocation12 + $0x4dc] ss:$28 sps:$4 sm:$0xff]  }
 0x38b   :  { %5800 = vmatpush1.bf16.msra.mxu1 %v7576_v60  ;;  %v7650_v60 = vld [vmem:[#allocation12 + $0x85c] ss:$28 sps:$4 sm:$0xff]  }
 0x38c   :  { %5801 = vmatprep.subr.bf16.mxu1 %v7584_v61  ;;  %v7645_v61 = vld [vmem:[#allocation12 + $0x4d8] ss:$28 sps:$4 sm:$0xff]  }
 0x38f   :  { %5802 = vmatpush1.bf16.msra.mxu1 %v7582_v62  ;;  %v7648_v62 = vld [vmem:[#allocation12 + $0x858] ss:$28 sps:$4 sm:$0xff]  }
 0x390   :  { %5803 = vmatprep.subr.bf16.mxu1 %v7590_v63  ;;  %v7653_v63 = vld [vmem:[#allocation12 + $0x4a4] ss:$28 sps:$4 sm:$0xff]  }
 0x393   :  { %5804 = vmatpush1.bf16.msra.mxu1 %v7588_v0  ;;  %v7656_v0 = vld [vmem:[#allocation12 + $0x824] ss:$28 sps:$4 sm:$0xff]  }
 0x394   :  { %5805 = vmatprep.subr.bf16.mxu1 %v7596_v1  ;;  %v7651_v1 = vld [vmem:[#allocation12 + $0x4a0] ss:$28 sps:$4 sm:$0xff]  }
 0x397   :  { %5806 = vmatpush2.bf16.msra.mxu1 %v7594_v2  ;;  %v7654_v2 = vld [vmem:[#allocation12 + $0x820] ss:$28 sps:$4 sm:$0xff]  }
 0x398   :  { %5807 = vmatprep.subr.bf16.mxu1 %v7602_v3  ;;  %v7659_v3 = vld [vmem:[#allocation12 + $0x46c] ss:$28 sps:$4 sm:$0xff]  }
 0x39b   :  { %5808 = vmatpush2.bf16.msra.mxu1 %v7600_v4  ;;  %v7662_v4 = vld [vmem:[#allocation12 + $0x7ec] ss:$28 sps:$4 sm:$0xff]  }
 0x39c   :  { %5809 = vmatprep.subr.bf16.mxu1 %v7608_v6  ;;  %v7657_v6 = vld [vmem:[#allocation12 + $0x468] ss:$28 sps:$4 sm:$0xff]  }
 0x39f   :  { %5810 = vmatpush2.bf16.msra.mxu1 %v7606_v8  ;;  %v7660_v8 = vld [vmem:[#allocation12 + $0x7e8] ss:$28 sps:$4 sm:$0xff]  }
 0x3a0   :  { %5811 = vmatprep.subr.bf16.mxu1 %v7614_v9  ;;  %v7665_v9 = vld [vmem:[#allocation12 + $0x434] ss:$28 sps:$4 sm:$0xff]  }
 0x3a3   :  { %5812 = vmatpush2.bf16.msra.mxu1 %v7612_v10  ;;  %v7668_v10 = vld [vmem:[#allocation12 + $0x7b4] ss:$28 sps:$4 sm:$0xff]  }
 0x3a4   :  { %5813 = vmatprep.subr.bf16.mxu1 %v7620_v12  ;;  %v7663_v12 = vld [vmem:[#allocation12 + $0x430] ss:$28 sps:$4 sm:$0xff]  }
 0x3a5   :  { %v2680_v31 = vpop.f32.mrf.mxu1 }
 0x3a6   :  { %v2723_v23 = vpop.f32.mrf.mxu0  ;;  %v2681_v25 = vadd.f32 %v2680_v31, %v1095_v19  ;;  %v7672_v31 = vld [vmem:[#allocation12 + $0x778] ss:$28 sps:$4 sm:$0xff]  }
 0x3a7   :  { %5814 = vmatpush2.bf16.msra.mxu1 %v7618_v17  ;;  %v2682_v26 = vpop.f32.mrf.mxu1  ;;  %v7671_v17 = vld [vmem:[#allocation12 + $0x3fc] ss:$28 sps:$4 sm:$0xff]  }
 0x3a8   :  { %v2725_v33 = vpop.f32.mrf.mxu0  ;;  %5815 = vmatprep.subr.bf16.mxu1 %v7626_v21  ;;  %v2683_v36 = vadd.f32 %v2682_v26, %v1099_v32  ;;  %v2724_v39 = vadd.f32 %v2723_v23, %v2681_v25  ;;  %v7669_v21 = vld [vmem:[#allocation12 + $0x3f8] ss:$28 sps:$4 sm:$0xff]   ;;  %v7677_v23 = vld [vmem:[#allocation12 + $0x3c4] ss:$28 sps:$4 sm:$0xff]   ;;  %v7683_v25 = vld [vmem:[#allocation12 + $0x38c] ss:$28 sps:$4 sm:$0xff]  }
 0x3a9   :  { %v2684_v35 = vpop.f32.mrf.mxu1  ;;  %v7675_v26 = vld [vmem:[#allocation12 + $0x3c0] ss:$28 sps:$4 sm:$0xff]  }
 0x3aa   :  { %v2685_v24 = vadd.f32 %v2684_v35, %v1095_v19  ;;  %v2727_v37 = vpop.f32.mrf.mxu0  ;;  %v2726_v42 = vadd.f32 %v2725_v33, %v2683_v36  ;;  %v7674_v19 = vld [vmem:[#allocation12 + $0x77c] ss:$28 sps:$4 sm:$0xff]   ;;  %v7686_v33 = vld [vmem:[#allocation12 + $0x70c] ss:$28 sps:$4 sm:$0xff]   ;;  %v7689_v36 = vld [vmem:[#allocation12 + $0x6d4] ss:$28 sps:$4 sm:$0xff]  }
 0x3ab   :  { %5816 = vmatpush2.bf16.msra.mxu1 %v7624_v30  ;;  %v2686_v38 = vpop.f32.mrf.mxu1  ;;  %v7678_v30 = vld [vmem:[#allocation12 + $0x740] ss:$28 sps:$4 sm:$0xff]   ;;  %v7684_v35 = vld [vmem:[#allocation12 + $0x708] ss:$28 sps:$4 sm:$0xff]  }
 0x3ac   :  { %v2728_v40 = vadd.f32 %v2727_v37, %v2685_v24  ;;  %v2687_v41 = vadd.f32 %v2686_v38, %v1099_v32  ;;  %5817 = vmatprep.subr.bf16.mxu1 %v7632_v34  ;;  %v2729_v13 = vpop.f32.mrf.mxu0  ;;  %v7680_v32 = vld [vmem:[#allocation12 + $0x744] ss:$28 sps:$4 sm:$0xff]   ;;  %v7692_v24 = vld [vmem:[#allocation12 + $0xa54] ss:$28 sps:$4 sm:$0xff]  }
 0x3ad   :  { %v7681_v34 = vld [vmem:[#allocation12 + $0x388] ss:$28 sps:$4 sm:$0xff]   ;;  %v7687_v37 = vld [vmem:[#allocation12 + $0x6d0] ss:$28 sps:$4 sm:$0xff]  }
 0x3ae   :  { %v2738_v15 = vpack.c.bf16 %v2728_v40, %v2724_v39  ;;  %v2730_v43 = vadd.f32 %v2729_v13, %v2687_v41  ;;  %v7690_v38 = vld [vmem:[#allocation12 + $0xa50] ss:$28 sps:$4 sm:$0xff]   ;;  %v7698_v39 = vld [vmem:[#allocation12 + $0xa1c] ss:$28 sps:$4 sm:$0xff]   ;;  %v7704_v13 = vld [vmem:[#allocation12 + $0x9e4] ss:$28 sps:$4 sm:$0xff]  }
 0x3af   :  { %5818 = vmatpush2.bf16.msra.mxu1 %v7630_v14  ;;  %v7695_v14 = vld [vmem:[#allocation12 + $0x69c] ss:$28 sps:$4 sm:$0xff]  }
 0x3b0   :  { %v2739_v48 = vpack.c.bf16 %v2730_v43, %v2726_v42  ;;  %5819 = vmatprep.subr.bf16.mxu1 %v7638_v22  ;;  %v2754_v51 = vmul.bf16 1045249613, %v2738_v15  ;;  %vm2746_vm13 = vcmp.ge.bf16.partialorder %v2738_v15, 0  ;;  %v7693_v40 = vld [vmem:[#allocation12 + $0x698] ss:$28 sps:$4 sm:$0xff]  }
 0x3b1   :  { %v7696_v41 = vld [vmem:[#allocation12 + $0xa18] ss:$28 sps:$4 sm:$0xff]   ;;  %v7701_v22 = vld [vmem:[#allocation12 + $0x664] ss:$28 sps:$4 sm:$0xff]   ;;  %v7707_v43 = vld [vmem:[#allocation12 + $0x62c] ss:$28 sps:$4 sm:$0xff]  }
 0x3b2   :  { %v2755_v52 = vmul.bf16 1045249613, %v2739_v48  ;;  %vm2747_vm12 = vcmp.ge.bf16.partialorder %v2739_v48, 0  ;;  %v8445_v58 = vsel %vm2746_vm13, %v2738_v15, %v2754_v51  ;;  %v7699_v42 = vld [vmem:[#allocation12 + $0x660] ss:$28 sps:$4 sm:$0xff]  }
 0x3b3   :  { %5820 = vmatpush2.bf16.msra.mxu1 %v7636_v44  ;;  %v7702_v15 = vld [vmem:[#allocation12 + $0x9e0] ss:$28 sps:$4 sm:$0xff]   ;;  %v7710_v44 = vld [vmem:[#allocation12 + $0x9ac] ss:$28 sps:$4 sm:$0xff]   ;;  %v7713_v51 = vld [vmem:[#allocation12 + $0x5f4] ss:$28 sps:$4 sm:$0xff]  }
 0x3b4   :  { %v8442_v57 = vsel %vm2747_vm12, %v2739_v48, %v2755_v52  ;;  %5875 = vmatprep.subr.bf16.mxu1 %v7644_v50  ;;  %v7705_v48 = vld [vmem:[#allocation12 + $0x628] ss:$28 sps:$4 sm:$0xff]   ;;  %v7716_v52 = vld [vmem:[#allocation12 + $0x974] ss:$28 sps:$4 sm:$0xff]  }
 0x3b5   :  { %5778 = vmatprep.mubr.bf16.mxu0 %v8442_v57  ;;  %v7708_v50 = vld [vmem:[#allocation12 + $0x9a8] ss:$28 sps:$4 sm:$0xff]  }
 0x3b6   :  { %5822 = vmatmul.mubr.bf16.vlgmr.msra.gmra.mxu1 %v8410_v45  ;;  %5779 = vmatmul.mubr.bf16.vlgmr.msra.gmra.mxu0 %v8445_v58 }
 0x3b7   :  { %5833 = vmatpush1.bf16.msra.mxu0 %v7639_v54  ;;  %5876 = vmatpush1.bf16.msra.mxu1 %v7642_v56  ;;  %v7711_v54 = vld [vmem:[#allocation12 + $0x5f0] ss:$28 sps:$4 sm:$0xff]  }
 0x3b8   :  { %5907 = vmatprep.mubr.bf16.mxu1 %v8429_v46  ;;  %5864 = vmatprep.mubr.bf16.mxu0 %v8415_v18  ;;  %v7714_v56 = vld [vmem:[#allocation12 + $0x970] ss:$28 sps:$4 sm:$0xff]  }
 0x3b9   :  { %5834 = vmatprep.subr.bf16.mxu0 %v7647_v59  ;;  %5877 = vmatprep.subr.bf16.mxu1 %v7650_v60  ;;  %v7719_v59 = vld [vmem:[#allocation12 + $0x5bc] ss:$28 sps:$4 sm:$0xff]  }
 0x3ba   :  { %v7722_v60 = vld [vmem:[#allocation12 + $0x93c] ss:$28 sps:$4 sm:$0xff]  }
 0x3bb   :  { %5835 = vmatpush1.bf16.msra.mxu0 %v7645_v61  ;;  %5878 = vmatpush1.bf16.msra.mxu1 %v7648_v62  ;;  %v7717_v61 = vld [vmem:[#allocation12 + $0x5b8] ss:$28 sps:$4 sm:$0xff]  }
 0x3bc   :  { %5836 = vmatprep.subr.bf16.mxu0 %v7653_v63  ;;  %5879 = vmatprep.subr.bf16.mxu1 %v7656_v0  ;;  %v7720_v62 = vld [vmem:[#allocation12 + $0x938] ss:$28 sps:$4 sm:$0xff]   ;;  %v7725_v63 = vld [vmem:[#allocation12 + $0x584] ss:$28 sps:$4 sm:$0xff]  }
 0x3bd   :  { %v7728_v0 = vld [vmem:[#allocation12 + $0x904] ss:$28 sps:$4 sm:$0xff]  }
 0x3bf   :  { %5837 = vmatpush1.bf16.msra.mxu0 %v7651_v1  ;;  %5880 = vmatpush1.bf16.msra.mxu1 %v7654_v2  ;;  %v7723_v1 = vld [vmem:[#allocation12 + $0x580] ss:$28 sps:$4 sm:$0xff]  }
 0x3c0   :  { %5838 = vmatprep.subr.bf16.mxu0 %v7659_v3  ;;  %5881 = vmatprep.subr.bf16.mxu1 %v7662_v4  ;;  %v7726_v2 = vld [vmem:[#allocation12 + $0x900] ss:$28 sps:$4 sm:$0xff]   ;;  %v7731_v3 = vld [vmem:[#allocation12 + $0x54c] ss:$28 sps:$4 sm:$0xff]  }
 0x3c1   :  { %v7734_v4 = vld [vmem:[#allocation12 + $0x8cc] ss:$28 sps:$4 sm:$0xff]  }
 0x3c3   :  { %5839 = vmatpush1.bf16.msra.mxu0 %v7657_v6  ;;  %5882 = vmatpush1.bf16.msra.mxu1 %v7660_v8  ;;  %v7729_v6 = vld [vmem:[#allocation12 + $0x548] ss:$28 sps:$4 sm:$0xff]  }
 0x3c4   :  { %5840 = vmatprep.subr.bf16.mxu0 %v7665_v9  ;;  %5883 = vmatprep.subr.bf16.mxu1 %v7668_v10  ;;  %v7732_v8 = vld [vmem:[#allocation12 + $0x8c8] ss:$28 sps:$4 sm:$0xff]   ;;  %v7737_v9 = vld [vmem:[#allocation12 + $0xc14] ss:$28 sps:$4 sm:$0xff]   ;;  %v7740_v10 = vld [vmem:[#allocation12 + $0x19c] ss:$28 sps:$4 sm:$0xff]  }
 0x3c7   :  { %5841 = vmatpush1.bf16.msra.mxu0 %v7663_v12  ;;  %5884 = vmatpush1.bf16.msra.mxu1 %v7666_v16  ;;  %v7735_v12 = vld [vmem:[#allocation12 + $0xc10] ss:$28 sps:$4 sm:$0xff]   ;;  %v7738_v16 = vld [vmem:[#allocation12 + $0x198] ss:$28 sps:$4 sm:$0xff]  }
 0x3c8   :  { %5842 = vmatprep.subr.bf16.mxu0 %v7671_v17  ;;  %5885 = vmatprep.subr.bf16.mxu1 %v7674_v19  ;;  %v7743_v17 = vld [vmem:[#allocation12 + $0xbdc] ss:$28 sps:$4 sm:$0xff]   ;;  %v7746_v19 = vld [vmem:[#allocation12 + $0x164] ss:$28 sps:$4 sm:$0xff]  }
 0x3cb   :  { %5843 = vmatpush1.bf16.msra.mxu0 %v7669_v21  ;;  %5886 = vmatpush1.bf16.msra.mxu1 %v7672_v31  ;;  %v7741_v21 = vld [vmem:[#allocation12 + $0xbd8] ss:$28 sps:$4 sm:$0xff]   ;;  %v7744_v31 = vld [vmem:[#allocation12 + $0x160] ss:$28 sps:$4 sm:$0xff]  }
 0x3cc   :  { %5844 = vmatprep.subr.bf16.mxu0 %v7677_v23  ;;  %5887 = vmatprep.subr.bf16.mxu1 %v7680_v32  ;;  %v7749_v23 = vld [vmem:[#allocation12 + $0xba4] ss:$28 sps:$4 sm:$0xff]   ;;  %v7752_v32 = vld [vmem:[#allocation12 + $0x12c] ss:$28 sps:$4 sm:$0xff]  }
 0x3cf   :  { %5845 = vmatpush1.bf16.msra.mxu0 %v7675_v26  ;;  %5888 = vmatpush1.bf16.msra.mxu1 %v7678_v30  ;;  %v7747_v26 = vld [vmem:[#allocation12 + $0xba0] ss:$28 sps:$4 sm:$0xff]   ;;  %v7750_v30 = vld [vmem:[#allocation12 + $0x128] ss:$28 sps:$4 sm:$0xff]  }
 0x3d0   :  { %5846 = vmatprep.subr.bf16.mxu0 %v7683_v25  ;;  %5889 = vmatprep.subr.bf16.mxu1 %v7686_v33  ;;  %v7755_v25 = vld [vmem:[#allocation12 + $0xb6c] ss:$28 sps:$4 sm:$0xff]   ;;  %v7758_v33 = vld [vmem:[#allocation12 + $0xf4] ss:$28 sps:$4 sm:$0xff]  }
 0x3d3   :  { %5847 = vmatpush1.bf16.msra.mxu0 %v7681_v34  ;;  %5890 = vmatpush1.bf16.msra.mxu1 %v7684_v35  ;;  %v7753_v34 = vld [vmem:[#allocation12 + $0xb68] ss:$28 sps:$4 sm:$0xff]   ;;  %v7756_v35 = vld [vmem:[#allocation12 + $0xf0] ss:$28 sps:$4 sm:$0xff]  }
 0x3d4   :  { %5848 = vmatprep.subr.bf16.mxu0 %v7689_v36  ;;  %5891 = vmatprep.subr.bf16.mxu1 %v7692_v24  ;;  %v7761_v36 = vld [vmem:[#allocation12 + $0xb34] ss:$28 sps:$4 sm:$0xff]   ;;  %v7764_v24 = vld [vmem:[#allocation12 + $0xbc] ss:$28 sps:$4 sm:$0xff]  }
 0x3d7   :  { %5849 = vmatpush2.bf16.msra.mxu0 %v7687_v37  ;;  %5892 = vmatpush2.bf16.msra.mxu1 %v7690_v38  ;;  %v7759_v37 = vld [vmem:[#allocation12 + $0xb30] ss:$28 sps:$4 sm:$0xff]   ;;  %v7762_v38 = vld [vmem:[#allocation12 + $0xb8] ss:$28 sps:$4 sm:$0xff]  }
 0x3d8   :  { %5850 = vmatprep.subr.bf16.mxu0 %v7695_v14  ;;  %5893 = vmatprep.subr.bf16.mxu1 %v7698_v39  ;;  %v7767_v14 = vld [vmem:[#allocation12 + $0xafc] ss:$28 sps:$4 sm:$0xff]   ;;  %v7770_v39 = vld [vmem:[#allocation12 + $0x84] ss:$28 sps:$4 sm:$0xff]  }
 0x3db   :  { %5851 = vmatpush2.bf16.msra.mxu0 %v7693_v40  ;;  %5894 = vmatpush2.bf16.msra.mxu1 %v7696_v41  ;;  %v7765_v40 = vld [vmem:[#allocation12 + $0xaf8] ss:$28 sps:$4 sm:$0xff]   ;;  %v7768_v41 = vld [vmem:[#allocation12 + $0x80] ss:$28 sps:$4 sm:$0xff]  }
 0x3dc   :  { %5852 = vmatprep.subr.bf16.mxu0 %v7701_v22  ;;  %5895 = vmatprep.subr.bf16.mxu1 %v7704_v13  ;;  %v7773_v22 = vld [vmem:[#allocation12 + $0xac4] ss:$28 sps:$4 sm:$0xff]   ;;  %v7776_v13 = vld [vmem:[#allocation12 + $0x4c] ss:$28 sps:$4 sm:$0xff]  }
 0x3df   :  { %5853 = vmatpush2.bf16.msra.mxu0 %v7699_v42  ;;  %5896 = vmatpush2.bf16.msra.mxu1 %v7702_v15  ;;  %v7771_v42 = vld [vmem:[#allocation12 + $0xac0] ss:$28 sps:$4 sm:$0xff]   ;;  %v7774_v15 = vld [vmem:[#allocation12 + $0x48] ss:$28 sps:$4 sm:$0xff]  }
 0x3e0   :  { %5854 = vmatprep.subr.bf16.mxu0 %v7707_v43  ;;  %5897 = vmatprep.subr.bf16.mxu1 %v7710_v44  ;;  %v7779_v43 = vld [vmem:[#allocation12 + $0xa8c] ss:$28 sps:$4 sm:$0xff]   ;;  %v7782_v44 = vld [vmem:[#allocation12 + $0x14] ss:$28 sps:$4 sm:$0xff]  }
 0x3e3   :  { %5855 = vmatpush2.bf16.msra.mxu0 %v7705_v48  ;;  %5898 = vmatpush2.bf16.msra.mxu1 %v7708_v50  ;;  %v7777_v48 = vld [vmem:[#allocation12 + $0xa88] ss:$28 sps:$4 sm:$0xff]   ;;  %v7780_v50 = vld [vmem:[#allocation12 + $0x10] ss:$28 sps:$4 sm:$0xff]  }
 0x3e4   :  { %5856 = vmatprep.subr.bf16.mxu0 %v7713_v51  ;;  %5899 = vmatprep.subr.bf16.mxu1 %v7716_v52  ;;  %v7785_v51 = vld [vmem:[#allocation12 + $0xdd4] ss:$28 sps:$4 sm:$0xff]   ;;  %v7788_v52 = vld [vmem:[#allocation12 + $0x35c] ss:$28 sps:$4 sm:$0xff]  }
 0x3e7   :  { %5857 = vmatpush2.bf16.msra.mxu0 %v7711_v54  ;;  %5900 = vmatpush2.bf16.msra.mxu1 %v7714_v56  ;;  %v7783_v54 = vld [vmem:[#allocation12 + $0xdd0] ss:$28 sps:$4 sm:$0xff]   ;;  %v7786_v56 = vld [vmem:[#allocation12 + $0x358] ss:$28 sps:$4 sm:$0xff]  }
 0x3e8   :  { %5858 = vmatprep.subr.bf16.mxu0 %v7719_v59  ;;  %5901 = vmatprep.subr.bf16.mxu1 %v7722_v60  ;;  %v7791_v59 = vld [vmem:[#allocation12 + $0xd9c] ss:$28 sps:$4 sm:$0xff]   ;;  %v7794_v60 = vld [vmem:[#allocation12 + $0x324] ss:$28 sps:$4 sm:$0xff]  }
 0x3eb   :  { %5859 = vmatpush2.bf16.msra.mxu0 %v7717_v61  ;;  %5902 = vmatpush2.bf16.msra.mxu1 %v7720_v62  ;;  %v7789_v61 = vld [vmem:[#allocation12 + $0xd98] ss:$28 sps:$4 sm:$0xff]   ;;  %v7792_v62 = vld [vmem:[#allocation12 + $0x320] ss:$28 sps:$4 sm:$0xff]  }
 0x3ec   :  { %5860 = vmatprep.subr.bf16.mxu0 %v7725_v63  ;;  %5903 = vmatprep.subr.bf16.mxu1 %v7728_v0  ;;  %v7797_v63 = vld [vmem:[#allocation12 + $0xd64] ss:$28 sps:$4 sm:$0xff]   ;;  %v7800_v0 = vld [vmem:[#allocation12 + $0x2ec] ss:$28 sps:$4 sm:$0xff]  }
 0x3ef   :  { %5861 = vmatpush2.bf16.msra.mxu0 %v7723_v1  ;;  %5904 = vmatpush2.bf16.msra.mxu1 %v7726_v2  ;;  %v7795_v1 = vld [vmem:[#allocation12 + $0xd60] ss:$28 sps:$4 sm:$0xff]   ;;  %v7798_v2 = vld [vmem:[#allocation12 + $0x2e8] ss:$28 sps:$4 sm:$0xff]  }
 0x3f0   :  { %5862 = vmatprep.subr.bf16.mxu0 %v7731_v3  ;;  %5905 = vmatprep.subr.bf16.mxu1 %v7734_v4  ;;  %v7803_v3 = vld [vmem:[#allocation12 + $0xd2c] ss:$28 sps:$4 sm:$0xff]   ;;  %v7806_v4 = vld [vmem:[#allocation12 + $0x2b4] ss:$28 sps:$4 sm:$0xff]  }
 0x3f3   :  { %5863 = vmatpush2.bf16.msra.mxu0 %v7729_v6  ;;  %5906 = vmatpush2.bf16.msra.mxu1 %v7732_v8  ;;  %v7801_v6 = vld [vmem:[#allocation12 + $0xd28] ss:$28 sps:$4 sm:$0xff]   ;;  %v7804_v8 = vld [vmem:[#allocation12 + $0x2b0] ss:$28 sps:$4 sm:$0xff]  }
 0x3f4   :  { %5918 = vmatprep.subr.bf16.mxu0 %v7737_v9  ;;  %5961 = vmatprep.subr.bf16.mxu1 %v7740_v10  ;;  %v7809_v9 = vld [vmem:[#allocation12 + $0xcf4] ss:$28 sps:$4 sm:$0xff]   ;;  %v7812_v10 = vld [vmem:[#allocation12 + $0x27c] ss:$28 sps:$4 sm:$0xff]  }
 0x3f6   :  { %5865 = vmatmul.mubr.bf16.vlgmr.msra.gmra.mxu0 %v8418_v20  ;;  %5908 = vmatmul.mubr.bf16.vlgmr.msra.gmra.mxu1 %v8432_v49 }
 0x3f7   :  { %5919 = vmatpush1.bf16.msra.mxu0 %v7735_v12  ;;  %5950 = vmatprep.mubr.bf16.mxu0 %v8442_v57  ;;  %v7807_v12 = vld [vmem:[#allocation12 + $0xcf0] ss:$28 sps:$4 sm:$0xff]  }
 0x3f8   :  { %5962 = vmatpush1.bf16.msra.mxu1 %v7738_v16  ;;  %5993 = vmatprep.mubr.bf16.mxu1 %v8399_v47  ;;  %v7810_v16 = vld [vmem:[#allocation12 + $0x278] ss:$28 sps:$4 sm:$0xff]  }
 0x3f9   :  { %5920 = vmatprep.subr.bf16.mxu0 %v7743_v17  ;;  %5963 = vmatprep.subr.bf16.mxu1 %v7746_v19  ;;  %v7815_v17 = vld [vmem:[#allocation12 + $0xcbc] ss:$28 sps:$4 sm:$0xff]   ;;  %v7818_v19 = vld [vmem:[#allocation12 + $0x244] ss:$28 sps:$4 sm:$0xff]  }
 0x3fb   :  { %5921 = vmatpush1.bf16.msra.mxu0 %v7741_v21  ;;  %v7813_v21 = vld [vmem:[#allocation12 + $0xcb8] ss:$28 sps:$4 sm:$0xff]  }
 0x3fc   :  { %5964 = vmatpush1.bf16.msra.mxu1 %v7744_v31  ;;  %5922 = vmatprep.subr.bf16.mxu0 %v7749_v23  ;;  %v7816_v31 = vld [vmem:[#allocation12 + $0x240] ss:$28 sps:$4 sm:$0xff]  }
 0x3fd   :  { %5965 = vmatprep.subr.bf16.mxu1 %v7752_v32  ;;  %v7821_v23 = vld [vmem:[#allocation12 + $0xc84] ss:$28 sps:$4 sm:$0xff]   ;;  %v7824_v32 = vld [vmem:[#allocation12 + $0x20c] ss:$28 sps:$4 sm:$0xff]  }
 0x3ff   :  { %5923 = vmatpush1.bf16.msra.mxu0 %v7747_v26  ;;  %v7819_v26 = vld [vmem:[#allocation12 + $0xc80] ss:$28 sps:$4 sm:$0xff]  }
 0x400   :  { %5966 = vmatpush1.bf16.msra.mxu1 %v7750_v30  ;;  %5924 = vmatprep.subr.bf16.mxu0 %v7755_v25  ;;  %v7822_v30 = vld [vmem:[#allocation12 + $0x208] ss:$28 sps:$4 sm:$0xff]  }
 0x401   :  { %5967 = vmatprep.subr.bf16.mxu1 %v7758_v33  ;;  %v7827_v25 = vld [vmem:[#allocation12 + $0xc4c] ss:$28 sps:$4 sm:$0xff]   ;;  %v7830_v33 = vld [vmem:[#allocation12 + $0x1d4] ss:$28 sps:$4 sm:$0xff]  }
 0x403   :  { %5925 = vmatpush1.bf16.msra.mxu0 %v7753_v34  ;;  %v7825_v34 = vld [vmem:[#allocation12 + $0xc48] ss:$28 sps:$4 sm:$0xff]  }
 0x404   :  { %5968 = vmatpush1.bf16.msra.mxu1 %v7756_v35  ;;  %5926 = vmatprep.subr.bf16.mxu0 %v7761_v36  ;;  %v7828_v35 = vld [vmem:[#allocation12 + $0x1d0] ss:$28 sps:$4 sm:$0xff]   ;;  %v7833_v36 = vld [vmem:[#allocation12 + $0x51c] ss:$28 sps:$4 sm:$0xff]  }
 0x405   :  { %5969 = vmatprep.subr.bf16.mxu1 %v7764_v24  ;;  %v7836_v24 = vld [vmem:[#allocation12 + $0x89c] ss:$28 sps:$4 sm:$0xff]  }
 0x407   :  { %5927 = vmatpush1.bf16.msra.mxu0 %v7759_v37  ;;  %v7831_v37 = vld [vmem:[#allocation12 + $0x518] ss:$28 sps:$4 sm:$0xff]  }
 0x408   :  { %5970 = vmatpush1.bf16.msra.mxu1 %v7762_v38  ;;  %5928 = vmatprep.subr.bf16.mxu0 %v7767_v14  ;;  %v7834_v38 = vld [vmem:[#allocation12 + $0x898] ss:$28 sps:$4 sm:$0xff]   ;;  %v7839_v14 = vld [vmem:[#allocation12 + $0x4e4] ss:$28 sps:$4 sm:$0xff]  }
 0x409   :  { %5971 = vmatprep.subr.bf16.mxu1 %v7770_v39  ;;  %v7842_v39 = vld [vmem:[#allocation12 + $0x864] ss:$28 sps:$4 sm:$0xff]  }
 0x40b   :  { %5929 = vmatpush1.bf16.msra.mxu0 %v7765_v40  ;;  %v7837_v40 = vld [vmem:[#allocation12 + $0x4e0] ss:$28 sps:$4 sm:$0xff]  }
 0x40c   :  { %5972 = vmatpush1.bf16.msra.mxu1 %v7768_v41  ;;  %5930 = vmatprep.subr.bf16.mxu0 %v7773_v22  ;;  %v7840_v41 = vld [vmem:[#allocation12 + $0x860] ss:$28 sps:$4 sm:$0xff]   ;;  %v7845_v22 = vld [vmem:[#allocation12 + $0x4ac] ss:$28 sps:$4 sm:$0xff]  }
 0x40d   :  { %5973 = vmatprep.subr.bf16.mxu1 %v7776_v13  ;;  %v7848_v13 = vld [vmem:[#allocation12 + $0x82c] ss:$28 sps:$4 sm:$0xff]  }
 0x40f   :  { %5931 = vmatpush1.bf16.msra.mxu0 %v7771_v42  ;;  %v7843_v42 = vld [vmem:[#allocation12 + $0x4a8] ss:$28 sps:$4 sm:$0xff]  }
 0x410   :  { %5974 = vmatpush1.bf16.msra.mxu1 %v7774_v15  ;;  %5932 = vmatprep.subr.bf16.mxu0 %v7779_v43  ;;  %v7846_v15 = vld [vmem:[#allocation12 + $0x828] ss:$28 sps:$4 sm:$0xff]   ;;  %v7851_v43 = vld [vmem:[#allocation12 + $0x474] ss:$28 sps:$4 sm:$0xff]  }
 0x411   :  { %5975 = vmatprep.subr.bf16.mxu1 %v7782_v44  ;;  %v7854_v44 = vld [vmem:[#allocation12 + $0x7f4] ss:$28 sps:$4 sm:$0xff]  }
 0x413   :  { %5933 = vmatpush1.bf16.msra.mxu0 %v7777_v48  ;;  %v7849_v48 = vld [vmem:[#allocation12 + $0x470] ss:$28 sps:$4 sm:$0xff]  }
 0x414   :  { %5976 = vmatpush1.bf16.msra.mxu1 %v7780_v50  ;;  %5934 = vmatprep.subr.bf16.mxu0 %v7785_v51  ;;  %v7852_v50 = vld [vmem:[#allocation12 + $0x7f0] ss:$28 sps:$4 sm:$0xff]   ;;  %v7857_v51 = vld [vmem:[#allocation12 + $0x43c] ss:$28 sps:$4 sm:$0xff]  }
 0x415   :  { %5977 = vmatprep.subr.bf16.mxu1 %v7788_v52  ;;  %v7860_v52 = vld [vmem:[#allocation12 + $0x7bc] ss:$28 sps:$4 sm:$0xff]  }
 0x417   :  { %5935 = vmatpush2.bf16.msra.mxu0 %v7783_v54  ;;  %v7855_v54 = vld [vmem:[#allocation12 + $0x438] ss:$28 sps:$4 sm:$0xff]  }
 0x418   :  { %5978 = vmatpush2.bf16.msra.mxu1 %v7786_v56  ;;  %5936 = vmatprep.subr.bf16.mxu0 %v7791_v59  ;;  %v7858_v56 = vld [vmem:[#allocation12 + $0x7b8] ss:$28 sps:$4 sm:$0xff]   ;;  %v7863_v59 = vld [vmem:[#allocation12 + $0x404] ss:$28 sps:$4 sm:$0xff]  }
 0x419   :  { %5979 = vmatprep.subr.bf16.mxu1 %v7794_v60  ;;  %v7866_v60 = vld [vmem:[#allocation12 + $0x784] ss:$28 sps:$4 sm:$0xff]  }
 0x41b   :  { %5937 = vmatpush2.bf16.msra.mxu0 %v7789_v61  ;;  %v7861_v61 = vld [vmem:[#allocation12 + $0x400] ss:$28 sps:$4 sm:$0xff]  }
 0x41c   :  { %5980 = vmatpush2.bf16.msra.mxu1 %v7792_v62  ;;  %5938 = vmatprep.subr.bf16.mxu0 %v7797_v63  ;;  %v7864_v62 = vld [vmem:[#allocation12 + $0x780] ss:$28 sps:$4 sm:$0xff]   ;;  %v7869_v63 = vld [vmem:[#allocation12 + $0x3cc] ss:$28 sps:$4 sm:$0xff]  }
 0x41d   :  { %5981 = vmatprep.subr.bf16.mxu1 %v7800_v0  ;;  %v7872_v0 = vld [vmem:[#allocation12 + $0x74c] ss:$28 sps:$4 sm:$0xff]  }
 0x41f   :  { %5939 = vmatpush2.bf16.msra.mxu0 %v7795_v1  ;;  %v7867_v1 = vld [vmem:[#allocation12 + $0x3c8] ss:$28 sps:$4 sm:$0xff]  }
 0x420   :  { %5982 = vmatpush2.bf16.msra.mxu1 %v7798_v2  ;;  %5940 = vmatprep.subr.bf16.mxu0 %v7803_v3  ;;  %v7870_v2 = vld [vmem:[#allocation12 + $0x748] ss:$28 sps:$4 sm:$0xff]   ;;  %v7875_v3 = vld [vmem:[#allocation12 + $0x394] ss:$28 sps:$4 sm:$0xff]  }
 0x421   :  { %5983 = vmatprep.subr.bf16.mxu1 %v7806_v4  ;;  %v7878_v4 = vld [vmem:[#allocation12 + $0x714] ss:$28 sps:$4 sm:$0xff]  }
 0x423   :  { %5941 = vmatpush2.bf16.msra.mxu0 %v7801_v6  ;;  %v7873_v6 = vld [vmem:[#allocation12 + $0x390] ss:$28 sps:$4 sm:$0xff]  }
 0x424   :  { %5984 = vmatpush2.bf16.msra.mxu1 %v7804_v8  ;;  %5942 = vmatprep.subr.bf16.mxu0 %v7809_v9  ;;  %v7876_v8 = vld [vmem:[#allocation12 + $0x710] ss:$28 sps:$4 sm:$0xff]   ;;  %v7881_v9 = vld [vmem:[#allocation12 + $0x6dc] ss:$28 sps:$4 sm:$0xff]  }
 0x425   :  { %5985 = vmatprep.subr.bf16.mxu1 %v7812_v10  ;;  %v7884_v10 = vld [vmem:[#allocation12 + $0xa5c] ss:$28 sps:$4 sm:$0xff]  }
 0x427   :  { %5943 = vmatpush2.bf16.msra.mxu0 %v7807_v12  ;;  %v7879_v12 = vld [vmem:[#allocation12 + $0x6d8] ss:$28 sps:$4 sm:$0xff]  }
 0x428   :  { %5986 = vmatpush2.bf16.msra.mxu1 %v7810_v16  ;;  %5944 = vmatprep.subr.bf16.mxu0 %v7815_v17  ;;  %v7882_v16 = vld [vmem:[#allocation12 + $0xa58] ss:$28 sps:$4 sm:$0xff]   ;;  %v7887_v17 = vld [vmem:[#allocation12 + $0x6a4] ss:$28 sps:$4 sm:$0xff]  }
 0x429   :  { %5987 = vmatprep.subr.bf16.mxu1 %v7818_v19  ;;  %v7890_v19 = vld [vmem:[#allocation12 + $0xa24] ss:$28 sps:$4 sm:$0xff]  }
 0x42b   :  { %5945 = vmatpush2.bf16.msra.mxu0 %v7813_v21  ;;  %v7885_v21 = vld [vmem:[#allocation12 + $0x6a0] ss:$28 sps:$4 sm:$0xff]  }
 0x42c   :  { %5988 = vmatpush2.bf16.msra.mxu1 %v7816_v31  ;;  %5946 = vmatprep.subr.bf16.mxu0 %v7821_v23  ;;  %v7888_v31 = vld [vmem:[#allocation12 + $0xa20] ss:$28 sps:$4 sm:$0xff]   ;;  %v7893_v23 = vld [vmem:[#allocation12 + $0x66c] ss:$28 sps:$4 sm:$0xff]  }
 0x42d   :  { %5989 = vmatprep.subr.bf16.mxu1 %v7824_v32  ;;  %v7896_v32 = vld [vmem:[#allocation12 + $0x9ec] ss:$28 sps:$4 sm:$0xff]  }
 0x42f   :  { %5947 = vmatpush2.bf16.msra.mxu0 %v7819_v26  ;;  %v7891_v26 = vld [vmem:[#allocation12 + $0x668] ss:$28 sps:$4 sm:$0xff]  }
 0x430   :  { %5990 = vmatpush2.bf16.msra.mxu1 %v7822_v30  ;;  %5948 = vmatprep.subr.bf16.mxu0 %v7827_v25  ;;  %v7894_v30 = vld [vmem:[#allocation12 + $0x9e8] ss:$28 sps:$4 sm:$0xff]   ;;  %v7899_v25 = vld [vmem:[#allocation12 + $0x634] ss:$28 sps:$4 sm:$0xff]  }
 0x431   :  { %5991 = vmatprep.subr.bf16.mxu1 %v7830_v33  ;;  %v7902_v33 = vld [vmem:[#allocation12 + $0x9b4] ss:$28 sps:$4 sm:$0xff]  }
 0x433   :  { %5949 = vmatpush2.bf16.msra.mxu0 %v7825_v34  ;;  %v5651_v34 = vpop.f32.mrf.mxu1 }
 0x434   :  { %5992 = vmatpush2.bf16.msra.mxu1 %v7828_v35  ;;  %6004 = vmatprep.subr.bf16.mxu0 %v7833_v36  ;;  %v7897_v35 = vld [vmem:[#allocation12 + $0x630] ss:$28 sps:$4 sm:$0xff]  }
 0x435   :  { %6047 = vmatprep.subr.bf16.mxu1 %v7836_v24  ;;  %v7900_v36 = vld [vmem:[#allocation12 + $0x9b0] ss:$28 sps:$4 sm:$0xff]   ;;  %v7905_v24 = vld [vmem:[#allocation12 + $0x5fc] ss:$28 sps:$4 sm:$0xff]  }
 0x436   :  { %5951 = vmatmul.mubr.bf16.vlgmr.msra.gmra.mxu0 %v8445_v58 }
 0x437   :  { %5994 = vmatmul.mubr.bf16.vlgmr.msra.gmra.mxu1 %v8410_v45  ;;  %6005 = vmatpush1.bf16.msra.mxu0 %v7831_v37  ;;  %v7908_v37 = vld [vmem:[#allocation12 + $0x97c] ss:$28 sps:$4 sm:$0xff]  }
 0x438   :  { %6036 = vmatprep.mubr.bf16.mxu0 %v8415_v18  ;;  %6048 = vmatpush1.bf16.msra.mxu1 %v7834_v38  ;;  %v5653_v38 = vpop.f32.mrf.mxu1 }
 0x439   :  { %6079 = vmatprep.mubr.bf16.mxu1 %v8429_v46  ;;  %6006 = vmatprep.subr.bf16.mxu0 %v7839_v14  ;;  %v7903_v14 = vld [vmem:[#allocation12 + $0x5f8] ss:$28 sps:$4 sm:$0xff]  }
 0x43a   :  { %6049 = vmatprep.subr.bf16.mxu1 %v7842_v39  ;;  %v7906_v39 = vld [vmem:[#allocation12 + $0x978] ss:$28 sps:$4 sm:$0xff]  }
 0x43b   :  { %6007 = vmatpush1.bf16.msra.mxu0 %v7837_v40  ;;  %v7911_v40 = vld [vmem:[#allocation12 + $0x5c4] ss:$28 sps:$4 sm:$0xff]  }
 0x43c   :  { %6050 = vmatpush1.bf16.msra.mxu1 %v7840_v41  ;;  %6008 = vmatprep.subr.bf16.mxu0 %v7845_v22  ;;  %v7914_v41 = vld [vmem:[#allocation12 + $0x944] ss:$28 sps:$4 sm:$0xff]   ;;  %v5655_v22 = vpop.f32.mrf.mxu1 }
 0x43d   :  { %6051 = vmatprep.subr.bf16.mxu1 %v7848_v13  ;;  %v7909_v13 = vld [vmem:[#allocation12 + $0x5c0] ss:$28 sps:$4 sm:$0xff]  }
 0x43f   :  { %6009 = vmatpush1.bf16.msra.mxu0 %v7843_v42  ;;  %v5694_v42 = vpop.f32.mrf.mxu0 }
 0x440   :  { %6052 = vmatpush1.bf16.msra.mxu1 %v7846_v15  ;;  %6010 = vmatprep.subr.bf16.mxu0 %v7851_v43  ;;  %v7912_v15 = vld [vmem:[#allocation12 + $0x940] ss:$28 sps:$4 sm:$0xff]   ;;  %v7917_v43 = vld [vmem:[#allocation12 + $0x58c] ss:$28 sps:$4 sm:$0xff]  }
 0x441   :  { %6053 = vmatprep.subr.bf16.mxu1 %v7854_v44  ;;  %v7920_v44 = vld [vmem:[#allocation12 + $0x90c] ss:$28 sps:$4 sm:$0xff]  }
 0x443   :  { %6011 = vmatpush1.bf16.msra.mxu0 %v7849_v48  ;;  %v8459_v48 = vld [vmem:[#allocation13] sm:$0xff] }
 0x444   :  { %6054 = vmatpush1.bf16.msra.mxu1 %v7852_v50  ;;  %6012 = vmatprep.subr.bf16.mxu0 %v7857_v51  ;;  %v5657_v50 = vpop.f32.mrf.mxu1  ;;  %v7915_v51 = vld [vmem:[#allocation12 + $0x588] ss:$28 sps:$4 sm:$0xff]  }
 0x445   :  { %6055 = vmatprep.subr.bf16.mxu1 %v7860_v52  ;;  %v5696_v52 = vpop.f32.mrf.mxu0 }
 0x447   :  { %6013 = vmatpush1.bf16.msra.mxu0 %v7855_v54  ;;  %v5737_v54 = vpop.f32.mrf.mxu1 }
 0x448   :  { %6056 = vmatpush1.bf16.msra.mxu1 %v7858_v56  ;;  %6014 = vmatprep.subr.bf16.mxu0 %v7863_v59  ;;  %v7918_v56 = vld [vmem:[#allocation12 + $0x908] ss:$28 sps:$4 sm:$0xff]   ;;  %v7923_v59 = vld [vmem:[#allocation12 + $0x554] ss:$28 sps:$4 sm:$0xff]  }
 0x449   :  { %6057 = vmatprep.subr.bf16.mxu1 %v7866_v60  ;;  %v3281_v60 = vrot.slane %v8459_v48, %v8334_v28  ;;  %v7927_v28 = vld [vmem:[#allocation12 + $0xc18] ss:$28 sps:$4 sm:$0xff]  }
 0x44b   :  { %6015 = vmatpush1.bf16.msra.mxu0 %v7861_v61  ;;  %v7926_v61 = vld [vmem:[#allocation12 + $0x8d4] ss:$28 sps:$4 sm:$0xff]  }
 0x44c   :  { %6058 = vmatpush1.bf16.msra.mxu1 %v7864_v62  ;;  %6016 = vmatprep.subr.bf16.mxu0 %v7869_v63  ;;  %v3285_v62 = vrot.slane %v8459_v48, %v8337_v29  ;;  %v7921_v63 = vld [vmem:[#allocation12 + $0x550] ss:$28 sps:$4 sm:$0xff]   ;;  %v7931_v29 = vld [vmem:[#allocation12 + $0x1a0] ss:$28 sps:$4 sm:$0xff]  }
 0x44d   :  { %6059 = vmatprep.subr.bf16.mxu1 %v7872_v0  ;;  %v5698_v0 = vpop.f32.mrf.mxu0 }
 0x44f   :  { %6017 = vmatpush1.bf16.msra.mxu0 %v7867_v1  ;;  %v5739_v1 = vpop.f32.mrf.mxu1 }
 0x450   :  { %6060 = vmatpush1.bf16.msra.mxu1 %v7870_v2  ;;  %6018 = vmatprep.subr.bf16.mxu0 %v7875_v3  ;;  %v7924_v2 = vld [vmem:[#allocation12 + $0x8d0] ss:$28 sps:$4 sm:$0xff]   ;;  %v7929_v3 = vld [vmem:[#allocation12 + $0xc1c] ss:$28 sps:$4 sm:$0xff]  }
 0x451   :  { %6061 = vmatprep.subr.bf16.mxu1 %v7878_v4  ;;  %v5652_v4 = vadd.f32 %v5651_v34, %v3281_v60 }
 0x453   :  { %6019 = vmatpush1.bf16.msra.mxu0 %v7873_v6  ;;  %v7930_v6 = vld [vmem:[#allocation12 + $0x360] ss:$28 sps:$4 sm:$0xff]  }
 0x454   :  { %6062 = vmatpush1.bf16.msra.mxu1 %v7876_v8  ;;  %6020 = vmatprep.subr.bf16.mxu0 %v7881_v9  ;;  %v5654_v8 = vadd.f32 %v5653_v38, %v3285_v62  ;;  %v5695_v9 = vadd.f32 %v5694_v42, %v5652_v4  ;;  %v7960_v4 = vld [vmem:[#allocation12 + $0x210] ss:$28 sps:$4 sm:$0xff]  }
 0x455   :  { %6063 = vmatprep.subr.bf16.mxu1 %v7884_v10  ;;  %v5700_v10 = vpop.f32.mrf.mxu0 }
 0x457   :  { %6021 = vmatpush2.bf16.msra.mxu0 %v7879_v12  ;;  %v5741_v12 = vpop.f32.mrf.mxu1 }
 0x458   :  { %6064 = vmatpush2.bf16.msra.mxu1 %v7882_v16  ;;  %6022 = vmatprep.subr.bf16.mxu0 %v7887_v17  ;;  %v5656_v16 = vadd.f32 %v5655_v22, %v3281_v60  ;;  %v5697_v17 = vadd.f32 %v5696_v52, %v5654_v8  ;;  %v7949_v52 = vld [vmem:[#allocation12 + $0xb3c] ss:$28 sps:$4 sm:$0xff]   ;;  %v7954_v60 = vld [vmem:[#allocation12 + $0xb04] ss:$28 sps:$4 sm:$0xff]  }
 0x459   :  { %6065 = vmatprep.subr.bf16.mxu1 %v7890_v19  ;;  %v5738_v19 = vadd.f32 %v5737_v54, %v5695_v9  ;;  %v5743_v34 = vpop.f32.mrf.mxu1  ;;  %v7950_v54 = vld [vmem:[#allocation12 + $0x280] ss:$28 sps:$4 sm:$0xff]   ;;  %v7957_v8 = vld [vmem:[#allocation12 + $0xac8] ss:$28 sps:$4 sm:$0xff]  }
 0x45b   :  { %6023 = vmatpush2.bf16.msra.mxu0 %v7885_v21  ;;  %v7934_v21 = vld [vmem:[#allocation12 + $0xbe4] ss:$28 sps:$4 sm:$0xff]  }
 0x45c   :  { %6066 = vmatpush2.bf16.msra.mxu1 %v7888_v31  ;;  %6024 = vmatprep.subr.bf16.mxu0 %v7893_v23  ;;  %v5658_v31 = vadd.f32 %v5657_v50, %v3285_v62  ;;  %v7945_v50 = vld [vmem:[#allocation12 + $0x2b8] ss:$28 sps:$4 sm:$0xff]  }
 0x45d   :  { %6067 = vmatprep.subr.bf16.mxu1 %v7896_v32  ;;  %v7935_v32 = vld [vmem:[#allocation12 + $0x328] ss:$28 sps:$4 sm:$0xff]  }
 0x45f   :  { %6025 = vmatpush2.bf16.msra.mxu0 %v7891_v26  ;;  %v5699_v26 = vadd.f32 %v5698_v0, %v5656_v16  ;;  %v7962_v16 = vld [vmem:[#allocation12 + $0xa90] ss:$28 sps:$4 sm:$0xff]  }
 0x460   :  { %6068 = vmatpush2.bf16.msra.mxu1 %v7894_v30  ;;  %6026 = vmatprep.subr.bf16.mxu0 %v7899_v25  ;;  %v5740_v30 = vadd.f32 %v5739_v1, %v5697_v17  ;;  %v7956_v1 = vld [vmem:[#allocation12 + $0x88] ss:$28 sps:$4 sm:$0xff]   ;;  %v7966_v17 = vld [vmem:[#allocation12 + $0x18] ss:$28 sps:$4 sm:$0xff]  }
 0x461   :  { %6069 = vmatprep.subr.bf16.mxu1 %v7902_v33  ;;  %v7932_v33 = vld [vmem:[#allocation12 + $0xbe0] ss:$28 sps:$4 sm:$0xff]   ;;  %v5742_v38 = vadd.f32 %v5741_v12, %v5699_v26  ;;  %v7975_v26 = vld [vmem:[#allocation12 + $0xa28] ss:$28 sps:$4 sm:$0xff]  }
 0x463   :  { %6027 = vmatpush2.bf16.msra.mxu0 %v7897_v35 }
 0x464   :  { %6070 = vmatpush2.bf16.msra.mxu1 %v7900_v36  ;;  %6028 = vmatprep.subr.bf16.mxu0 %v7905_v24  ;;  %v7936_v36 = vld [vmem:[#allocation12 + $0x168] ss:$28 sps:$4 sm:$0xff]  }
 0x465   :  { %6071 = vmatprep.subr.bf16.mxu1 %v7908_v37  ;;  %v7939_v24 = vld [vmem:[#allocation12 + $0xbac] ss:$28 sps:$4 sm:$0xff]   ;;  %v5701_v37 = vadd.f32 %v5700_v10, %v5658_v31  ;;  %v7964_v10 = vld [vmem:[#allocation12 + $0xa94] ss:$28 sps:$4 sm:$0xff]  }
 0x466   :  { %v7967_v31 = vld [vmem:[#allocation12 + $0xdd8] ss:$28 sps:$4 sm:$0xff]  }
 0x467   :  { %6029 = vmatpush2.bf16.msra.mxu0 %v7903_v14 }
 0x468   :  { %6072 = vmatpush2.bf16.msra.mxu1 %v7906_v39  ;;  %6030 = vmatprep.subr.bf16.mxu0 %v7911_v40  ;;  %v7940_v39 = vld [vmem:[#allocation12 + $0x2f0] ss:$28 sps:$4 sm:$0xff]  }
 0x469   :  { %6073 = vmatprep.subr.bf16.mxu1 %v7914_v41  ;;  %v5744_v41 = vadd.f32 %v5743_v34, %v5701_v37  ;;  %v7980_v34 = vld [vmem:[#allocation12 + $0x9f0] ss:$28 sps:$4 sm:$0xff]   ;;  %v7985_v37 = vld [vmem:[#allocation12 + $0x9b8] ss:$28 sps:$4 sm:$0xff]  }
 0x46b   :  { %6031 = vmatpush2.bf16.msra.mxu0 %v7909_v13  ;;  %v7937_v13 = vld [vmem:[#allocation12 + $0xba8] ss:$28 sps:$4 sm:$0xff]  }
 0x46c   :  { %6074 = vmatpush2.bf16.msra.mxu1 %v7912_v15  ;;  %6032 = vmatprep.subr.bf16.mxu0 %v7917_v43  ;;  %v7941_v15 = vld [vmem:[#allocation12 + $0x130] ss:$28 sps:$4 sm:$0xff]  }
 0x46d   :  { %6075 = vmatprep.subr.bf16.mxu1 %v7920_v44  ;;  %v7944_v43 = vld [vmem:[#allocation12 + $0xb74] ss:$28 sps:$4 sm:$0xff]  }
 0x46f   :  { %6033 = vmatpush2.bf16.msra.mxu0 %v7915_v51  ;;  %v7946_v51 = vld [vmem:[#allocation12 + $0xf8] ss:$28 sps:$4 sm:$0xff]  }
 0x470   :  { %6076 = vmatpush2.bf16.msra.mxu1 %v7918_v56  ;;  %6034 = vmatprep.subr.bf16.mxu0 %v7923_v59  ;;  %v7947_v56 = vld [vmem:[#allocation12 + $0xb38] ss:$28 sps:$4 sm:$0xff]   ;;  %v7951_v59 = vld [vmem:[#allocation12 + $0xc0] ss:$28 sps:$4 sm:$0xff]  }
 0x471   :  { %6077 = vmatprep.subr.bf16.mxu1 %v7926_v61  ;;  %v7955_v61 = vld [vmem:[#allocation12 + $0x248] ss:$28 sps:$4 sm:$0xff]  }
 0x473   :  { %6035 = vmatpush2.bf16.msra.mxu0 %v7921_v63  ;;  %v7952_v63 = vld [vmem:[#allocation12 + $0xb00] ss:$28 sps:$4 sm:$0xff]  }
 0x474   :  { %6078 = vmatpush2.bf16.msra.mxu1 %v7924_v2  ;;  %6090 = vmatprep.subr.bf16.mxu0 %v7929_v3  ;;  %v7959_v2 = vld [vmem:[#allocation12 + $0xacc] ss:$28 sps:$4 sm:$0xff]  }
 0x475   :  { %7173 = vmatprep.subr.bf16.mxu1 %v7930_v6 }
 0x476   :  { %6037 = vmatmul.mubr.bf16.vlgmr.msra.gmra.mxu0 %v8418_v20  ;;  %v5780_v23 = vpop.f32.mrf.mxu0 }
 0x477   :  { %6080 = vmatmul.mubr.bf16.vlgmr.msra.gmra.mxu1 %v8432_v49  ;;  %v5781_v25 = vadd.f32 %v5780_v23, %v5738_v19  ;;  %6091 = vmatpush1.bf16.msra.mxu0 %v7927_v28  ;;  %v7961_v28 = vld [vmem:[#allocation12 + $0x50] ss:$28 sps:$4 sm:$0xff]   ;;  %v7969_v19 = vld [vmem:[#allocation12 + $0xddc] ss:$28 sps:$4 sm:$0xff]  }
 0x478   :  { %6122 = vmatprep.mubr.bf16.mxu0 %v8442_v57  ;;  %7174 = vmatpush3.bf16.msra.mxu1 %v7931_v29  ;;  %v5782_v35 = vpop.f32.mrf.mxu0  ;;  %v7965_v29 = vld [vmem:[#allocation12 + $0x1d8] ss:$28 sps:$4 sm:$0xff]   ;;  %v7971_v23 = vld [vmem:[#allocation12 + $0x8a0] ss:$28 sps:$4 sm:$0xff]  }
 0x479   :  { %6165 = vmatprep.mubr.bf16.mxu1 %v8399_v47  ;;  %v5783_v14 = vadd.f32 %v5782_v35, %v5740_v30  ;;  %6092 = vmatprep.subr.bf16.mxu0 %v7934_v21  ;;  %8039 = vtanh.f32 %v5781_v25  ;;  %v7942_v47 = vld [vmem:[#allocation12 + $0xb70] ss:$28 sps:$4 sm:$0xff]   ;;  %v7970_v21 = vld [vmem:[#allocation12 + $0xa60] ss:$28 sps:$4 sm:$0xff]   ;;  %v7976_v25 = vld [vmem:[#allocation12 + $0x868] ss:$28 sps:$4 sm:$0xff]  }
 0x47a   :  { %7175 = vmatprep.subr.bf16.mxu1 %v7935_v32  ;;  %v5784_v40 = vpop.f32.mrf.mxu0  ;;  %v7974_v32 = vld [vmem:[#allocation12 + $0xda4] ss:$28 sps:$4 sm:$0xff]  }
 0x47b   :  { %8041 = vtanh.f32 %v5783_v14  ;;  %v5785_v22 = vadd.f32 %v5784_v40, %v5742_v38  ;;  %6093 = vmatpush1.bf16.msra.mxu0 %v7932_v33  ;;  %v7972_v30 = vld [vmem:[#allocation12 + $0xda0] ss:$28 sps:$4 sm:$0xff]   ;;  %v7979_v33 = vld [vmem:[#allocation12 + $0xd6c] ss:$28 sps:$4 sm:$0xff]   ;;  %v7986_v38 = vld [vmem:[#allocation12 + $0x7f8] ss:$28 sps:$4 sm:$0xff]  }
 0x47c   :  { %7176 = vmatpush3.bf16.msra.mxu1 %v7936_v36  ;;  %v5786_v42 = vpop.f32.mrf.mxu0  ;;  %6094 = vmatprep.subr.bf16.mxu0 %v7939_v24  ;;  %v7977_v35 = vld [vmem:[#allocation12 + $0xd68] ss:$28 sps:$4 sm:$0xff]   ;;  %v7981_v36 = vld [vmem:[#allocation12 + $0x830] ss:$28 sps:$4 sm:$0xff]   ;;  %v7989_v14 = vld [vmem:[#allocation12 + $0xcfc] ss:$28 sps:$4 sm:$0xff]  }
 0x47d   :  { %v5787_v44 = vadd.f32 %v5786_v42, %v5744_v41  ;;  %7177 = vmatprep.subr.bf16.mxu1 %v7940_v39  ;;  %8043 = vtanh.f32 %v5785_v22  ;;  %v7984_v24 = vld [vmem:[#allocation12 + $0xd34] ss:$28 sps:$4 sm:$0xff]   ;;  %v7991_v40 = vld [vmem:[#allocation12 + $0x7c0] ss:$28 sps:$4 sm:$0xff]   ;;  %v7995_v22 = vld [vmem:[#allocation12 + $0x948] ss:$28 sps:$4 sm:$0xff]  }
 0x47e   :  { %v7987_v39 = vld [vmem:[#allocation12 + $0xcf8] ss:$28 sps:$4 sm:$0xff]   ;;  %v7994_v41 = vld [vmem:[#allocation12 + $0xcc4] ss:$28 sps:$4 sm:$0xff]  }
 0x47f   :  { %8045 = vtanh.f32 %v5787_v44  ;;  %6095 = vmatpush1.bf16.msra.mxu0 %v7937_v13  ;;  %v7992_v13 = vld [vmem:[#allocation12 + $0xcc0] ss:$28 sps:$4 sm:$0xff]   ;;  %v7996_v42 = vld [vmem:[#allocation12 + $0x788] ss:$28 sps:$4 sm:$0xff]  }
 0x480   :  { %7178 = vmatpush3.bf16.msra.mxu1 %v7941_v15  ;;  %6096 = vmatprep.subr.bf16.mxu0 %v7944_v43  ;;  %v7999_v15 = vld [vmem:[#allocation12 + $0xc8c] ss:$28 sps:$4 sm:$0xff]  }
 0x481   :  { %7179 = vmatprep.subr.bf16.mxu1 %v7945_v50  ;;  %v8000_v43 = vld [vmem:[#allocation12 + $0x910] ss:$28 sps:$4 sm:$0xff]   ;;  %v7997_v44 = vld [vmem:[#allocation12 + $0xc88] ss:$28 sps:$4 sm:$0xff]  }
 0x482   :  { %v8001_v50 = vld [vmem:[#allocation12 + $0x750] ss:$28 sps:$4 sm:$0xff]  }
 0x483   :  { %6097 = vmatpush1.bf16.msra.mxu0 %v7942_v47  ;;  %v8004_v47 = vld [vmem:[#allocation12 + $0xc54] ss:$28 sps:$4 sm:$0xff]  }
 0x484   :  { %7180 = vmatpush3.bf16.msra.mxu1 %v7946_v51  ;;  %6098 = vmatprep.subr.bf16.mxu0 %v7949_v52  ;;  %v8005_v51 = vld [vmem:[#allocation12 + $0x8d8] ss:$28 sps:$4 sm:$0xff]   ;;  %v8002_v52 = vld [vmem:[#allocation12 + $0xc50] ss:$28 sps:$4 sm:$0xff]  }
 0x485   :  { %7181 = vmatprep.subr.bf16.mxu1 %v7950_v54  ;;  %v8006_v54 = vld [vmem:[#allocation12 + $0x718] ss:$28 sps:$4 sm:$0xff]  }
 0x486   :  { %v8040_v62 = vpop.eup %8039 }
 0x487   :  { %6099 = vmatpush1.bf16.msra.mxu0 %v7947_v56  ;;  %v8007_v56 = vld [vmem:[#allocation12 + $0x6e0] ss:$28 sps:$4 sm:$0xff]  }
 0x488   :  { %v8042_v0 = vpop.eup %8041  ;;  %7182 = vmatpush3.bf16.msra.mxu1 %v7951_v59  ;;  %6100 = vmatprep.subr.bf16.mxu0 %v7954_v60  ;;  %v8008_v59 = vld [vmem:[#allocation12 + $0x520] ss:$28 sps:$4 sm:$0xff]   ;;  %v8009_v60 = vld [vmem:[#allocation12 + $0x6a8] ss:$28 sps:$4 sm:$0xff]  }
 0x489   :  { %v7165_v3 = vpack.c.bf16 %v8042_v0, %v8040_v62  ;;  %7183 = vmatprep.subr.bf16.mxu1 %v7955_v61  ;;  %v8010_v61 = vld [vmem:[#allocation12 + $0x4e8] ss:$28 sps:$4 sm:$0xff]   ;;  %v8011_v62 = vld [vmem:[#allocation12 + $0x670] ss:$28 sps:$4 sm:$0xff]   ;;  %v8013_v0 = vld [vmem:[#allocation12 + $0x638] ss:$28 sps:$4 sm:$0xff]  }
 0x48a   :  { %v8044_v6 = vpop.eup %8043 }
 0x48b   :  { %6355 = vst [vmem:[%s8523_s9] sm:$0xff] %v7165_v3  ;;  %6101 = vmatpush1.bf16.msra.mxu0 %v7952_v63  ;;  %v8012_v63 = vld [vmem:[#allocation12 + $0x4b0] ss:$28 sps:$4 sm:$0xff]   ;;  %v8016_v3 = vld [vmem:[#allocation12 + $0x440] ss:$28 sps:$4 sm:$0xff]  }
 0x48c   :  { %v8046_v9 = vpop.eup %8045  ;;  %7184 = vmatpush3.bf16.msra.mxu1 %v7956_v1  ;;  %6102 = vmatprep.subr.bf16.mxu0 %v7959_v2  ;;  %v8014_v1 = vld [vmem:[#allocation12 + $0x478] ss:$28 sps:$4 sm:$0xff]   ;;  %v8015_v2 = vld [vmem:[#allocation12 + $0x600] ss:$28 sps:$4 sm:$0xff]  }
 0x48d   :  { %v7169_v12 = vpack.c.bf16 %v8046_v9, %v8044_v6  ;;  %7185 = vmatprep.subr.bf16.mxu1 %v7960_v4  ;;  %v8017_v4 = vld [vmem:[#allocation12 + $0x5c8] ss:$28 sps:$4 sm:$0xff]   ;;  %v8019_v6 = vld [vmem:[#allocation12 + $0x590] ss:$28 sps:$4 sm:$0xff]   ;;  %v8022_v9 = vld [vmem:[#allocation12 + $0x398] ss:$28 sps:$4 sm:$0xff]  }
 0x48f   :  { %6359 = vst [vmem:[%s8523_s9 + $0x1c] sm:$0xff] %v7169_v12  ;;  %6103 = vmatpush1.bf16.msra.mxu0 %v7957_v8  ;;  %v8021_v8 = vld [vmem:[#allocation12 + $0x558] ss:$28 sps:$4 sm:$0xff]   ;;  %v8025_v12 = vld [vmem:[#allocation12 + $0xda8] ss:$28 sps:$4 sm:$0xff]  }
 0x490   :  { %7186 = vmatpush3.bf16.msra.mxu1 %v7961_v28  ;;  %6104 = vmatprep.subr.bf16.mxu0 %v7964_v10  ;;  %v8023_v28 = vld [vmem:[#allocation12 + $0xde0] ss:$28 sps:$4 sm:$0xff]  }
 0x491   :  { %7187 = vmatprep.subr.bf16.mxu1 %v7965_v29  ;;  %v8024_v10 = vld [vmem:[#allocation12 + $0xc20] ss:$28 sps:$4 sm:$0xff]   ;;  %v8026_v29 = vld [vmem:[#allocation12 + $0xbe8] ss:$28 sps:$4 sm:$0xff]  }
 0x493   :  { %6105 = vmatpush1.bf16.msra.mxu0 %v7962_v16  ;;  %v8027_v16 = vld [vmem:[#allocation12 + $0xd70] ss:$28 sps:$4 sm:$0xff]  }
 0x494   :  { %7188 = vmatpush3.bf16.msra.mxu1 %v7966_v17  ;;  %6106 = vmatprep.subr.bf16.mxu0 %v7969_v19  ;;  %v8028_v17 = vld [vmem:[#allocation12 + $0xbb0] ss:$28 sps:$4 sm:$0xff]   ;;  %v8029_v19 = vld [vmem:[#allocation12 + $0xd38] ss:$28 sps:$4 sm:$0xff]  }
 0x495   :  { %7217 = vmatprep.subr.bf16.mxu1 %v7970_v21  ;;  %v8030_v21 = vld [vmem:[#allocation12 + $0xb78] ss:$28 sps:$4 sm:$0xff]  }
 0x497   :  { %6166 = vmatmul.mubr.bf16.vlgmr.msra.gmra.mxu1 %v8410_v45  ;;  %6107 = vmatpush2.bf16.msra.mxu0 %v7967_v31  ;;  %v7982_v45 = vld [vmem:[#allocation12 + $0xd30] ss:$28 sps:$4 sm:$0xff]   ;;  %v5823_v31 = vpop.f32.mrf.mxu1 }
 0x498   :  { %7218 = vmatpush3.bf16.msra.mxu1 %v7971_v23  ;;  %6247 = vmatprep.mubr.bf16.mxu1 %v8429_v46  ;;  %v7990_v46 = vld [vmem:[#allocation12 + $0x980] ss:$28 sps:$4 sm:$0xff]  }
 0x499   :  { %6108 = vmatprep.subr.bf16.mxu0 %v7974_v32  ;;  %7219 = vmatprep.subr.bf16.mxu1 %v7975_v26  ;;  %v8031_v23 = vld [vmem:[#allocation12 + $0xd00] ss:$28 sps:$4 sm:$0xff]   ;;  %v5825_v26 = vpop.f32.mrf.mxu1 }
 0x49a   :  { %v8032_v32 = vld [vmem:[#allocation12 + $0xb40] ss:$28 sps:$4 sm:$0xff]  }
 0x49b   :  { %6109 = vmatpush2.bf16.msra.mxu0 %v7972_v30  ;;  %v8034_v30 = vld [vmem:[#allocation12 + $0xb08] ss:$28 sps:$4 sm:$0xff]  }
 0x49c   :  { %7220 = vmatpush3.bf16.msra.mxu1 %v7976_v25  ;;  %6110 = vmatprep.subr.bf16.mxu0 %v7979_v33  ;;  %v8035_v33 = vld [vmem:[#allocation12 + $0xc90] ss:$28 sps:$4 sm:$0xff]  }
 0x49d   :  { %7221 = vmatprep.subr.bf16.mxu1 %v7980_v34  ;;  %v3289_v34 = vrot.slane %v8459_v48, %v8354_v53 }
 0x49f   :  { %6111 = vmatpush2.bf16.msra.mxu0 %v7977_v35  ;;  %v8036_v35 = vld [vmem:[#allocation12 + $0xad0] ss:$28 sps:$4 sm:$0xff]  }
 0x4a0   :  { %7222 = vmatpush3.bf16.msra.mxu1 %v7981_v36  ;;  %6112 = vmatprep.subr.bf16.mxu0 %v7984_v24 }
 0x4a1   :  { %7223 = vmatprep.subr.bf16.mxu1 %v7985_v37  ;;  %v8037_v37 = vld [vmem:[#allocation12 + $0xc58] ss:$28 sps:$4 sm:$0xff]  }
 0x4a3   :  { %6113 = vmatpush2.bf16.msra.mxu0 %v7982_v45  ;;  %v3293_v45 = vrot.slane %v8459_v48, %v8357_v55 }
 0x4a4   :  { %7224 = vmatpush3.bf16.msra.mxu1 %v7986_v38  ;;  %6114 = vmatprep.subr.bf16.mxu0 %v7989_v14  ;;  %v5824_v14 = vadd.f32 %v5823_v31, %v3289_v34 }
 0x4a5   :  { %7225 = vmatprep.subr.bf16.mxu1 %v7990_v46  ;;  %v8038_v46 = vld [vmem:[#allocation12 + $0xa98] ss:$28 sps:$4 sm:$0xff]  }
 0x4a7   :  { %6115 = vmatpush2.bf16.msra.mxu0 %v7987_v39 }
 0x4a8   :  { %7226 = vmatpush3.bf16.msra.mxu1 %v7991_v40  ;;  %6116 = vmatprep.subr.bf16.mxu0 %v7994_v41  ;;  %v5826_v40 = vadd.f32 %v5825_v26, %v3293_v45 }
 0x4a9   :  { %7227 = vmatprep.subr.bf16.mxu1 %v7995_v22 }
 0x4ab   :  { %6117 = vmatpush2.bf16.msra.mxu0 %v7992_v13 }
 0x4ac   :  { %7228 = vmatpush3.bf16.msra.mxu1 %v7996_v42  ;;  %6118 = vmatprep.subr.bf16.mxu0 %v7999_v15 }
 0x4ad   :  { %7229 = vmatprep.subr.bf16.mxu1 %v8000_v43 }
 0x4af   :  { %6119 = vmatpush2.bf16.msra.mxu0 %v7997_v44 }
 0x4b0   :  { %7230 = vmatpush3.bf16.msra.mxu1 %v8001_v50  ;;  %6120 = vmatprep.subr.bf16.mxu0 %v8004_v47 }
 0x4b1   :  { %7231 = vmatprep.subr.bf16.mxu1 %v8005_v51 }
 0x4b3   :  { %6121 = vmatpush2.bf16.msra.mxu0 %v8002_v52 }
 0x4b4   :  { %7232 = vmatpush3.bf16.msra.mxu1 %v8006_v54  ;;  %7195 = vmatprep.subr.bf16.mxu0 %v8007_v56 }
 0x4b6   :  { %6123 = vmatmul.mubr.bf16.vlgmr.msra.gmra.mxu0 %v8445_v58  ;;  %v5866_v25 = vpop.f32.mrf.mxu0 }
 0x4b7   :  { %6248 = vmatmul.mubr.bf16.vlgmr.msra.gmra.mxu1 %v8432_v49  ;;  %7196 = vmatpush3.bf16.msra.mxu0 %v8008_v59  ;;  %v8018_v49 = vld [vmem:[#allocation12 + $0x408] ss:$28 sps:$4 sm:$0xff]   ;;  %v5867_v41 = vadd.f32 %v5866_v25, %v5824_v14 }
 0x4b8   :  { %6206 = vmatprep.mubr.bf16.mxu0 %v8415_v18  ;;  %7197 = vmatprep.subr.bf16.mxu0 %v8009_v60  ;;  %v8020_v18 = vld [vmem:[#allocation12 + $0x3d0] ss:$28 sps:$4 sm:$0xff]   ;;  %v5868_v24 = vpop.f32.mrf.mxu0 }
 0x4b9   :  { %v5869_v53 = vadd.f32 %v5868_v24, %v5826_v40 }
 0x4ba   :  { %v5870_v39 = vpop.f32.mrf.mxu0 }
 0x4bb   :  { %7198 = vmatpush3.bf16.msra.mxu0 %v8010_v61 }
 0x4bc   :  { %7199 = vmatprep.subr.bf16.mxu0 %v8011_v62  ;;  %v5872_v42 = vpop.f32.mrf.mxu0 }
 0x4bf   :  { %7200 = vmatpush3.bf16.msra.mxu0 %v8012_v63 }
 0x4c0   :  { %7201 = vmatprep.subr.bf16.mxu0 %v8013_v0 }
 0x4c3   :  { %7202 = vmatpush3.bf16.msra.mxu0 %v8014_v1 }
 0x4c4   :  { %7203 = vmatprep.subr.bf16.mxu0 %v8015_v2 }
 0x4c7   :  { %7204 = vmatpush3.bf16.msra.mxu0 %v8016_v3 }
 0x4c8   :  { %7205 = vmatprep.subr.bf16.mxu0 %v8017_v4 }
 0x4cb   :  { %7206 = vmatpush3.bf16.msra.mxu0 %v8018_v49 }
 0x4cc   :  { %7207 = vmatprep.subr.bf16.mxu0 %v8019_v6 }
 0x4cf   :  { %7208 = vmatpush3.bf16.msra.mxu0 %v8020_v18 }
 0x4d0   :  { %7209 = vmatprep.subr.bf16.mxu0 %v8021_v8 }
 0x4d3   :  { %7210 = vmatpush3.bf16.msra.mxu0 %v8022_v9 }
 0x4d4   :  { %7239 = vmatprep.subr.bf16.mxu0 %v8023_v28 }
 0x4d6   :  { %6207 = vmatmul.mubr.bf16.vlgmr.msra.gmra.mxu0 %v8418_v20  ;;  %v8033_v20 = vld [vmem:[#allocation12 + $0xcc8] ss:$28 sps:$4 sm:$0xff]  }
 0x4d7   :  { %7240 = vmatpush3.bf16.msra.mxu0 %v8024_v10  ;;  %6288 = vmatprep.mubr.bf16.mxu0 %v8442_v57  ;;  %v5827_v57 = vpop.f32.mrf.mxu1  ;;  %v3297_v10 = vrot.slane %v8459_v48, %v1086_v5 }
 0x4d8   :  { %7241 = vmatprep.subr.bf16.mxu0 %v8025_v12  ;;  %v5828_v13 = vadd.f32 %v5827_v57, %v3289_v34 }
 0x4d9   :  { %v5829_v36 = vpop.f32.mrf.mxu1 }
 0x4da   :  { %v5830_v15 = vadd.f32 %v5829_v36, %v3293_v45  ;;  %v5871_v44 = vadd.f32 %v5870_v39, %v5828_v13 }
 0x4db   :  { %7242 = vmatpush3.bf16.msra.mxu0 %v8026_v29  ;;  %v5909_v38 = vpop.f32.mrf.mxu1 }
 0x4dc   :  { %7243 = vmatprep.subr.bf16.mxu0 %v8027_v16  ;;  %v5910_v43 = vadd.f32 %v5909_v38, %v5867_v41  ;;  %v5873_v51 = vadd.f32 %v5872_v42, %v5830_v15  ;;  %v3301_v16 = vrot.slane %v8459_v48, %v1090_v7 }
 0x4dd   :  { %v5911_v22 = vpop.f32.mrf.mxu1 }
 0x4de   :  { %v5912_v55 = vadd.f32 %v5911_v22, %v5869_v53 }
 0x4df   :  { %7244 = vmatpush3.bf16.msra.mxu0 %v8028_v17  ;;  %v5913_v50 = vpop.f32.mrf.mxu1 }
 0x4e0   :  { %7245 = vmatprep.subr.bf16.mxu0 %v8029_v19  ;;  %v5914_v56 = vadd.f32 %v5913_v50, %v5871_v44 }
 0x4e1   :  { %v5915_v60 = vpop.f32.mrf.mxu1 }
 0x4e2   :  { %v5916_v62 = vadd.f32 %v5915_v60, %v5873_v51 }
 0x4e3   :  { %7246 = vmatpush3.bf16.msra.mxu0 %v8030_v21 }
 0x4e4   :  { %7247 = vmatprep.subr.bf16.mxu0 %v8031_v23 }
 0x4e7   :  { %7248 = vmatpush3.bf16.msra.mxu0 %v8032_v32 }
 0x4e8   :  { %7249 = vmatprep.subr.bf16.mxu0 %v8033_v20 }
 0x4eb   :  { %7250 = vmatpush3.bf16.msra.mxu0 %v8034_v30 }
 0x4ec   :  { %7251 = vmatprep.subr.bf16.mxu0 %v8035_v33 }
 0x4ef   :  { %7252 = vmatpush3.bf16.msra.mxu0 %v8036_v35 }
 0x4f0   :  { %7253 = vmatprep.subr.bf16.mxu0 %v8037_v37 }
 0x4f3   :  { %7254 = vmatpush3.bf16.msra.mxu0 %v8038_v46 }
 0x4f6   :  { %v5952_v47 = vpop.f32.mrf.mxu0  ;;  %6289 = vmatmul.mubr.bf16.vlgmr.msra.gmra.mxu0 %v8445_v58 }
 0x4f7   :  { %v5953_v52 = vadd.f32 %v5952_v47, %v5910_v43  ;;  %v5995_v18 = vpop.f32.mrf.mxu1 }
 0x4f8   :  { %v5954_v54 = vpop.f32.mrf.mxu0  ;;  %v5996_v19 = vadd.f32 %v5995_v18, %v3297_v10 }
 0x4f9   :  { %v5955_v59 = vadd.f32 %v5954_v54, %v5912_v55  ;;  %8047 = vtanh.f32 %v5953_v52  ;;  %v5997_v8 = vpop.f32.mrf.mxu1 }
 0x4fa   :  { %v5956_v61 = vpop.f32.mrf.mxu0  ;;  %v5998_v31 = vadd.f32 %v5997_v8, %v3301_v16 }
 0x4fb   :  { %8049 = vtanh.f32 %v5955_v59  ;;  %v5957_v63 = vadd.f32 %v5956_v61, %v5914_v56  ;;  %v5999_v9 = vpop.f32.mrf.mxu1  ;;  %v3305_v59 = vrot.slane %v8459_v48, %v1094_v11 }
 0x4fc   :  { %v5958_v0 = vpop.f32.mrf.mxu0  ;;  %v6000_v26 = vadd.f32 %v5999_v9, %v3297_v10 }
 0x4fd   :  { %v5959_v1 = vadd.f32 %v5958_v0, %v5916_v62  ;;  %8051 = vtanh.f32 %v5957_v63  ;;  %v6001_v12 = vpop.f32.mrf.mxu1 }
 0x4fe   :  { %v6002_v57 = vadd.f32 %v6001_v12, %v3301_v16 }
 0x4ff   :  { %8053 = vtanh.f32 %v5959_v1 }
 0x506   :  { %v8048_v2 = vpop.eup %8047 }
 0x508   :  { %v8050_v3 = vpop.eup %8049 }
 0x509   :  { %v7166_v4 = vpack.c.bf16 %v8050_v3, %v8048_v2 }
 0x50a   :  { %v8052_v58 = vpop.eup %8051 }
 0x50b   :  { %6356 = vst [vmem:[%s8523_s9 + $0x8] sm:$0xff] %v7166_v4 }
 0x50c   :  { %v8054_v49 = vpop.eup %8053 }
 0x50d   :  { %v7170_v6 = vpack.c.bf16 %v8054_v49, %v8052_v58 }
 0x50f   :  { %6360 = vst [vmem:[%s8523_s9 + $0x24] sm:$0xff] %v7170_v6 }
 0x536   :  { %v6038_v28 = vpop.f32.mrf.mxu0 }
 0x537   :  { %v6081_v17 = vpop.f32.mrf.mxu1  ;;  %v6039_v23 = vadd.f32 %v6038_v28, %v5996_v19 }
 0x538   :  { %v6040_v29 = vpop.f32.mrf.mxu0 }
 0x539   :  { %v6083_v32 = vpop.f32.mrf.mxu1  ;;  %v6041_v20 = vadd.f32 %v6040_v29, %v5998_v31  ;;  %v6082_v25 = vadd.f32 %v6081_v17, %v6039_v23 }
 0x53a   :  { %v6042_v21 = vpop.f32.mrf.mxu0 }
 0x53b   :  { %v6043_v33 = vadd.f32 %v6042_v21, %v6000_v26  ;;  %v6085_v34 = vpop.f32.mrf.mxu1  ;;  %v6084_v35 = vadd.f32 %v6083_v32, %v6041_v20 }
 0x53c   :  { %v6044_v30 = vpop.f32.mrf.mxu0 }
 0x53d   :  { %v6045_v36 = vadd.f32 %v6044_v30, %v6002_v57  ;;  %v6086_v45 = vadd.f32 %v6085_v34, %v6043_v33  ;;  %v6087_v38 = vpop.f32.mrf.mxu1 }
 0x53f   :  { %v6088_v46 = vadd.f32 %v6087_v38, %v6045_v36 }
 0x557   :  { %v7189_v44 = vpop.f32.mrf.mxu1 }
 0x559   :  { %v7190_v50 = vpop.f32.mrf.mxu1 }
 0x55a   :  { %v7191_v60 = vadd.f32 %v7190_v50, %v7189_v44 }
 0x55b   :  { %v7192_v47 = vpop.f32.mrf.mxu1 }
 0x55c   :  { %v6168_v0 = vadd.f32 %v7191_v60, %v3305_v59 }
 0x55d   :  { %v7193_v51 = vpop.f32.mrf.mxu1 }
 0x55e   :  { %v7194_v1 = vadd.f32 %v7193_v51, %v7192_v47 }
 0x560   :  { %v6171_v49 = vadd.f32 %v7194_v1, %v3305_v59 }
 0x576   :  { %v6124_v5 = vpop.f32.mrf.mxu0 }
 0x577   :  { %v6125_v24 = vadd.f32 %v6124_v5, %v6082_v25  ;;  %v7233_v54 = vpop.f32.mrf.mxu1 }
 0x578   :  { %v6126_v37 = vpop.f32.mrf.mxu0 }
 0x579   :  { %v6127_v7 = vadd.f32 %v6126_v37, %v6084_v35  ;;  %8055 = vtanh.f32 %v6125_v24  ;;  %v7234_v61 = vpop.f32.mrf.mxu1 }
 0x57a   :  { %v6128_v14 = vpop.f32.mrf.mxu0  ;;  %v7235_v6 = vadd.f32 %v7234_v61, %v7233_v54 }
 0x57b   :  { %8057 = vtanh.f32 %v6127_v7  ;;  %v6129_v39 = vadd.f32 %v6128_v14, %v6086_v45  ;;  %v7236_v2 = vpop.f32.mrf.mxu1 }
 0x57c   :  { %v6130_v40 = vpop.f32.mrf.mxu0 }
 0x57d   :  { %v6131_v41 = vadd.f32 %v6130_v40, %v6088_v46  ;;  %8059 = vtanh.f32 %v6129_v39  ;;  %v7237_v18 = vpop.f32.mrf.mxu1 }
 0x57e   :  { %v7238_v12 = vadd.f32 %v7237_v18, %v7236_v2 }
 0x57f   :  { %8061 = vtanh.f32 %v6131_v41 }
 0x586   :  { %v8056_v22 = vpop.eup %8055 }
 0x588   :  { %v8058_v13 = vpop.eup %8057 }
 0x589   :  { %v7167_v53 = vpack.c.bf16 %v8058_v13, %v8056_v22 }
 0x58a   :  { %v8060_v42 = vpop.eup %8059 }
 0x58b   :  { %6357 = vst [vmem:[%s8523_s9 + $0x10] sm:$0xff] %v7167_v53 }
 0x58c   :  { %v8062_v15 = vpop.eup %8061 }
 0x58d   :  { %v7171_v43 = vpack.c.bf16 %v8062_v15, %v8060_v42 }
 0x58f   :  { %6361 = vst [vmem:[%s8523_s9 + $0x2c] sm:$0xff] %v7171_v43 }
 0x596   :  { %v7211_v55 = vpop.f32.mrf.mxu0 }
 0x598   :  { %v7212_v52 = vpop.f32.mrf.mxu0 }
 0x599   :  { %v7213_v62 = vadd.f32 %v7212_v52, %v7211_v55 }
 0x59a   :  { %v7214_v56 = vpop.f32.mrf.mxu0 }
 0x59b   :  { %v6209_v3 = vadd.f32 %v7213_v62, %v6168_v0 }
 0x59c   :  { %v7215_v63 = vpop.f32.mrf.mxu0 }
 0x59d   :  { %v7216_v4 = vadd.f32 %v7215_v63, %v7214_v56  ;;  %v6250_v28 = vadd.f32 %v7235_v6, %v6209_v3 }
 0x59f   :  { %v6212_v9 = vadd.f32 %v7216_v4, %v6171_v49 }
 0x5a1   :  { %v6253_v29 = vadd.f32 %v7238_v12, %v6212_v9 }
 0x5b6   :  { %v7255_v58 = vpop.f32.mrf.mxu0 }
 0x5b8   :  { %v7256_v8 = vpop.f32.mrf.mxu0 }
 0x5b9   :  { %v7257_v10 = vadd.f32 %v7256_v8, %v7255_v58 }
 0x5ba   :  { %v7258_v27 = vpop.f32.mrf.mxu0 }
 0x5bb   :  { %v6291_v11 = vadd.f32 %v7257_v10, %v6250_v28 }
 0x5bc   :  { %v7259_v48 = vpop.f32.mrf.mxu0 }
 0x5bd   :  { %8063 = vtanh.f32 %v6291_v11  ;;  %v7260_v16 = vadd.f32 %v7259_v48, %v7258_v27 }
 0x5bf   :  { %v6294_v17 = vadd.f32 %v7260_v16, %v6253_v29 }
 0x5c1   :  { %8065 = vtanh.f32 %v6294_v17 }
 0x5ca   :  { %v8064_v19 = vpop.eup %8063 }
 0x5cb   :  { %v7168_v21 = vpack.c.bf16 %v8064_v19, %v8064_v19 }
 0x5cd   :  { %6358 = vst [vmem:[%s8523_s9 + $0x18] sm:$0xf] %v7168_v21 }
 0x5ce   :  { %v8066_v31 = vpop.eup %8065 }
 0x5cf   :  { %v7172_v23 = vpack.c.bf16 %v8066_v31, %v8066_v31 }
 0x5d1   :  { %6362 = vst [vmem:[%s8523_s9 + $0x34] sm:$0xf] %v7172_v23 }
 0x5d2   :  { %6367 = vsyncpa [#allocation3], 1 }
 0x5d3   :  { %6368 = vsyncpa [#allocation5], 1 }
 0x5d4   :  { %6369 = vsyncpa [#allocation8], 1 }
 0x5d5   :  { %6370 = vsyncpa [#allocation11], 1 }
 0x5d6   :  { %6371 = vsyncpa [#allocation14], 1 }

</bundles_post_ra>
